<compile_context>
chip_gen: v6e
topology: v6e:2x2x1
jax: 0.10.0
libtpu: 0.0.40
codegen_flags: <defaults>
</compile_context>

<pallas_src>
import functools

import jax
import jax.numpy as jnp
import numpy as np
from jax import lax
from jax.experimental import pallas as pl
from jax.experimental.pallas import tpu as pltpu


# ------------------------------ Pallas kernel -------------------------------


def _dw_block(a, sel_ref, dww_ref, dwb_ref, pww_ref, pwb_ref, m_out):
    """Fused depthwise-3x3(+BN+ReLU) -> pointwise-1x1(+BN+ReLU), fully in VMEM.

    a        : [M_in, cin]  activation, raster spatial order, f32.
    sel_ref  : [9*m_out, M_in] bf16 0/1 selector; row block t = 3*dy+dx gathers the
               (zero-padded, possibly strided) 3x3 tap for every output position.
    returns  : [m_out, cout] f32.
    """
    taps = jnp.dot(sel_ref[...], a.astype(jnp.bfloat16),
                   preferred_element_type=jnp.float32)            # [9*m_out, cin]
    dww = dww_ref[...]                                            # [9, cin] f32
    # 9-tap depthwise MAC with two running accumulators (no 9 live tap products).
    acc0 = taps[0:m_out, :] * dww[0:1, :]
    acc1 = taps[m_out:2 * m_out, :] * dww[1:2, :]
    for t in range(2, 9):
        term = taps[t * m_out:(t + 1) * m_out, :] * dww[t:t + 1, :]
        if t % 2 == 0:
            acc0 = acc0 + term
        else:
            acc1 = acc1 + term
    y = jnp.maximum(acc0 + acc1 + dwb_ref[...], 0.0)              # [m_out, cin] f32
    z = jnp.dot(y.astype(jnp.bfloat16), pww_ref[...],
                preferred_element_type=jnp.float32)                # [m_out, cout]
    return jnp.maximum(z + pwb_ref[...], 0.0)


def make_onenet_kernel(m_outs):
    """Whole-network kernel: stem matmul -> dw1 -> dw2 -> dw4 -> dw6 -> global pool."""
    m_last = m_outs[-1]

    def kernel(*refs):
        patches_ref, c1w_ref, c1b_ref = refs[0:3]
        out_ref = refs[-1]

        # Stem Conv2d(3,32,k3,s2,p1)+BN+ReLU as one im2col matmul (bf16 MXU, f32 acc).
        a = jnp.dot(patches_ref[...], c1w_ref[...],
                    preferred_element_type=jnp.float32)
        a = jnp.maximum(a + c1b_ref[...], 0.0)                     # [M0, 32] f32

        idx = 3
        for m_out in m_outs:
            sel, dww, dwb, pww, pwb = refs[idx:idx + 5]
            idx += 5
            a = _dw_block(a, sel, dww, dwb, pww, pwb, m_out)       # stays in VMEM

        # AdaptiveAvgPool2d((1,1)) fused: mean over the m_last spatial positions.
        pooled = jnp.sum(a, axis=0, keepdims=True) * (1.0 / float(m_last))
        out_ref[...] = pooled.reshape(1, 1, -1).astype(out_ref.dtype)

    return kernel


# --------------------------------- wrapper -----------------------------------


def _out_size(s, stride):
    # kernel=3, padding=1
    return (s - 1) // stride + 1


def _extract_stem_patches(x, Ho, Wo):
    """im2col for the 3-channel stem only (tiny; stays in XLA)."""
    N = x.shape[0]
    xp = jnp.pad(x, ((0, 0), (1, 1), (1, 1), (0, 0)))
    taps = [xp[:, dy:dy + 2 * Ho:2, dx:dx + 2 * Wo:2, :]
            for dy in range(3) for dx in range(3)]
    patches = jnp.stack(taps, axis=3).reshape(N * Ho * Wo, 27)
    return jnp.pad(patches, ((0, 0), (0, 5)))                 # K: 27 -> 32 (aligned)


@functools.lru_cache(maxsize=None)
def _make_selector(hi, wi, stride):
    """[9*Ho*Wo, Hi*Wi] 0/1 matrix; row (3*dy+dx)*Ho*Wo + i*Wo + j picks input
    position (stride*i+dy-1, stride*j+dx-1); all-zero rows realize the padding."""
    ho, wo = _out_size(hi, stride), _out_size(wi, stride)
    m = ho * wo
    sel = np.zeros((9 * m, hi * wi), np.float32)
    for dy in range(3):
        for dx in range(3):
            t = 3 * dy + dx
            for i in range(ho):
                for j in range(wo):
                    r = stride * i + dy - 1
                    c = stride * j + dx - 1
                    if 0 <= r < hi and 0 <= c < wi:
                        sel[t * m + i * wo + j, r * wi + c] = 1.0
    return sel


def _const_spec(arr):
    nd = arr.ndim
    return pl.BlockSpec(arr.shape, lambda n, _nd=nd: (0,) * _nd)


_BLOCKS = (("dw1", 1), ("dw2", 2), ("dw4", 2), ("dw6", 2))


def onenet_forward(x_nchw, params):
    x = jnp.transpose(x_nchw, (0, 2, 3, 1)).astype(jnp.bfloat16)   # NCHW -> NHWC
    N, H, W, _ = x.shape

    Ho, Wo = _out_size(H, 2), _out_size(W, 2)
    m0 = Ho * Wo
    patches = _extract_stem_patches(x, Ho, Wo)                     # [N*m0, 32] bf16

    args = [patches, params["conv1_w"], params["conv1_bias"]]
    in_specs = [pl.BlockSpec((m0, patches.shape[1]), lambda n: (n, 0)),
                _const_spec(params["conv1_w"]),
                _const_spec(params["conv1_bias"])]

    h, w = Ho, Wo
    m_outs = []
    for name, stride in _BLOCKS:
        sel = jnp.asarray(_make_selector(h, w, stride), jnp.bfloat16)
        h, w = _out_size(h, stride), _out_size(w, stride)
        m_outs.append(h * w)
        for arr in (sel, params[f"{name}_dw_w"], params[f"{name}_dw_bias"],
                    params[f"{name}_pw_w"], params[f"{name}_pw_bias"]):
            args.append(arr)
            in_specs.append(_const_spec(arr))

    cout = params["dw6_pw_w"].shape[1]
    out = pl.pallas_call(
        make_onenet_kernel(tuple(m_outs)),
        out_shape=jax.ShapeDtypeStruct((N, 1, cout), jnp.float32),
        grid=(N,),
        in_specs=in_specs,
        out_specs=pl.BlockSpec((1, 1, cout), lambda n: (n, 0, 0)),
        compiler_params=pltpu.CompilerParams(dimension_semantics=("parallel",)),
    )(*args)
    return out.reshape(N, cout, 1, 1)                              # [N, 512, 1, 1] f32


# --------------------------- deterministic params ---------------------------


def init_params(key):
    keys = iter(jax.random.split(key, 64))

    def conv_w(shape):
        return 0.1 * jax.random.normal(next(keys), shape, jnp.float32)

    def bn_fold(c):
        gamma = 1.0 + 0.1 * jax.random.normal(next(keys), (c,), jnp.float32)
        beta = 0.1 * jax.random.normal(next(keys), (c,), jnp.float32)
        mean = 0.1 * jax.random.normal(next(keys), (c,), jnp.float32)
        var = 0.5 + 0.5 * jax.nn.sigmoid(jax.random.normal(next(keys), (c,), jnp.float32))
        scale = gamma / jnp.sqrt(var + 1e-5)
        bias = beta - mean * scale
        return scale, bias

    p = {}
    w = conv_w((27, 32))                                  # [kh*kw*Cin, Cout]
    s, b = bn_fold(32)
    p["conv1_w"] = jnp.pad(w * s[None, :], ((0, 5), (0, 0))).astype(jnp.bfloat16)
    p["conv1_bias"] = b.reshape(1, 32)

    for name, cin, cout in (("dw1", 32, 64), ("dw2", 64, 128),
                            ("dw4", 128, 256), ("dw6", 256, 512)):
        dw = conv_w((9, cin))                             # depthwise [kh*kw, C]
        s1, b1 = bn_fold(cin)
        p[f"{name}_dw_w"] = dw * s1[None, :]              # f32 (VPU math stays f32)
        p[f"{name}_dw_bias"] = b1.reshape(1, cin)
        pw = conv_w((cin, cout))                          # pointwise [Cin, Cout]
        s2, b2 = bn_fold(cout)
        p[f"{name}_pw_w"] = (pw * s2[None, :]).astype(jnp.bfloat16)
        p[f"{name}_pw_bias"] = b2.reshape(1, cout)
    return p


# ----------------------------- XLA reference --------------------------------


def _reference_forward(x_nchw, params):
    """Pure-JAX f32 reference using the same folded-BN parameters."""
    x = jnp.transpose(x_nchw, (0, 2, 3, 1)).astype(jnp.bfloat16).astype(jnp.float32)
    dn = ("NHWC", "HWIO", "NHWC")

    w = params["conv1_w"].astype(jnp.float32)[:27].reshape(3, 3, 3, 32)
    y = lax.conv_general_dilated(x, w, (2, 2), ((1, 1), (1, 1)), dimension_numbers=dn)
    y = jnp.maximum(y + params["conv1_bias"].reshape(1, 1, 1, -1), 0.0)

    for name in ("dw1", "dw2", "dw4", "dw6"):
        stride = 1 if name == "dw1" else 2
        c = y.shape[-1]
        dw = params[f"{name}_dw_w"].astype(jnp.float32).reshape(3, 3, 1, c)
        z = lax.conv_general_dilated(y, dw, (stride, stride), ((1, 1), (1, 1)),
                                     dimension_numbers=dn, feature_group_count=c)
        z = jnp.maximum(z + params[f"{name}_dw_bias"].reshape(1, 1, 1, -1), 0.0)
        z = jnp.einsum("nhwc,cd->nhwd", z, params[f"{name}_pw_w"].astype(jnp.float32))
        y = jnp.maximum(z + params[f"{name}_pw_bias"].reshape(1, 1, 1, -1), 0.0)

    pooled = jnp.mean(y, axis=(1, 2))
    return pooled.reshape(pooled.shape[0], -1, 1, 1)


if __name__ == "__main__":
    x = jax.random.normal(jax.random.PRNGKey(0), (2, 3, 32, 32), jnp.float32)
    params = init_params(jax.random.PRNGKey(1))

    fwd = jax.jit(onenet_forward)
    out = jax.block_until_ready(fwd(x, params))

    assert out.shape == (2, 512, 1, 1), out.shape
    assert bool(jnp.all(jnp.isfinite(out)))

    # Numerical check vs XLA reference (kernel uses bf16 storage / MXU operands).
    ref = _reference_forward(x, params)
    err = float(jnp.max(jnp.abs(out - ref)))
    scale = float(jnp.max(jnp.abs(ref)))
    assert err <= 0.02 + 0.08 * scale, (err, scale)

    print("KERNEL_OK")
</pallas_src>

<mosaic_0001>
module attributes {stable_mosaic.version = 11 : i64} {
  func.func @kernel(%arg0: i32, %arg1: memref<256x32xbf16, #tpu.memory_space<vmem>>, %arg2: memref<32x32xbf16, #tpu.memory_space<vmem>>, %arg3: memref<1x32xf32, #tpu.memory_space<vmem>>, %arg4: memref<2304x256xbf16, #tpu.memory_space<vmem>>, %arg5: memref<9x32xf32, #tpu.memory_space<vmem>>, %arg6: memref<1x32xf32, #tpu.memory_space<vmem>>, %arg7: memref<32x64xbf16, #tpu.memory_space<vmem>>, %arg8: memref<1x64xf32, #tpu.memory_space<vmem>>, %arg9: memref<576x256xbf16, #tpu.memory_space<vmem>>, %arg10: memref<9x64xf32, #tpu.memory_space<vmem>>, %arg11: memref<1x64xf32, #tpu.memory_space<vmem>>, %arg12: memref<64x128xbf16, #tpu.memory_space<vmem>>, %arg13: memref<1x128xf32, #tpu.memory_space<vmem>>, %arg14: memref<144x64xbf16, #tpu.memory_space<vmem>>, %arg15: memref<9x128xf32, #tpu.memory_space<vmem>>, %arg16: memref<1x128xf32, #tpu.memory_space<vmem>>, %arg17: memref<128x256xbf16, #tpu.memory_space<vmem>>, %arg18: memref<1x256xf32, #tpu.memory_space<vmem>>, %arg19: memref<36x16xbf16, #tpu.memory_space<vmem>>, %arg20: memref<9x256xf32, #tpu.memory_space<vmem>>, %arg21: memref<1x256xf32, #tpu.memory_space<vmem>>, %arg22: memref<256x512xbf16, #tpu.memory_space<vmem>>, %arg23: memref<1x512xf32, #tpu.memory_space<vmem>>, %arg24: memref<1x1x512xf32, #tpu.memory_space<vmem>>) attributes {dimension_semantics = [#tpu.dimension_semantics<parallel>], iteration_bounds = array<i64: 2>, scalar_prefetch = 0 : i64, scratch_operands = 0 : i64, tpu.core_type = #tpu.core_type<tc>, window_params = [{transform_indices = @transform_0, window_bounds = array<i64: 256, 32>}, {pipeline_mode = #tpu.pipeline_mode<synchronous>, transform_indices = @transform_1, window_bounds = array<i64: 32, 32>}, {pipeline_mode = #tpu.pipeline_mode<synchronous>, transform_indices = @transform_2, window_bounds = array<i64: 1, 32>}, {pipeline_mode = #tpu.pipeline_mode<synchronous>, transform_indices = @transform_3, window_bounds = array<i64: 2304, 256>}, {pipeline_mode = #tpu.pipeline_mode<synchronous>, transform_indices = @transform_4, window_bounds = array<i64: 9, 32>}, {pipeline_mode = #tpu.pipeline_mode<synchronous>, transform_indices = @transform_5, window_bounds = array<i64: 1, 32>}, {pipeline_mode = #tpu.pipeline_mode<synchronous>, transform_indices = @transform_6, window_bounds = array<i64: 32, 64>}, {pipeline_mode = #tpu.pipeline_mode<synchronous>, transform_indices = @transform_7, window_bounds = array<i64: 1, 64>}, {pipeline_mode = #tpu.pipeline_mode<synchronous>, transform_indices = @transform_8, window_bounds = array<i64: 576, 256>}, {pipeline_mode = #tpu.pipeline_mode<synchronous>, transform_indices = @transform_9, window_bounds = array<i64: 9, 64>}, {pipeline_mode = #tpu.pipeline_mode<synchronous>, transform_indices = @transform_10, window_bounds = array<i64: 1, 64>}, {pipeline_mode = #tpu.pipeline_mode<synchronous>, transform_indices = @transform_11, window_bounds = array<i64: 64, 128>}, {pipeline_mode = #tpu.pipeline_mode<synchronous>, transform_indices = @transform_12, window_bounds = array<i64: 1, 128>}, {pipeline_mode = #tpu.pipeline_mode<synchronous>, transform_indices = @transform_13, window_bounds = array<i64: 144, 64>}, {pipeline_mode = #tpu.pipeline_mode<synchronous>, transform_indices = @transform_14, window_bounds = array<i64: 9, 128>}, {pipeline_mode = #tpu.pipeline_mode<synchronous>, transform_indices = @transform_15, window_bounds = array<i64: 1, 128>}, {pipeline_mode = #tpu.pipeline_mode<synchronous>, transform_indices = @transform_16, window_bounds = array<i64: 128, 256>}, {pipeline_mode = #tpu.pipeline_mode<synchronous>, transform_indices = @transform_17, window_bounds = array<i64: 1, 256>}, {pipeline_mode = #tpu.pipeline_mode<synchronous>, transform_indices = @transform_18, window_bounds = array<i64: 36, 16>}, {pipeline_mode = #tpu.pipeline_mode<synchronous>, transform_indices = @transform_19, window_bounds = array<i64: 9, 256>}, {pipeline_mode = #tpu.pipeline_mode<synchronous>, transform_indices = @transform_20, window_bounds = array<i64: 1, 256>}, {pipeline_mode = #tpu.pipeline_mode<synchronous>, transform_indices = @transform_21, window_bounds = array<i64: 256, 512>}, {pipeline_mode = #tpu.pipeline_mode<synchronous>, transform_indices = @transform_22, window_bounds = array<i64: 1, 512>}, {transform_indices = @transform_23, window_bounds = array<i64: 1, 1, 512>}]} {
    %c0 = arith.constant 0 : index
    %c0_0 = arith.constant 0 : index
    %0 = vector.load %arg1[%c0, %c0_0] : memref<256x32xbf16, #tpu.memory_space<vmem>>, vector<256x32xbf16>
    %c0_1 = arith.constant 0 : index
    %c0_2 = arith.constant 0 : index
    %1 = vector.load %arg2[%c0_1, %c0_2] : memref<32x32xbf16, #tpu.memory_space<vmem>>, vector<32x32xbf16>
    %cst = arith.constant dense<0.000000e+00> : vector<256x32xf32>
    %2 = tpu.matmul %0, %1, %cst {dimension_numbers = #tpu.dot_dimension_numbers<[1], [0], [0], [1], [0, 0, 1, 1], [], []>} : vector<256x32xbf16>, vector<32x32xbf16>, vector<256x32xf32> -> vector<256x32xf32>
    %c0_3 = arith.constant 0 : index
    %c0_4 = arith.constant 0 : index
    %3 = vector.load %arg3[%c0_3, %c0_4] : memref<1x32xf32, #tpu.memory_space<vmem>>, vector<1x32xf32>
    %4 = vector.broadcast %3 : vector<1x32xf32> to vector<256x32xf32>
    %5 = arith.addf %2, %4 : vector<256x32xf32>
    %cst_5 = arith.constant 0.000000e+00 : f32
    %6 = vector.broadcast %cst_5 : f32 to vector<256x32xf32>
    %7 = arith.maximumf %5, %6 : vector<256x32xf32>
    %c0_6 = arith.constant 0 : index
    %c0_7 = arith.constant 0 : index
    %8 = vector.load %arg4[%c0_6, %c0_7] : memref<2304x256xbf16, #tpu.memory_space<vmem>>, vector<2304x256xbf16>
    %9 = arith.truncf %7 : vector<256x32xf32> to vector<256x32xbf16>
    %cst_8 = arith.constant dense<0.000000e+00> : vector<2304x32xf32>
    %10 = tpu.matmul %8, %9, %cst_8 {dimension_numbers = #tpu.dot_dimension_numbers<[1], [0], [0], [1], [0, 0, 1, 1], [], []>} : vector<2304x256xbf16>, vector<256x32xbf16>, vector<2304x32xf32> -> vector<2304x32xf32>
    %c0_9 = arith.constant 0 : index
    %c0_10 = arith.constant 0 : index
    %11 = vector.load %arg5[%c0_9, %c0_10] : memref<9x32xf32, #tpu.memory_space<vmem>>, vector<9x32xf32>
    %12 = vector.extract_strided_slice %10 {offsets = [0, 0], sizes = [256, 32], strides = [1, 1]} : vector<2304x32xf32> to vector<256x32xf32>
    %13 = vector.extract_strided_slice %11 {offsets = [0, 0], sizes = [1, 32], strides = [1, 1]} : vector<9x32xf32> to vector<1x32xf32>
    %14 = vector.broadcast %13 : vector<1x32xf32> to vector<256x32xf32>
    %15 = arith.mulf %12, %14 : vector<256x32xf32>
    %16 = vector.extract_strided_slice %10 {offsets = [256, 0], sizes = [256, 32], strides = [1, 1]} : vector<2304x32xf32> to vector<256x32xf32>
    %17 = vector.extract_strided_slice %11 {offsets = [1, 0], sizes = [1, 32], strides = [1, 1]} : vector<9x32xf32> to vector<1x32xf32>
    %18 = vector.broadcast %17 : vector<1x32xf32> to vector<256x32xf32>
    %19 = arith.mulf %16, %18 : vector<256x32xf32>
    %20 = vector.extract_strided_slice %10 {offsets = [512, 0], sizes = [256, 32], strides = [1, 1]} : vector<2304x32xf32> to vector<256x32xf32>
    %21 = vector.extract_strided_slice %11 {offsets = [2, 0], sizes = [1, 32], strides = [1, 1]} : vector<9x32xf32> to vector<1x32xf32>
    %22 = vector.broadcast %21 : vector<1x32xf32> to vector<256x32xf32>
    %23 = arith.mulf %20, %22 : vector<256x32xf32>
    %24 = arith.addf %15, %23 : vector<256x32xf32>
    %25 = vector.extract_strided_slice %10 {offsets = [768, 0], sizes = [256, 32], strides = [1, 1]} : vector<2304x32xf32> to vector<256x32xf32>
    %26 = vector.extract_strided_slice %11 {offsets = [3, 0], sizes = [1, 32], strides = [1, 1]} : vector<9x32xf32> to vector<1x32xf32>
    %27 = vector.broadcast %26 : vector<1x32xf32> to vector<256x32xf32>
    %28 = arith.mulf %25, %27 : vector<256x32xf32>
    %29 = arith.addf %19, %28 : vector<256x32xf32>
    %30 = vector.extract_strided_slice %10 {offsets = [1024, 0], sizes = [256, 32], strides = [1, 1]} : vector<2304x32xf32> to vector<256x32xf32>
    %31 = vector.extract_strided_slice %11 {offsets = [4, 0], sizes = [1, 32], strides = [1, 1]} : vector<9x32xf32> to vector<1x32xf32>
    %32 = vector.broadcast %31 : vector<1x32xf32> to vector<256x32xf32>
    %33 = arith.mulf %30, %32 : vector<256x32xf32>
    %34 = arith.addf %24, %33 : vector<256x32xf32>
    %35 = vector.extract_strided_slice %10 {offsets = [1280, 0], sizes = [256, 32], strides = [1, 1]} : vector<2304x32xf32> to vector<256x32xf32>
    %36 = vector.extract_strided_slice %11 {offsets = [5, 0], sizes = [1, 32], strides = [1, 1]} : vector<9x32xf32> to vector<1x32xf32>
    %37 = vector.broadcast %36 : vector<1x32xf32> to vector<256x32xf32>
    %38 = arith.mulf %35, %37 : vector<256x32xf32>
    %39 = arith.addf %29, %38 : vector<256x32xf32>
    %40 = vector.extract_strided_slice %10 {offsets = [1536, 0], sizes = [256, 32], strides = [1, 1]} : vector<2304x32xf32> to vector<256x32xf32>
    %41 = vector.extract_strided_slice %11 {offsets = [6, 0], sizes = [1, 32], strides = [1, 1]} : vector<9x32xf32> to vector<1x32xf32>
    %42 = vector.broadcast %41 : vector<1x32xf32> to vector<256x32xf32>
    %43 = arith.mulf %40, %42 : vector<256x32xf32>
    %44 = arith.addf %34, %43 : vector<256x32xf32>
    %45 = vector.extract_strided_slice %10 {offsets = [1792, 0], sizes = [256, 32], strides = [1, 1]} : vector<2304x32xf32> to vector<256x32xf32>
    %46 = vector.extract_strided_slice %11 {offsets = [7, 0], sizes = [1, 32], strides = [1, 1]} : vector<9x32xf32> to vector<1x32xf32>
    %47 = vector.broadcast %46 : vector<1x32xf32> to vector<256x32xf32>
    %48 = arith.mulf %45, %47 : vector<256x32xf32>
    %49 = arith.addf %39, %48 : vector<256x32xf32>
    %50 = vector.extract_strided_slice %10 {offsets = [2048, 0], sizes = [256, 32], strides = [1, 1]} : vector<2304x32xf32> to vector<256x32xf32>
    %51 = vector.extract_strided_slice %11 {offsets = [8, 0], sizes = [1, 32], strides = [1, 1]} : vector<9x32xf32> to vector<1x32xf32>
    %52 = vector.broadcast %51 : vector<1x32xf32> to vector<256x32xf32>
    %53 = arith.mulf %50, %52 : vector<256x32xf32>
    %54 = arith.addf %44, %53 : vector<256x32xf32>
    %55 = arith.addf %54, %49 : vector<256x32xf32>
    %c0_11 = arith.constant 0 : index
    %c0_12 = arith.constant 0 : index
    %56 = vector.load %arg6[%c0_11, %c0_12] : memref<1x32xf32, #tpu.memory_space<vmem>>, vector<1x32xf32>
    %57 = vector.broadcast %56 : vector<1x32xf32> to vector<256x32xf32>
    %58 = arith.addf %55, %57 : vector<256x32xf32>
    %cst_13 = arith.constant 0.000000e+00 : f32
    %59 = vector.broadcast %cst_13 : f32 to vector<256x32xf32>
    %60 = arith.maximumf %58, %59 : vector<256x32xf32>
    %61 = arith.truncf %60 : vector<256x32xf32> to vector<256x32xbf16>
    %c0_14 = arith.constant 0 : index
    %c0_15 = arith.constant 0 : index
    %62 = vector.load %arg7[%c0_14, %c0_15] : memref<32x64xbf16, #tpu.memory_space<vmem>>, vector<32x64xbf16>
    %cst_16 = arith.constant dense<0.000000e+00> : vector<256x64xf32>
    %63 = tpu.matmul %61, %62, %cst_16 {dimension_numbers = #tpu.dot_dimension_numbers<[1], [0], [0], [1], [0, 0, 1, 1], [], []>} : vector<256x32xbf16>, vector<32x64xbf16>, vector<256x64xf32> -> vector<256x64xf32>
    %c0_17 = arith.constant 0 : index
    %c0_18 = arith.constant 0 : index
    %64 = vector.load %arg8[%c0_17, %c0_18] : memref<1x64xf32, #tpu.memory_space<vmem>>, vector<1x64xf32>
    %65 = vector.broadcast %64 : vector<1x64xf32> to vector<256x64xf32>
    %66 = arith.addf %63, %65 : vector<256x64xf32>
    %cst_19 = arith.constant 0.000000e+00 : f32
    %67 = vector.broadcast %cst_19 : f32 to vector<256x64xf32>
    %68 = arith.maximumf %66, %67 : vector<256x64xf32>
    %c0_20 = arith.constant 0 : index
    %c0_21 = arith.constant 0 : index
    %69 = vector.load %arg9[%c0_20, %c0_21] : memref<576x256xbf16, #tpu.memory_space<vmem>>, vector<576x256xbf16>
    %70 = arith.truncf %68 : vector<256x64xf32> to vector<256x64xbf16>
    %cst_22 = arith.constant dense<0.000000e+00> : vector<576x64xf32>
    %71 = tpu.matmul %69, %70, %cst_22 {dimension_numbers = #tpu.dot_dimension_numbers<[1], [0], [0], [1], [0, 0, 1, 1], [], []>} : vector<576x256xbf16>, vector<256x64xbf16>, vector<576x64xf32> -> vector<576x64xf32>
    %c0_23 = arith.constant 0 : index
    %c0_24 = arith.constant 0 : index
    %72 = vector.load %arg10[%c0_23, %c0_24] : memref<9x64xf32, #tpu.memory_space<vmem>>, vector<9x64xf32>
    %73 = vector.extract_strided_slice %71 {offsets = [0, 0], sizes = [64, 64], strides = [1, 1]} : vector<576x64xf32> to vector<64x64xf32>
    %74 = vector.extract_strided_slice %72 {offsets = [0, 0], sizes = [1, 64], strides = [1, 1]} : vector<9x64xf32> to vector<1x64xf32>
    %75 = vector.broadcast %74 : vector<1x64xf32> to vector<64x64xf32>
    %76 = arith.mulf %73, %75 : vector<64x64xf32>
    %77 = vector.extract_strided_slice %71 {offsets = [64, 0], sizes = [64, 64], strides = [1, 1]} : vector<576x64xf32> to vector<64x64xf32>
    %78 = vector.extract_strided_slice %72 {offsets = [1, 0], sizes = [1, 64], strides = [1, 1]} : vector<9x64xf32> to vector<1x64xf32>
    %79 = vector.broadcast %78 : vector<1x64xf32> to vector<64x64xf32>
    %80 = arith.mulf %77, %79 : vector<64x64xf32>
    %81 = vector.extract_strided_slice %71 {offsets = [128, 0], sizes = [64, 64], strides = [1, 1]} : vector<576x64xf32> to vector<64x64xf32>
    %82 = vector.extract_strided_slice %72 {offsets = [2, 0], sizes = [1, 64], strides = [1, 1]} : vector<9x64xf32> to vector<1x64xf32>
    %83 = vector.broadcast %82 : vector<1x64xf32> to vector<64x64xf32>
    %84 = arith.mulf %81, %83 : vector<64x64xf32>
    %85 = arith.addf %76, %84 : vector<64x64xf32>
    %86 = vector.extract_strided_slice %71 {offsets = [192, 0], sizes = [64, 64], strides = [1, 1]} : vector<576x64xf32> to vector<64x64xf32>
    %87 = vector.extract_strided_slice %72 {offsets = [3, 0], sizes = [1, 64], strides = [1, 1]} : vector<9x64xf32> to vector<1x64xf32>
    %88 = vector.broadcast %87 : vector<1x64xf32> to vector<64x64xf32>
    %89 = arith.mulf %86, %88 : vector<64x64xf32>
    %90 = arith.addf %80, %89 : vector<64x64xf32>
    %91 = vector.extract_strided_slice %71 {offsets = [256, 0], sizes = [64, 64], strides = [1, 1]} : vector<576x64xf32> to vector<64x64xf32>
    %92 = vector.extract_strided_slice %72 {offsets = [4, 0], sizes = [1, 64], strides = [1, 1]} : vector<9x64xf32> to vector<1x64xf32>
    %93 = vector.broadcast %92 : vector<1x64xf32> to vector<64x64xf32>
    %94 = arith.mulf %91, %93 : vector<64x64xf32>
    %95 = arith.addf %85, %94 : vector<64x64xf32>
    %96 = vector.extract_strided_slice %71 {offsets = [320, 0], sizes = [64, 64], strides = [1, 1]} : vector<576x64xf32> to vector<64x64xf32>
    %97 = vector.extract_strided_slice %72 {offsets = [5, 0], sizes = [1, 64], strides = [1, 1]} : vector<9x64xf32> to vector<1x64xf32>
    %98 = vector.broadcast %97 : vector<1x64xf32> to vector<64x64xf32>
    %99 = arith.mulf %96, %98 : vector<64x64xf32>
    %100 = arith.addf %90, %99 : vector<64x64xf32>
    %101 = vector.extract_strided_slice %71 {offsets = [384, 0], sizes = [64, 64], strides = [1, 1]} : vector<576x64xf32> to vector<64x64xf32>
    %102 = vector.extract_strided_slice %72 {offsets = [6, 0], sizes = [1, 64], strides = [1, 1]} : vector<9x64xf32> to vector<1x64xf32>
    %103 = vector.broadcast %102 : vector<1x64xf32> to vector<64x64xf32>
    %104 = arith.mulf %101, %103 : vector<64x64xf32>
    %105 = arith.addf %95, %104 : vector<64x64xf32>
    %106 = vector.extract_strided_slice %71 {offsets = [448, 0], sizes = [64, 64], strides = [1, 1]} : vector<576x64xf32> to vector<64x64xf32>
    %107 = vector.extract_strided_slice %72 {offsets = [7, 0], sizes = [1, 64], strides = [1, 1]} : vector<9x64xf32> to vector<1x64xf32>
    %108 = vector.broadcast %107 : vector<1x64xf32> to vector<64x64xf32>
    %109 = arith.mulf %106, %108 : vector<64x64xf32>
    %110 = arith.addf %100, %109 : vector<64x64xf32>
    %111 = vector.extract_strided_slice %71 {offsets = [512, 0], sizes = [64, 64], strides = [1, 1]} : vector<576x64xf32> to vector<64x64xf32>
    %112 = vector.extract_strided_slice %72 {offsets = [8, 0], sizes = [1, 64], strides = [1, 1]} : vector<9x64xf32> to vector<1x64xf32>
    %113 = vector.broadcast %112 : vector<1x64xf32> to vector<64x64xf32>
    %114 = arith.mulf %111, %113 : vector<64x64xf32>
    %115 = arith.addf %105, %114 : vector<64x64xf32>
    %116 = arith.addf %115, %110 : vector<64x64xf32>
    %c0_25 = arith.constant 0 : index
    %c0_26 = arith.constant 0 : index
    %117 = vector.load %arg11[%c0_25, %c0_26] : memref<1x64xf32, #tpu.memory_space<vmem>>, vector<1x64xf32>
    %118 = vector.broadcast %117 : vector<1x64xf32> to vector<64x64xf32>
    %119 = arith.addf %116, %118 : vector<64x64xf32>
    %cst_27 = arith.constant 0.000000e+00 : f32
    %120 = vector.broadcast %cst_27 : f32 to vector<64x64xf32>
    %121 = arith.maximumf %119, %120 : vector<64x64xf32>
    %122 = arith.truncf %121 : vector<64x64xf32> to vector<64x64xbf16>
    %c0_28 = arith.constant 0 : index
    %c0_29 = arith.constant 0 : index
    %123 = vector.load %arg12[%c0_28, %c0_29] : memref<64x128xbf16, #tpu.memory_space<vmem>>, vector<64x128xbf16>
    %cst_30 = arith.constant dense<0.000000e+00> : vector<64x128xf32>
    %124 = tpu.matmul %122, %123, %cst_30 {dimension_numbers = #tpu.dot_dimension_numbers<[1], [0], [0], [1], [0, 0, 1, 1], [], []>} : vector<64x64xbf16>, vector<64x128xbf16>, vector<64x128xf32> -> vector<64x128xf32>
    %c0_31 = arith.constant 0 : index
    %c0_32 = arith.constant 0 : index
    %125 = vector.load %arg13[%c0_31, %c0_32] : memref<1x128xf32, #tpu.memory_space<vmem>>, vector<1x128xf32>
    %126 = vector.broadcast %125 : vector<1x128xf32> to vector<64x128xf32>
    %127 = arith.addf %124, %126 : vector<64x128xf32>
    %cst_33 = arith.constant 0.000000e+00 : f32
    %128 = vector.broadcast %cst_33 : f32 to vector<64x128xf32>
    %129 = arith.maximumf %127, %128 : vector<64x128xf32>
    %c0_34 = arith.constant 0 : index
    %c0_35 = arith.constant 0 : index
    %130 = vector.load %arg14[%c0_34, %c0_35] : memref<144x64xbf16, #tpu.memory_space<vmem>>, vector<144x64xbf16>
    %131 = arith.truncf %129 : vector<64x128xf32> to vector<64x128xbf16>
    %cst_36 = arith.constant dense<0.000000e+00> : vector<144x128xf32>
    %132 = tpu.matmul %130, %131, %cst_36 {dimension_numbers = #tpu.dot_dimension_numbers<[1], [0], [0], [1], [0, 0, 1, 1], [], []>} : vector<144x64xbf16>, vector<64x128xbf16>, vector<144x128xf32> -> vector<144x128xf32>
    %c0_37 = arith.constant 0 : index
    %c0_38 = arith.constant 0 : index
    %133 = vector.load %arg15[%c0_37, %c0_38] : memref<9x128xf32, #tpu.memory_space<vmem>>, vector<9x128xf32>
    %134 = vector.extract_strided_slice %132 {offsets = [0, 0], sizes = [16, 128], strides = [1, 1]} : vector<144x128xf32> to vector<16x128xf32>
    %135 = vector.extract_strided_slice %133 {offsets = [0, 0], sizes = [1, 128], strides = [1, 1]} : vector<9x128xf32> to vector<1x128xf32>
    %136 = vector.broadcast %135 : vector<1x128xf32> to vector<16x128xf32>
    %137 = arith.mulf %134, %136 : vector<16x128xf32>
    %138 = vector.extract_strided_slice %132 {offsets = [16, 0], sizes = [16, 128], strides = [1, 1]} : vector<144x128xf32> to vector<16x128xf32>
    %139 = vector.extract_strided_slice %133 {offsets = [1, 0], sizes = [1, 128], strides = [1, 1]} : vector<9x128xf32> to vector<1x128xf32>
    %140 = vector.broadcast %139 : vector<1x128xf32> to vector<16x128xf32>
    %141 = arith.mulf %138, %140 : vector<16x128xf32>
    %142 = vector.extract_strided_slice %132 {offsets = [32, 0], sizes = [16, 128], strides = [1, 1]} : vector<144x128xf32> to vector<16x128xf32>
    %143 = vector.extract_strided_slice %133 {offsets = [2, 0], sizes = [1, 128], strides = [1, 1]} : vector<9x128xf32> to vector<1x128xf32>
    %144 = vector.broadcast %143 : vector<1x128xf32> to vector<16x128xf32>
    %145 = arith.mulf %142, %144 : vector<16x128xf32>
    %146 = arith.addf %137, %145 : vector<16x128xf32>
    %147 = vector.extract_strided_slice %132 {offsets = [48, 0], sizes = [16, 128], strides = [1, 1]} : vector<144x128xf32> to vector<16x128xf32>
    %148 = vector.extract_strided_slice %133 {offsets = [3, 0], sizes = [1, 128], strides = [1, 1]} : vector<9x128xf32> to vector<1x128xf32>
    %149 = vector.broadcast %148 : vector<1x128xf32> to vector<16x128xf32>
    %150 = arith.mulf %147, %149 : vector<16x128xf32>
    %151 = arith.addf %141, %150 : vector<16x128xf32>
    %152 = vector.extract_strided_slice %132 {offsets = [64, 0], sizes = [16, 128], strides = [1, 1]} : vector<144x128xf32> to vector<16x128xf32>
    %153 = vector.extract_strided_slice %133 {offsets = [4, 0], sizes = [1, 128], strides = [1, 1]} : vector<9x128xf32> to vector<1x128xf32>
    %154 = vector.broadcast %153 : vector<1x128xf32> to vector<16x128xf32>
    %155 = arith.mulf %152, %154 : vector<16x128xf32>
    %156 = arith.addf %146, %155 : vector<16x128xf32>
    %157 = vector.extract_strided_slice %132 {offsets = [80, 0], sizes = [16, 128], strides = [1, 1]} : vector<144x128xf32> to vector<16x128xf32>
    %158 = vector.extract_strided_slice %133 {offsets = [5, 0], sizes = [1, 128], strides = [1, 1]} : vector<9x128xf32> to vector<1x128xf32>
    %159 = vector.broadcast %158 : vector<1x128xf32> to vector<16x128xf32>
    %160 = arith.mulf %157, %159 : vector<16x128xf32>
    %161 = arith.addf %151, %160 : vector<16x128xf32>
    %162 = vector.extract_strided_slice %132 {offsets = [96, 0], sizes = [16, 128], strides = [1, 1]} : vector<144x128xf32> to vector<16x128xf32>
    %163 = vector.extract_strided_slice %133 {offsets = [6, 0], sizes = [1, 128], strides = [1, 1]} : vector<9x128xf32> to vector<1x128xf32>
    %164 = vector.broadcast %163 : vector<1x128xf32> to vector<16x128xf32>
    %165 = arith.mulf %162, %164 : vector<16x128xf32>
    %166 = arith.addf %156, %165 : vector<16x128xf32>
    %167 = vector.extract_strided_slice %132 {offsets = [112, 0], sizes = [16, 128], strides = [1, 1]} : vector<144x128xf32> to vector<16x128xf32>
    %168 = vector.extract_strided_slice %133 {offsets = [7, 0], sizes = [1, 128], strides = [1, 1]} : vector<9x128xf32> to vector<1x128xf32>
    %169 = vector.broadcast %168 : vector<1x128xf32> to vector<16x128xf32>
    %170 = arith.mulf %167, %169 : vector<16x128xf32>
    %171 = arith.addf %161, %170 : vector<16x128xf32>
    %172 = vector.extract_strided_slice %132 {offsets = [128, 0], sizes = [16, 128], strides = [1, 1]} : vector<144x128xf32> to vector<16x128xf32>
    %173 = vector.extract_strided_slice %133 {offsets = [8, 0], sizes = [1, 128], strides = [1, 1]} : vector<9x128xf32> to vector<1x128xf32>
    %174 = vector.broadcast %173 : vector<1x128xf32> to vector<16x128xf32>
    %175 = arith.mulf %172, %174 : vector<16x128xf32>
    %176 = arith.addf %166, %175 : vector<16x128xf32>
    %177 = arith.addf %176, %171 : vector<16x128xf32>
    %c0_39 = arith.constant 0 : index
    %c0_40 = arith.constant 0 : index
    %178 = vector.load %arg16[%c0_39, %c0_40] : memref<1x128xf32, #tpu.memory_space<vmem>>, vector<1x128xf32>
    %179 = vector.broadcast %178 : vector<1x128xf32> to vector<16x128xf32>
    %180 = arith.addf %177, %179 : vector<16x128xf32>
    %cst_41 = arith.constant 0.000000e+00 : f32
    %181 = vector.broadcast %cst_41 : f32 to vector<16x128xf32>
    %182 = arith.maximumf %180, %181 : vector<16x128xf32>
    %183 = arith.truncf %182 : vector<16x128xf32> to vector<16x128xbf16>
    %c0_42 = arith.constant 0 : index
    %c0_43 = arith.constant 0 : index
    %184 = vector.load %arg17[%c0_42, %c0_43] : memref<128x256xbf16, #tpu.memory_space<vmem>>, vector<128x256xbf16>
    %cst_44 = arith.constant dense<0.000000e+00> : vector<16x256xf32>
    %185 = tpu.matmul %183, %184, %cst_44 {dimension_numbers = #tpu.dot_dimension_numbers<[1], [0], [0], [1], [0, 0, 1, 1], [], []>} : vector<16x128xbf16>, vector<128x256xbf16>, vector<16x256xf32> -> vector<16x256xf32>
    %c0_45 = arith.constant 0 : index
    %c0_46 = arith.constant 0 : index
    %186 = vector.load %arg18[%c0_45, %c0_46] : memref<1x256xf32, #tpu.memory_space<vmem>>, vector<1x256xf32>
    %187 = vector.broadcast %186 : vector<1x256xf32> to vector<16x256xf32>
    %188 = arith.addf %185, %187 : vector<16x256xf32>
    %cst_47 = arith.constant 0.000000e+00 : f32
    %189 = vector.broadcast %cst_47 : f32 to vector<16x256xf32>
    %190 = arith.maximumf %188, %189 : vector<16x256xf32>
    %c0_48 = arith.constant 0 : index
    %c0_49 = arith.constant 0 : index
    %191 = vector.load %arg19[%c0_48, %c0_49] : memref<36x16xbf16, #tpu.memory_space<vmem>>, vector<36x16xbf16>
    %192 = arith.truncf %190 : vector<16x256xf32> to vector<16x256xbf16>
    %cst_50 = arith.constant dense<0.000000e+00> : vector<36x256xf32>
    %193 = tpu.matmul %191, %192, %cst_50 {dimension_numbers = #tpu.dot_dimension_numbers<[1], [0], [0], [1], [0, 0, 1, 1], [], []>} : vector<36x16xbf16>, vector<16x256xbf16>, vector<36x256xf32> -> vector<36x256xf32>
    %c0_51 = arith.constant 0 : index
    %c0_52 = arith.constant 0 : index
    %194 = vector.load %arg20[%c0_51, %c0_52] : memref<9x256xf32, #tpu.memory_space<vmem>>, vector<9x256xf32>
    %195 = vector.extract_strided_slice %193 {offsets = [0, 0], sizes = [4, 256], strides = [1, 1]} : vector<36x256xf32> to vector<4x256xf32>
    %196 = vector.extract_strided_slice %194 {offsets = [0, 0], sizes = [1, 256], strides = [1, 1]} : vector<9x256xf32> to vector<1x256xf32>
    %197 = vector.broadcast %196 : vector<1x256xf32> to vector<4x256xf32>
    %198 = arith.mulf %195, %197 : vector<4x256xf32>
    %199 = vector.extract_strided_slice %193 {offsets = [4, 0], sizes = [4, 256], strides = [1, 1]} : vector<36x256xf32> to vector<4x256xf32>
    %200 = vector.extract_strided_slice %194 {offsets = [1, 0], sizes = [1, 256], strides = [1, 1]} : vector<9x256xf32> to vector<1x256xf32>
    %201 = vector.broadcast %200 : vector<1x256xf32> to vector<4x256xf32>
    %202 = arith.mulf %199, %201 : vector<4x256xf32>
    %203 = vector.extract_strided_slice %193 {offsets = [8, 0], sizes = [4, 256], strides = [1, 1]} : vector<36x256xf32> to vector<4x256xf32>
    %204 = vector.extract_strided_slice %194 {offsets = [2, 0], sizes = [1, 256], strides = [1, 1]} : vector<9x256xf32> to vector<1x256xf32>
    %205 = vector.broadcast %204 : vector<1x256xf32> to vector<4x256xf32>
    %206 = arith.mulf %203, %205 : vector<4x256xf32>
    %207 = arith.addf %198, %206 : vector<4x256xf32>
    %208 = vector.extract_strided_slice %193 {offsets = [12, 0], sizes = [4, 256], strides = [1, 1]} : vector<36x256xf32> to vector<4x256xf32>
    %209 = vector.extract_strided_slice %194 {offsets = [3, 0], sizes = [1, 256], strides = [1, 1]} : vector<9x256xf32> to vector<1x256xf32>
    %210 = vector.broadcast %209 : vector<1x256xf32> to vector<4x256xf32>
    %211 = arith.mulf %208, %210 : vector<4x256xf32>
    %212 = arith.addf %202, %211 : vector<4x256xf32>
    %213 = vector.extract_strided_slice %193 {offsets = [16, 0], sizes = [4, 256], strides = [1, 1]} : vector<36x256xf32> to vector<4x256xf32>
    %214 = vector.extract_strided_slice %194 {offsets = [4, 0], sizes = [1, 256], strides = [1, 1]} : vector<9x256xf32> to vector<1x256xf32>
    %215 = vector.broadcast %214 : vector<1x256xf32> to vector<4x256xf32>
    %216 = arith.mulf %213, %215 : vector<4x256xf32>
    %217 = arith.addf %207, %216 : vector<4x256xf32>
    %218 = vector.extract_strided_slice %193 {offsets = [20, 0], sizes = [4, 256], strides = [1, 1]} : vector<36x256xf32> to vector<4x256xf32>
    %219 = vector.extract_strided_slice %194 {offsets = [5, 0], sizes = [1, 256], strides = [1, 1]} : vector<9x256xf32> to vector<1x256xf32>
    %220 = vector.broadcast %219 : vector<1x256xf32> to vector<4x256xf32>
    %221 = arith.mulf %218, %220 : vector<4x256xf32>
    %222 = arith.addf %212, %221 : vector<4x256xf32>
    %223 = vector.extract_strided_slice %193 {offsets = [24, 0], sizes = [4, 256], strides = [1, 1]} : vector<36x256xf32> to vector<4x256xf32>
    %224 = vector.extract_strided_slice %194 {offsets = [6, 0], sizes = [1, 256], strides = [1, 1]} : vector<9x256xf32> to vector<1x256xf32>
    %225 = vector.broadcast %224 : vector<1x256xf32> to vector<4x256xf32>
    %226 = arith.mulf %223, %225 : vector<4x256xf32>
    %227 = arith.addf %217, %226 : vector<4x256xf32>
    %228 = vector.extract_strided_slice %193 {offsets = [28, 0], sizes = [4, 256], strides = [1, 1]} : vector<36x256xf32> to vector<4x256xf32>
    %229 = vector.extract_strided_slice %194 {offsets = [7, 0], sizes = [1, 256], strides = [1, 1]} : vector<9x256xf32> to vector<1x256xf32>
    %230 = vector.broadcast %229 : vector<1x256xf32> to vector<4x256xf32>
    %231 = arith.mulf %228, %230 : vector<4x256xf32>
    %232 = arith.addf %222, %231 : vector<4x256xf32>
    %233 = vector.extract_strided_slice %193 {offsets = [32, 0], sizes = [4, 256], strides = [1, 1]} : vector<36x256xf32> to vector<4x256xf32>
    %234 = vector.extract_strided_slice %194 {offsets = [8, 0], sizes = [1, 256], strides = [1, 1]} : vector<9x256xf32> to vector<1x256xf32>
    %235 = vector.broadcast %234 : vector<1x256xf32> to vector<4x256xf32>
    %236 = arith.mulf %233, %235 : vector<4x256xf32>
    %237 = arith.addf %227, %236 : vector<4x256xf32>
    %238 = arith.addf %237, %232 : vector<4x256xf32>
    %c0_53 = arith.constant 0 : index
    %c0_54 = arith.constant 0 : index
    %239 = vector.load %arg21[%c0_53, %c0_54] : memref<1x256xf32, #tpu.memory_space<vmem>>, vector<1x256xf32>
    %240 = vector.broadcast %239 : vector<1x256xf32> to vector<4x256xf32>
    %241 = arith.addf %238, %240 : vector<4x256xf32>
    %cst_55 = arith.constant 0.000000e+00 : f32
    %242 = vector.broadcast %cst_55 : f32 to vector<4x256xf32>
    %243 = arith.maximumf %241, %242 : vector<4x256xf32>
    %244 = arith.truncf %243 : vector<4x256xf32> to vector<4x256xbf16>
    %c0_56 = arith.constant 0 : index
    %c0_57 = arith.constant 0 : index
    %245 = vector.load %arg22[%c0_56, %c0_57] : memref<256x512xbf16, #tpu.memory_space<vmem>>, vector<256x512xbf16>
    %cst_58 = arith.constant dense<0.000000e+00> : vector<4x512xf32>
    %246 = tpu.matmul %244, %245, %cst_58 {dimension_numbers = #tpu.dot_dimension_numbers<[1], [0], [0], [1], [0, 0, 1, 1], [], []>} : vector<4x256xbf16>, vector<256x512xbf16>, vector<4x512xf32> -> vector<4x512xf32>
    %c0_59 = arith.constant 0 : index
    %c0_60 = arith.constant 0 : index
    %247 = vector.load %arg23[%c0_59, %c0_60] : memref<1x512xf32, #tpu.memory_space<vmem>>, vector<1x512xf32>
    %248 = vector.broadcast %247 : vector<1x512xf32> to vector<4x512xf32>
    %249 = arith.addf %246, %248 : vector<4x512xf32>
    %cst_61 = arith.constant 0.000000e+00 : f32
    %250 = vector.broadcast %cst_61 : f32 to vector<4x512xf32>
    %251 = arith.maximumf %249, %250 : vector<4x512xf32>
    %cst_62 = arith.constant dense<0.000000e+00> : vector<512xf32>
    %252 = vector.multi_reduction <add>, %251, %cst_62 [0] : vector<4x512xf32> to vector<512xf32>
    %253 = vector.shape_cast %252 : vector<512xf32> to vector<1x512xf32>
    %cst_63 = arith.constant 2.500000e-01 : f32
    %254 = vector.broadcast %cst_63 : f32 to vector<1x512xf32>
    %255 = arith.mulf %253, %254 : vector<1x512xf32>
    %256 = vector.shape_cast %255 : vector<1x512xf32> to vector<1x1x512xf32>
    %c0_64 = arith.constant 0 : index
    %c0_65 = arith.constant 0 : index
    %c0_66 = arith.constant 0 : index
    %257 = vector.load %arg24[%c0_64, %c0_65, %c0_66] : memref<1x1x512xf32, #tpu.memory_space<vmem>>, vector<1x1x512xf32>
    tpu.vector_store %arg24[%c0_64, %c0_65, %c0_66], %256 {strides = array<i32>} : memref<1x1x512xf32, #tpu.memory_space<vmem>>, vector<1x1x512xf32>,
    return
  }
  func.func @transform_0(%arg0: i32) -> (i32, i32) {
    %c0_i32 = arith.constant 0 : i32
    %c0_i32_0 = arith.constant 0 : i32
    return %arg0, %c0_i32 : i32, i32
  }
  func.func @transform_1(%arg0: i32) -> (i32, i32) {
    %c0_i32 = arith.constant 0 : i32
    %c0_i32_0 = arith.constant 0 : i32
    %c0_i32_1 = arith.constant 0 : i32
    return %c0_i32, %c0_i32_0 : i32, i32
  }
  func.func @transform_2(%arg0: i32) -> (i32, i32) {
    %c0_i32 = arith.constant 0 : i32
    %c0_i32_0 = arith.constant 0 : i32
    %c0_i32_1 = arith.constant 0 : i32
    return %c0_i32, %c0_i32_0 : i32, i32
  }
  func.func @transform_3(%arg0: i32) -> (i32, i32) {
    %c0_i32 = arith.constant 0 : i32
    %c0_i32_0 = arith.constant 0 : i32
    %c0_i32_1 = arith.constant 0 : i32
    return %c0_i32, %c0_i32_0 : i32, i32
  }
  func.func @transform_4(%arg0: i32) -> (i32, i32) {
    %c0_i32 = arith.constant 0 : i32
    %c0_i32_0 = arith.constant 0 : i32
    %c0_i32_1 = arith.constant 0 : i32
    return %c0_i32, %c0_i32_0 : i32, i32
  }
  func.func @transform_5(%arg0: i32) -> (i32, i32) {
    %c0_i32 = arith.constant 0 : i32
    %c0_i32_0 = arith.constant 0 : i32
    %c0_i32_1 = arith.constant 0 : i32
    return %c0_i32, %c0_i32_0 : i32, i32
  }
  func.func @transform_6(%arg0: i32) -> (i32, i32) {
    %c0_i32 = arith.constant 0 : i32
    %c0_i32_0 = arith.constant 0 : i32
    %c0_i32_1 = arith.constant 0 : i32
    return %c0_i32, %c0_i32_0 : i32, i32
  }
  func.func @transform_7(%arg0: i32) -> (i32, i32) {
    %c0_i32 = arith.constant 0 : i32
    %c0_i32_0 = arith.constant 0 : i32
    %c0_i32_1 = arith.constant 0 : i32
    return %c0_i32, %c0_i32_0 : i32, i32
  }
  func.func @transform_8(%arg0: i32) -> (i32, i32) {
    %c0_i32 = arith.constant 0 : i32
    %c0_i32_0 = arith.constant 0 : i32
    %c0_i32_1 = arith.constant 0 : i32
    return %c0_i32, %c0_i32_0 : i32, i32
  }
  func.func @transform_9(%arg0: i32) -> (i32, i32) {
    %c0_i32 = arith.constant 0 : i32
    %c0_i32_0 = arith.constant 0 : i32
    %c0_i32_1 = arith.constant 0 : i32
    return %c0_i32, %c0_i32_0 : i32, i32
  }
  func.func @transform_10(%arg0: i32) -> (i32, i32) {
    %c0_i32 = arith.constant 0 : i32
    %c0_i32_0 = arith.constant 0 : i32
    %c0_i32_1 = arith.constant 0 : i32
    return %c0_i32, %c0_i32_0 : i32, i32
  }
  func.func @transform_11(%arg0: i32) -> (i32, i32) {
    %c0_i32 = arith.constant 0 : i32
    %c0_i32_0 = arith.constant 0 : i32
    %c0_i32_1 = arith.constant 0 : i32
    return %c0_i32, %c0_i32_0 : i32, i32
  }
  func.func @transform_12(%arg0: i32) -> (i32, i32) {
    %c0_i32 = arith.constant 0 : i32
    %c0_i32_0 = arith.constant 0 : i32
    %c0_i32_1 = arith.constant 0 : i32
    return %c0_i32, %c0_i32_0 : i32, i32
  }
  func.func @transform_13(%arg0: i32) -> (i32, i32) {
    %c0_i32 = arith.constant 0 : i32
    %c0_i32_0 = arith.constant 0 : i32
    %c0_i32_1 = arith.constant 0 : i32
    return %c0_i32, %c0_i32_0 : i32, i32
  }
  func.func @transform_14(%arg0: i32) -> (i32, i32) {
    %c0_i32 = arith.constant 0 : i32
    %c0_i32_0 = arith.constant 0 : i32
    %c0_i32_1 = arith.constant 0 : i32
    return %c0_i32, %c0_i32_0 : i32, i32
  }
  func.func @transform_15(%arg0: i32) -> (i32, i32) {
    %c0_i32 = arith.constant 0 : i32
    %c0_i32_0 = arith.constant 0 : i32
    %c0_i32_1 = arith.constant 0 : i32
    return %c0_i32, %c0_i32_0 : i32, i32
  }
  func.func @transform_16(%arg0: i32) -> (i32, i32) {
    %c0_i32 = arith.constant 0 : i32
    %c0_i32_0 = arith.constant 0 : i32
    %c0_i32_1 = arith.constant 0 : i32
    return %c0_i32, %c0_i32_0 : i32, i32
  }
  func.func @transform_17(%arg0: i32) -> (i32, i32) {
    %c0_i32 = arith.constant 0 : i32
    %c0_i32_0 = arith.constant 0 : i32
    %c0_i32_1 = arith.constant 0 : i32
    return %c0_i32, %c0_i32_0 : i32, i32
  }
  func.func @transform_18(%arg0: i32) -> (i32, i32) {
    %c0_i32 = arith.constant 0 : i32
    %c0_i32_0 = arith.constant 0 : i32
    %c0_i32_1 = arith.constant 0 : i32
    return %c0_i32, %c0_i32_0 : i32, i32
  }
  func.func @transform_19(%arg0: i32) -> (i32, i32) {
    %c0_i32 = arith.constant 0 : i32
    %c0_i32_0 = arith.constant 0 : i32
    %c0_i32_1 = arith.constant 0 : i32
    return %c0_i32, %c0_i32_0 : i32, i32
  }
  func.func @transform_20(%arg0: i32) -> (i32, i32) {
    %c0_i32 = arith.constant 0 : i32
    %c0_i32_0 = arith.constant 0 : i32
    %c0_i32_1 = arith.constant 0 : i32
    return %c0_i32, %c0_i32_0 : i32, i32
  }
  func.func @transform_21(%arg0: i32) -> (i32, i32) {
    %c0_i32 = arith.constant 0 : i32
    %c0_i32_0 = arith.constant 0 : i32
    %c0_i32_1 = arith.constant 0 : i32
    return %c0_i32, %c0_i32_0 : i32, i32
  }
  func.func @transform_22(%arg0: i32) -> (i32, i32) {
    %c0_i32 = arith.constant 0 : i32
    %c0_i32_0 = arith.constant 0 : i32
    %c0_i32_1 = arith.constant 0 : i32
    return %c0_i32, %c0_i32_0 : i32, i32
  }
  func.func @transform_23(%arg0: i32) -> (i32, i32, i32) {
    %c0_i32 = arith.constant 0 : i32
    %c0_i32_0 = arith.constant 0 : i32
    %c0_i32_1 = arith.constant 0 : i32
    return %arg0, %c0_i32, %c0_i32_0 : i32, i32, i32
  }
}

</mosaic_0001>

<bundles_post_ra>
// kernel: onenet_forward.1
= control target key start
LH: loop header
LB: loop body
LE: loop exit
PB: predicated region body
PF: predicated region fallthrough
CT: control target
= control target key end

     0   :  { %s12102_s0 = inlined_call_operand.vmem [shape: bf16[512,32], index: 0, kind: input, shape index: {}]   ;;  %s12103_s1 = inlined_call_operand.vmem [shape: bf16[32,32], index: 1, kind: input, shape index: {}]   ;;  %s12104_s2 = inlined_call_operand.vmem [shape: f32[1,32], index: 2, kind: input, shape index: {}]   ;;  %s12105_s3 = inlined_call_operand.vmem [shape: bf16[2304,256], index: 3, kind: input, shape index: {}]   ;;  %s12106_s4 = inlined_call_operand.vmem [shape: f32[9,32], index: 4, kind: input, shape index: {}]   ;;  %s12107_s5 = inlined_call_operand.vmem [shape: f32[1,32], index: 5, kind: input, shape index: {}]   ;;  %s12108_s6 = inlined_call_operand.vmem [shape: bf16[32,64], index: 6, kind: input, shape index: {}]   ;;  %s12109_s7 = inlined_call_operand.vmem [shape: f32[1,64], index: 7, kind: input, shape index: {}]   ;;  %s12110_s8 = inlined_call_operand.vmem [shape: bf16[576,256], index: 8, kind: input, shape index: {}]   ;;  %s12111_s9 = inlined_call_operand.vmem [shape: f32[9,64], index: 9, kind: input, shape index: {}]   ;;  %s12112_s10 = inlined_call_operand.vmem [shape: f32[1,64], index: 10, kind: input, shape index: {}]   ;;  %s12113_s11 = inlined_call_operand.vmem [shape: bf16[64,128], index: 11, kind: input, shape index: {}]   ;;  %s12114_s12 = inlined_call_operand.vmem [shape: f32[1,128], index: 12, kind: input, shape index: {}]   ;;  %s12115_s13 = inlined_call_operand.vmem [shape: bf16[144,64], index: 13, kind: input, shape index: {}]   ;;  %s12116_s14 = inlined_call_operand.vmem [shape: f32[9,128], index: 14, kind: input, shape index: {}]   ;;  %s12117_s15 = inlined_call_operand.vmem [shape: f32[1,128], index: 15, kind: input, shape index: {}]   ;;  %s12118_s16 = inlined_call_operand.vmem [shape: bf16[128,256], index: 16, kind: input, shape index: {}]   ;;  %s12119_s17 = inlined_call_operand.vmem [shape: f32[1,256], index: 17, kind: input, shape index: {}]   ;;  %s12120_s18 = inlined_call_operand.vmem [shape: bf16[36,16], index: 18, kind: input, shape index: {}]   ;;  %s12121_s19 = inlined_call_operand.vmem [shape: f32[9,256], index: 19, kind: input, shape index: {}]   ;;  %s12122_s20 = inlined_call_operand.vmem [shape: f32[1,256], index: 20, kind: input, shape index: {}]   ;;  %s12123_s21 = inlined_call_operand.vmem [shape: bf16[256,512], index: 21, kind: input, shape index: {}]   ;;  %s12124_s22 = inlined_call_operand.vmem [shape: f32[1,512], index: 22, kind: input, shape index: {}]   ;;  %s12125_s23 = inlined_call_operand.hbm [shape: f32[2,1,512], index: 23, kind: output, shape index: {}]  }
   0x1   :  { %12158 = sst [smem:[#allocation44_spill]] %s12102_s0 }
   0x2   :  { %12159 = sst [smem:[#allocation45_spill]] %s12103_s1 }
   0x3   :  { %12160 = sst [smem:[#allocation46_spill]] %s12104_s2 }
   0x4   :  { %12161 = sst [smem:[#allocation47_spill]] %s12105_s3 }
   0x5   :  { %12162 = sst [smem:[#allocation48_spill]] %s12106_s4 }
   0x6   :  { %12163 = sst [smem:[#allocation49_spill]] %s12107_s5 }
   0x7   :  { %12164 = sst [smem:[#allocation50_spill]] %s12108_s6 }
   0x8   :  { %12165 = sst [smem:[#allocation51_spill]] %s12109_s7 }
   0x9   :  { %12166 = sst [smem:[#allocation52_spill]] %s12110_s8 }
   0xa   :  { %12167 = sst [smem:[#allocation53_spill]] %s12111_s9 }
   0xb   :  { %28 = vsyncpa [#allocation3], 0 }
   0xc   :  { %30 = vsyncpa [#allocation3 + $0x1], 0  ;;  %s9039_s4 = smov 0   ;;  %s9041_s30 = smov 0  }
   0xd   :  { %s9043_s24 = smov 0   ;;  %s9045_s25 = smov 0  }
   0xe LB: > { %12168 = sst [smem:[#allocation5_spill]] %s8900_s4  ;;  %s9060_s5 = sadd.s32 4294967295, %s8912_s25   ;;  %s8912_s25 = sphi %s9045_s25, %s12318_s25   ;;  %s8908_s24 = sphi %s9043_s24, %s12320_s24   ;;  %s8904_s30 = sphi %s9041_s30, %s12322_s30   ;;  %s8900_s4 = sphi %s9039_s4, %s12321_s4  }
   0xf   : > { %12169 = sst [smem:[#allocation6_spill]] %s8908_s24  ;;  %s7342_s1 = sadd.s32 4294967294, %s8912_s25  }
  0x10   : > { %s9064_s26 = sadd.s32 1, %s8912_s25   ;;  %s531_s2 = sadd.s32 1, %s8908_s24 }
  0x11   : > { %12170 = sst [smem:[#allocation7_spill]] %s9064_s26  ;;  %s528_s6 = ssub.s32 %s8912_s25, %s9064_s26 }
  0x12   : > { %p541_p0 = scmp.ne.s32.totalorder %s8908_s24, %s8904_s30  ;;  %p529_p1 = scmp.eq.s32.totalorder %s528_s6, 0 }
  0x13   : > { %p542_p2 = scmp.eq.s32.totalorder %s9060_s5, 1  ;;  %p547_p3 = scmp.ne.s32.totalorder %s8904_s30, %s8900_s4 }
  0x14   : > { %p548_p4 = scmp.eq.s32.totalorder %s7342_s1, 1  ;;  %p7345_p7 = scmp.ge.s32.totalorder %s8912_s25, 1 }
  0x15   : > { %s9075_s27 = scalar_select %p529_p1, %s8908_s24, %s531_s2  }
  0x16   : > { %p9077_p5 = por %p542_p2, %p541_p0  ;;  %p9081_p6 = por %p548_p4, %p547_p3 }
  0x17   : > { %12171 = sst [smem:[#allocation8_spill]] %s9075_s27  ;;  %p641_p8 = scmp.lt.s32.totalorder %s8912_s25, 3 }
  0x18   : > { %s12173_s28 = scalar_select %p9081_p6, 1, 0 }
  0x19   : > { %p642_p9 = pnand %p7345_p7, %p641_p8 }
  0x1a   : > { %12174 = sst [smem:[#allocation9_spill]] %s12173_s28 }
  0x1b   : > { %645 = sbr.rel (%p642_p9) target bundleno = 3356 (0xd1c), region = 112 }
  0x20   : > { %s12175_s0 = sld [smem:[#allocation45_spill]]  ;;  %s7347_s1 = sshll.u32 %s9060_s5, 5  ;;  %vm847_vm0 = vcmask 261120   ;;  %v12137_v18 = vmov 0   ;;  %vm5960_vm1 = vcmask 523264   ;;  %vm8916_vm2 = vmmov 0  }
  0x21   : > { %p706_p10 = scmp.lt.s32.totalorder %s7347_s1, 63  ;;  %s12176_s28 = sld [smem:[#allocation44_spill]]  ;;  %8079 = vmatprep.subr.bf16.mxu1 %v12137_v18  ;;  %vm6504_vm3 = vcmask 130048   ;;  %vm7201_vm4 = vcmask 1043456  }
  0x22   : > { %s12226_s26 = sld [smem:[#allocation50_spill]]  ;;  %s7889_s2 = sshll.u32 %s9060_s5, 6 }
  0x23   : > { %s12324_s1 = smov (!%p706_p10, %s7347_s1), 63  ;;  %s12302_s8 = sld [smem:[#allocation52_spill]] }
  0x24   : > { %s7348_s27 = sshll.u32 %s12324_s1, 2  ;;  %s12178_s1 = sld [smem:[#allocation46_spill]] }
  0x25   : > { %s12305_s9 = sld [smem:[#allocation53_spill]] }
  0x26   : > { %v8154_v0 = vld [vmem:[%s12175_s0 + $0x8] sm:$0xff]   ;;  %v8155_v1 = vld [vmem:[%s12175_s0] sm:$0xff]   ;;  %s12303_s0 = sld [smem:[#allocation51_spill]] }
  0x27   : > { %7947 = vmatprep.subr.bf16.mxu0 %v8154_v0  ;;  %s9097_s4 = scalar_lea.vmem %s12176_s28, %s7348_s27  ;;  %s12177_s27 = sld [smem:[#allocation47_spill]] }
  0x28   : > { %7948 = vmatpush3.bf16.msra.mxu0 %v8154_v0  ;;  %v8156_v2 = vld [vmem:[%s9097_s4] sm:$0xff]   ;;  %v8157_v3 = vld [vmem:[%s9097_s4 + $0x8] sm:$0xff]   ;;  %v8158_v4 = vld [vmem:[%s9097_s4 + $0x10] sm:$0xff]   ;;  %s7281_s28 = scalar_lea.hbm %s12125_s23, %s7889_s2 }
  0x29   : > { %7949 = vmatprep.subr.bf16.mxu0 %v8155_v1  ;;  %7951 = vmatprep.mubr.msk.bf16.mxu0 %vm847_vm0, %v8156_v2  ;;  %v8159_v5 = vld [vmem:[%s9097_s4 + $0x18] sm:$0xff]   ;;  %v8160_v6 = vld [vmem:[%s9097_s4 + $0x20] sm:$0xff]   ;;  %v8161_v7 = vld [vmem:[%s9097_s4 + $0x28] sm:$0xff]  }
  0x2a   : > { %v8162_v8 = vld [vmem:[%s9097_s4 + $0x30] sm:$0xff]   ;;  %v8163_v9 = vld [vmem:[%s9097_s4 + $0x38] sm:$0xff]   ;;  %v8164_v10 = vld [vmem:[%s9097_s4 + $0x40] sm:$0xff]  }
  0x2b   : > { %v8165_v11 = vld [vmem:[%s9097_s4 + $0x48] sm:$0xff]   ;;  %v8166_v12 = vld [vmem:[%s9097_s4 + $0x50] sm:$0xff]   ;;  %v8167_v13 = vld [vmem:[%s9097_s4 + $0x58] sm:$0xff]  }
  0x2c   : > { %7950 = vmatpush3.bf16.msra.mxu0 %v8155_v1  ;;  %v8168_v14 = vld [vmem:[%s9097_s4 + $0x60] sm:$0xff]   ;;  %v8169_v15 = vld [vmem:[%s9097_s4 + $0x68] sm:$0xff]   ;;  %v8170_v16 = vld [vmem:[%s9097_s4 + $0x70] sm:$0xff]  }
  0x2d   : > { %v8171_v17 = vld [vmem:[%s9097_s4 + $0x78] sm:$0xff]   ;;  %2833 = vmatprep.subr.bf16.mxu0 %v12137_v18  ;;  %v8174_v19 = vld [vmem:[%s12177_s27 + $0x4] ss:$8 sps:$4 sm:$0xff]   ;;  %v9150_v34 = vld [vmem:[%s12178_s1] ss:$0 sm:$0xff]  ;;  %s12182_s1 = sld [smem:[#allocation48_spill]] }
  0x2e   : > { %v8177_v20 = vld [vmem:[%s12177_s27 + $0x234] ss:$8 sps:$4 sm:$0xff]   ;;  %s12285_s4 = sld [smem:[#allocation49_spill]] }
  0x2f   : > { %7952 = vmatmul.mubr.msk.bf16.vlgmr.msra.gmra.mxu0 %vm847_vm0, %v8157_v3  ;;  %3145 = vmatprep.mubr.bf16.mxu1 %v8177_v20 }
  0x30   : > { %7955 = vmatprep.mubr.msk.bf16.mxu0 %vm847_vm0, %v8158_v4 }
  0x37   : > { %7956 = vmatmul.mubr.msk.bf16.gmra.mxu0 %vm847_vm0, %v8159_v5 }
  0x38   : > { %7959 = vmatprep.mubr.msk.bf16.mxu0 %vm847_vm0, %v8160_v6 }
  0x3f   : > { %7960 = vmatmul.mubr.msk.bf16.gmra.mxu0 %vm847_vm0, %v8161_v7 }
  0x40   : > { %7963 = vmatprep.mubr.msk.bf16.mxu0 %vm847_vm0, %v8162_v8 }
  0x47   : > { %7964 = vmatmul.mubr.msk.bf16.gmra.mxu0 %vm847_vm0, %v8163_v9 }
  0x48   : > { %7967 = vmatprep.mubr.msk.bf16.mxu0 %vm847_vm0, %v8164_v10 }
  0x4f   : > { %7968 = vmatmul.mubr.msk.bf16.gmra.mxu0 %vm847_vm0, %v8165_v11 }
  0x50   : > { %7971 = vmatprep.mubr.msk.bf16.mxu0 %vm847_vm0, %v8166_v12 }
  0x57   : > { %7972 = vmatmul.mubr.msk.bf16.gmra.mxu0 %vm847_vm0, %v8167_v13 }
  0x58   : > { %7975 = vmatprep.mubr.msk.bf16.mxu0 %vm847_vm0, %v8168_v14 }
  0x5f   : > { %7976 = vmatmul.mubr.msk.bf16.gmra.mxu0 %vm847_vm0, %v8169_v15 }
  0x60   : > { %7979 = vmatprep.mubr.msk.bf16.mxu0 %vm847_vm0, %v8170_v16 }
  0x67   : > { %7980 = vmatmul.mubr.msk.bf16.gmra.mxu0 %vm847_vm0, %v8171_v17 }
  0x68   : > { %2865 = vmatprep.mubr.bf16.mxu0 %v8174_v19 }
  0xef   : > { %v9139_v21 = vpop.f32.mrf.mxu0 }
  0xf0   : > { %v939_v13 = vadd.f32 %v9139_v21, %v9150_v34 }
  0xf1   : > { %v9141_v22 = vpop.f32.mrf.mxu0 }
  0xf3   : > { %v9143_v23 = vpop.f32.mrf.mxu0 }
  0xf4   : > { %v942_v9 = vadd.f32 %v9143_v23, %v9150_v34  ;;  %v1059_v23 = vmax.f32 %v939_v13, 0.0  ;;  %v8184_v13 = vld [vmem:[%s12177_s27 + $0x24] ss:$8 sps:$4 sm:$0xff]  }
  0xf5   : > { %v9145_v24 = vpop.f32.mrf.mxu0 }
  0xf6   : > { %v1060_v16 = vmax.f32 %v942_v9, 0.0  ;;  %v934_v17 = vadd.f32 %v9150_v34, %v9145_v24  ;;  %v8178_v9 = vld [vmem:[%s12177_s27 + $0x14] ss:$8 sps:$4 sm:$0xff]  }
  0xf7   : > { %v7957_v25 = vpop.f32.mrf.mxu0 }
  0xf8   : > { %v955_v63 = vadd.f32 %v7957_v25, %v9150_v34  ;;  %v931_v25 = vadd.f32 %v9150_v34, %v9141_v22 }
  0xf9   : > { %v946_v26 = vpop.f32.mrf.mxu0 }
  0xfa   : > { %v1063_v6 = vmax.f32 %v955_v63, 0.0  ;;  %v947_v7 = vadd.f32 %v9150_v34, %v946_v26  ;;  %v1378_v26 = vpack.c.bf16 %v1060_v16, %v1059_v23  ;;  %v8189_v16 = vld [vmem:[%s12177_s27 + $0x250] ss:$8 sps:$4 sm:$0xff]   ;;  %v8195_v23 = vld [vmem:[%s12177_s27 + $0x260] ss:$8 sps:$4 sm:$0xff]  }
  0xfb   : > { %v7958_v27 = vpop.f32.mrf.mxu0 }
  0xfc   : > { %v958_v59 = vadd.f32 %v7958_v27, %v9150_v34  ;;  %v1061_v14 = vmax.f32 %v947_v7, 0.0  ;;  %v1058_v27 = vmax.f32 %v934_v17, 0.0  ;;  %v8190_v17 = vld [vmem:[%s12177_s27 + $0x34] ss:$8 sps:$4 sm:$0xff]  }
  0xfd   : > { %v949_v28 = vpop.f32.mrf.mxu0 }
  0xfe   : > { %v1064_v2 = vmax.f32 %v958_v59, 0.0  ;;  %v950_v3 = vadd.f32 %v9150_v34, %v949_v28 }
  0xff   : > { %v7961_v29 = vpop.f32.mrf.mxu0 }
 0x100   : > { %v971_v49 = vadd.f32 %v7961_v29, %v9150_v34  ;;  %v1380_v10 = vpack.c.bf16 %v1064_v2, %v1063_v6  ;;  %v1062_v11 = vmax.f32 %v950_v3, 0.0  ;;  %v1057_v29 = vmax.f32 %v931_v25, 0.0  ;;  %v8196_v25 = vld [vmem:[%s12177_s27 + $0x44] ss:$8 sps:$4 sm:$0xff]  }
 0x101   : > { %v962_v30 = vpop.f32.mrf.mxu0 }
 0x102   : > { %v1067_v56 = vmax.f32 %v971_v49, 0.0  ;;  %v963_v57 = vadd.f32 %v9150_v34, %v962_v30  ;;  %v1379_v19 = vpack.c.bf16 %v1062_v11, %v1061_v14  ;;  %v1377_v22 = vpack.c.bf16 %v1058_v27, %v1057_v29  ;;  %v8182_v11 = vld [vmem:[%s12177_s27 + $0x10] ss:$8 sps:$4 sm:$0xff]   ;;  %v8186_v14 = vld [vmem:[%s12177_s27 + $0x254] ss:$8 sps:$4 sm:$0xff]  }
 0x103   : > { %v7962_v31 = vpop.f32.mrf.mxu0  ;;  %v8201_v27 = vld [vmem:[%s12177_s27 + $0x270] ss:$8 sps:$4 sm:$0xff]   ;;  %v8204_v29 = vld [vmem:[%s12177_s27 + $0x284] ss:$8 sps:$4 sm:$0xff]  }
 0x104   : > { %v974_v45 = vadd.f32 %v7962_v31, %v9150_v34  ;;  %v1065_v0 = vmax.f32 %v963_v57, 0.0 }
 0x105   : > { %v965_v32 = vpop.f32.mrf.mxu0 }
 0x106   : > { %v1068_v52 = vmax.f32 %v974_v45, 0.0  ;;  %v966_v53 = vadd.f32 %v9150_v34, %v965_v32 }
 0x107   : > { %v7965_v33 = vpop.f32.mrf.mxu0 }
 0x108   : > { %v987_v36 = vadd.f32 %v7965_v33, %v9150_v34  ;;  %v1382_v60 = vpack.c.bf16 %v1068_v52, %v1067_v56  ;;  %v1066_v61 = vmax.f32 %v966_v53, 0.0 }
 0x109   : > { %v978_v35 = vpop.f32.mrf.mxu0 }
 0x10a   : > { %v1071_v40 = vmax.f32 %v987_v36, 0.0  ;;  %v979_v41 = vadd.f32 %v9150_v34, %v978_v35  ;;  %v1381_v4 = vpack.c.bf16 %v1066_v61, %v1065_v0 }
 0x10b   : > { %v7966_v37 = vpop.f32.mrf.mxu0 }
 0x10c   : > { %v990_v38 = vadd.f32 %v7966_v37, %v9150_v34  ;;  %v1069_v50 = vmax.f32 %v979_v41, 0.0 }
 0x10d   : > { %v981_v39 = vpop.f32.mrf.mxu0 }
 0x10e   : > { %v1072_v42 = vmax.f32 %v990_v38, 0.0  ;;  %v982_v43 = vadd.f32 %v9150_v34, %v981_v39 }
 0x10f   : > { %v9156_v44 = vpop.f32.mrf.mxu0 }
 0x110   : > { %v1384_v46 = vpack.c.bf16 %v1072_v42, %v1071_v40  ;;  %v1070_v47 = vmax.f32 %v982_v43, 0.0  ;;  %v1003_v2 = vadd.f32 %v9156_v44, %v9150_v34 }
 0x111   : > { %v9159_v48 = vpop.f32.mrf.mxu0 }
 0x112   : > { %2834 = vmatpush1.bf16.msra.mxu0 %v1384_v46  ;;  %8095 = vmatpush1.bf16.msra.mxu1 %v1384_v46  ;;  %v1383_v54 = vpack.c.bf16 %v1070_v47, %v1069_v50  ;;  %v1075_v6 = vmax.f32 %v1003_v2, 0.0  ;;  %v8254_v2 = vld [vmem:[%s12177_s27 + $0xd0] ss:$8 sps:$4 sm:$0xff]  }
 0x113   : > { %v9162_v51 = vpop.f32.mrf.mxu0  ;;  %2835 = vmatprep.subr.bf16.mxu0 %v12137_v18  ;;  %8080 = vmatprep.subr.bf16.mxu1 %v12137_v18 }
 0x115   : > { %v9167_v55 = vpop.f32.mrf.mxu0 }
 0x116   : > { %2836 = vmatpush1.bf16.msra.mxu0 %v1383_v54  ;;  %8096 = vmatpush1.bf16.msra.mxu1 %v1383_v54 }
 0x117   : > { %v9170_v58 = vpop.f32.mrf.mxu0  ;;  %2837 = vmatprep.subr.bf16.mxu0 %v12137_v18  ;;  %8081 = vmatprep.subr.bf16.mxu1 %v12137_v18 }
 0x118   : > { %v1019_v54 = vadd.f32 %v9170_v58, %v9150_v34  ;;  %v1006_v58 = vadd.f32 %v9162_v51, %v9150_v34  ;;  %v995_v51 = vadd.f32 %v9150_v34, %v9159_v48  ;;  %v8175_v48 = vld [vmem:[%s12177_s27 + $0x230] ss:$8 sps:$4 sm:$0xff]  }
 0x119   : > { %v9175_v62 = vpop.f32.mrf.mxu0 }
 0x11a   : > { %2838 = vmatpush1.bf16.msra.mxu0 %v1382_v60  ;;  %8097 = vmatpush1.bf16.msra.mxu1 %v1382_v60  ;;  %v1079_v61 = vmax.f32 %v1019_v54, 0.0  ;;  %v1011_v63 = vadd.f32 %v9150_v34, %v9175_v62  ;;  %v1076_v62 = vmax.f32 %v1006_v58, 0.0  ;;  %v8238_v54 = vld [vmem:[%s12177_s27 + $0xb4] ss:$8 sps:$4 sm:$0xff]   ;;  %v8249_v58 = vld [vmem:[%s12177_s27 + $0x2f0] ss:$8 sps:$4 sm:$0xff]  }
 0x11b   : > { %v9178_v1 = vpop.f32.mrf.mxu0  ;;  %2839 = vmatprep.subr.bf16.mxu0 %v12137_v18  ;;  %8082 = vmatprep.subr.bf16.mxu1 %v12137_v18 }
 0x11c   : > { %v1022_v50 = vadd.f32 %v9178_v1, %v9150_v34  ;;  %v1077_v3 = vmax.f32 %v1011_v63, 0.0  ;;  %v1386_v44 = vpack.c.bf16 %v1076_v62, %v1075_v6  ;;  %v8248_v63 = vld [vmem:[%s12177_s27 + $0xc0] ss:$8 sps:$4 sm:$0xff]   ;;  %v8256_v62 = vld [vmem:[%s12177_s27 + $0xe4] ss:$8 sps:$4 sm:$0xff]  }
 0x11d   : > { %v9183_v5 = vpop.f32.mrf.mxu0  ;;  %v8261_v6 = vld [vmem:[%s12177_s27 + $0x310] ss:$8 sps:$4 sm:$0xff]  }
 0x11e   : > { %2840 = vmatpush1.bf16.msra.mxu0 %v1381_v4  ;;  %8098 = vmatpush1.bf16.msra.mxu1 %v1381_v4  ;;  %v1080_v57 = vmax.f32 %v1022_v50, 0.0  ;;  %v1014_v59 = vadd.f32 %v9150_v34, %v9183_v5  ;;  %v998_v4 = vadd.f32 %v9150_v34, %v9167_v55  ;;  %v8234_v50 = vld [vmem:[%s12177_s27 + $0x2d4] ss:$8 sps:$4 sm:$0xff]  }
 0x11f   : > { %v7977_v8 = vpop.f32.mrf.mxu0  ;;  %2841 = vmatprep.subr.bf16.mxu0 %v12137_v18  ;;  %8083 = vmatprep.subr.bf16.mxu1 %v12137_v18 }
 0x120   : > { %v1035_v41 = vadd.f32 %v7977_v8, %v9150_v34  ;;  %v1388_v0 = vpack.c.bf16 %v1080_v57, %v1079_v61  ;;  %v1078_v1 = vmax.f32 %v1014_v59, 0.0  ;;  %v1074_v7 = vmax.f32 %v998_v4, 0.0  ;;  %v8242_v57 = vld [vmem:[%s12177_s27 + $0xb0] ss:$8 sps:$4 sm:$0xff]   ;;  %v8243_v59 = vld [vmem:[%s12177_s27 + $0x2e0] ss:$8 sps:$4 sm:$0xff]  }
 0x121   : > { %v1026_v12 = vpop.f32.mrf.mxu0  ;;  %v1073_v8 = vmax.f32 %v995_v51, 0.0  ;;  %v8246_v61 = vld [vmem:[%s12177_s27 + $0x2f4] ss:$8 sps:$4 sm:$0xff]  }
 0x122   : > { %2842 = vmatpush1.bf16.msra.mxu0 %v1380_v10  ;;  %8099 = vmatpush1.bf16.msra.mxu1 %v1380_v10  ;;  %v1083_v47 = vmax.f32 %v1035_v41, 0.0  ;;  %v1027_v49 = vadd.f32 %v9150_v34, %v1026_v12  ;;  %v1387_v5 = vpack.c.bf16 %v1078_v1, %v1077_v3  ;;  %v8180_v10 = vld [vmem:[%s12177_s27 + $0x244] ss:$8 sps:$4 sm:$0xff]   ;;  %v8183_v12 = vld [vmem:[%s12177_s27 + $0x240] ss:$8 sps:$4 sm:$0xff]  }
 0x123   : > { %v7978_v15 = vpop.f32.mrf.mxu0  ;;  %2843 = vmatprep.subr.bf16.mxu0 %v12137_v18  ;;  %8084 = vmatprep.subr.bf16.mxu1 %v12137_v18  ;;  %v1385_v55 = vpack.c.bf16 %v1074_v7, %v1073_v8  ;;  %v8224_v41 = vld [vmem:[%s12177_s27 + $0x80] ss:$8 sps:$4 sm:$0xff]   ;;  %v8252_v1 = vld [vmem:[%s12177_s27 + $0x304] ss:$8 sps:$4 sm:$0xff]   ;;  %v8258_v4 = vld [vmem:[%s12177_s27 + $0x314] ss:$8 sps:$4 sm:$0xff]  }
 0x124   : > { %v1038_v38 = vadd.f32 %v7978_v15, %v9150_v34  ;;  %v1081_v56 = vmax.f32 %v1027_v49, 0.0  ;;  %v8188_v15 = vld [vmem:[%s12177_s27 + $0x20] ss:$8 sps:$4 sm:$0xff]   ;;  %v8232_v49 = vld [vmem:[%s12177_s27 + $0xa4] ss:$8 sps:$4 sm:$0xff]  }
 0x125   : > { %v1029_v20 = vpop.f32.mrf.mxu0  ;;  %v8255_v3 = vld [vmem:[%s12177_s27 + $0x300] ss:$8 sps:$4 sm:$0xff]   ;;  %v8262_v51 = vld [vmem:[%s12177_s27 + $0xf4] ss:$8 sps:$4 sm:$0xff]   ;;  %v8266_v7 = vld [vmem:[%s12177_s27 + $0xf0] ss:$8 sps:$4 sm:$0xff]  }
 0x126   : > { %2844 = vmatpush1.bf16.msra.mxu0 %v1379_v19  ;;  %8100 = vmatpush1.bf16.msra.mxu1 %v1379_v19  ;;  %v1084_v43 = vmax.f32 %v1038_v38, 0.0  ;;  %v1030_v45 = vadd.f32 %v9150_v34, %v1029_v20  ;;  %v8192_v19 = vld [vmem:[%s12177_s27 + $0x264] ss:$8 sps:$4 sm:$0xff]   ;;  %v8194_v20 = vld [vmem:[%s12177_s27 + $0x30] ss:$8 sps:$4 sm:$0xff]  }
 0x127   : > { %v7981_v21 = vpop.f32.mrf.mxu0  ;;  %2845 = vmatprep.subr.bf16.mxu0 %v12137_v18  ;;  %8085 = vmatprep.subr.bf16.mxu1 %v12137_v18  ;;  %v8219_v38 = vld [vmem:[%s12177_s27 + $0x2a0] ss:$8 sps:$4 sm:$0xff]  }
 0x128   : > { %v1051_v30 = vadd.f32 %v7981_v21, %v9150_v34  ;;  %v1390_v52 = vpack.c.bf16 %v1084_v43, %v1083_v47  ;;  %v1082_v53 = vmax.f32 %v1030_v45, 0.0  ;;  %v8198_v21 = vld [vmem:[%s12177_s27 + $0x274] ss:$8 sps:$4 sm:$0xff]   ;;  %v8228_v45 = vld [vmem:[%s12177_s27 + $0x2c4] ss:$8 sps:$4 sm:$0xff]  }
 0x129   : > { %v1042_v28 = vpop.f32.mrf.mxu0  ;;  %v8226_v43 = vld [vmem:[%s12177_s27 + $0x94] ss:$8 sps:$4 sm:$0xff]   ;;  %v8231_v47 = vld [vmem:[%s12177_s27 + $0x2c0] ss:$8 sps:$4 sm:$0xff]  }
 0x12a   : > { %2846 = vmatpush1.bf16.msra.mxu0 %v1378_v26  ;;  %8101 = vmatpush1.bf16.msra.mxu1 %v1378_v26  ;;  %v1087_v33 = vmax.f32 %v1051_v30, 0.0  ;;  %v1043_v35 = vadd.f32 %v9150_v34, %v1042_v28  ;;  %v1389_v60 = vpack.c.bf16 %v1082_v53, %v1081_v56  ;;  %v8200_v26 = vld [vmem:[%s12177_s27 + $0x40] ss:$8 sps:$4 sm:$0xff]   ;;  %v8202_v28 = vld [vmem:[%s12177_s27 + $0x54] ss:$8 sps:$4 sm:$0xff]  }
 0x12b   : > { %v7982_v24 = vpop.f32.mrf.mxu0  ;;  %2847 = vmatprep.subr.bf16.mxu0 %v12137_v18  ;;  %8086 = vmatprep.subr.bf16.mxu1 %v12137_v18  ;;  %v8206_v30 = vld [vmem:[%s12177_s27 + $0x50] ss:$8 sps:$4 sm:$0xff]   ;;  %v8240_v56 = vld [vmem:[%s12177_s27 + $0x2e4] ss:$8 sps:$4 sm:$0xff]   ;;  %v8267_v8 = vld [vmem:[%s12177_s27 + $0x320] ss:$8 sps:$4 sm:$0xff]  }
 0x12c   : > { %v1054_v31 = vadd.f32 %v7982_v24, %v9150_v34  ;;  %v1085_v42 = vmax.f32 %v1043_v35, 0.0  ;;  %v8207_v24 = vld [vmem:[%s12177_s27 + $0x280] ss:$8 sps:$4 sm:$0xff]   ;;  %v8214_v35 = vld [vmem:[%s12177_s27 + $0x74] ss:$8 sps:$4 sm:$0xff]  }
 0x12d   : > { %v1045_v32 = vpop.f32.mrf.mxu0  ;;  %v8237_v53 = vld [vmem:[%s12177_s27 + $0x2d0] ss:$8 sps:$4 sm:$0xff]  }
 0x12e   : > { %v1088_v36 = vmax.f32 %v1054_v31, 0.0  ;;  %v1046_v37 = vadd.f32 %v9150_v34, %v1045_v32  ;;  %2848 = vmatpush1.bf16.msra.mxu0 %v1377_v22  ;;  %8102 = vmatpush1.bf16.msra.mxu1 %v1377_v22  ;;  %v8172_v34 = vld [vmem:[%s12177_s27] ss:$8 sps:$4 sm:$0xff]   ;;  %v8208_v22 = vld [vmem:[%s12177_s27 + $0x64] ss:$8 sps:$4 sm:$0xff]  }
 0x12f   : > { %2849 = vmatprep.subr.bf16.mxu0 %v12137_v18  ;;  %8087 = vmatprep.subr.bf16.mxu1 %v12137_v18  ;;  %v8210_v31 = vld [vmem:[%s12177_s27 + $0x294] ss:$8 sps:$4 sm:$0xff]   ;;  %v8212_v32 = vld [vmem:[%s12177_s27 + $0x60] ss:$8 sps:$4 sm:$0xff]  }
 0x130   : > { %v1392_v39 = vpack.c.bf16 %v1088_v36, %v1087_v33  ;;  %v1086_v40 = vmax.f32 %v1046_v37, 0.0  ;;  %v8213_v33 = vld [vmem:[%s12177_s27 + $0x290] ss:$8 sps:$4 sm:$0xff]   ;;  %v8216_v36 = vld [vmem:[%s12177_s27 + $0x2a4] ss:$8 sps:$4 sm:$0xff]  }
 0x131   : > { %v8218_v37 = vld [vmem:[%s12177_s27 + $0x70] ss:$8 sps:$4 sm:$0xff]  }
 0x132   : > { %2850 = vmatpush2.bf16.msra.mxu0 %v1392_v39  ;;  %8103 = vmatpush2.bf16.msra.mxu1 %v1392_v39  ;;  %v1391_v46 = vpack.c.bf16 %v1086_v40, %v1085_v42  ;;  %v8220_v39 = vld [vmem:[%s12177_s27 + $0x84] ss:$8 sps:$4 sm:$0xff]   ;;  %v8222_v40 = vld [vmem:[%s12177_s27 + $0x2b4] ss:$8 sps:$4 sm:$0xff]   ;;  %v8225_v42 = vld [vmem:[%s12177_s27 + $0x2b0] ss:$8 sps:$4 sm:$0xff]  }
 0x133   : > { %2851 = vmatprep.subr.bf16.mxu0 %v12137_v18  ;;  %8088 = vmatprep.subr.bf16.mxu1 %v12137_v18 }
 0x136   : > { %2852 = vmatpush2.bf16.msra.mxu0 %v1391_v46  ;;  %8104 = vmatpush2.bf16.msra.mxu1 %v1391_v46  ;;  %v8230_v46 = vld [vmem:[%s12177_s27 + $0x90] ss:$8 sps:$4 sm:$0xff]  }
 0x137   : > { %2853 = vmatprep.subr.bf16.mxu0 %v12137_v18  ;;  %8089 = vmatprep.subr.bf16.mxu1 %v12137_v18 }
 0x13a   : > { %2854 = vmatpush2.bf16.msra.mxu0 %v1390_v52  ;;  %8105 = vmatpush2.bf16.msra.mxu1 %v1390_v52  ;;  %v8236_v52 = vld [vmem:[%s12177_s27 + $0xa0] ss:$8 sps:$4 sm:$0xff]  }
 0x13b   : > { %2855 = vmatprep.subr.bf16.mxu0 %v12137_v18  ;;  %8090 = vmatprep.subr.bf16.mxu1 %v12137_v18 }
 0x13e   : > { %2856 = vmatpush2.bf16.msra.mxu0 %v1389_v60  ;;  %8106 = vmatpush2.bf16.msra.mxu1 %v1389_v60  ;;  %v8244_v60 = vld [vmem:[%s12177_s27 + $0xc4] ss:$8 sps:$4 sm:$0xff]  }
 0x13f   : > { %2857 = vmatprep.subr.bf16.mxu0 %v12137_v18  ;;  %8091 = vmatprep.subr.bf16.mxu1 %v12137_v18 }
 0x142   : > { %2858 = vmatpush2.bf16.msra.mxu0 %v1388_v0  ;;  %8107 = vmatpush2.bf16.msra.mxu1 %v1388_v0  ;;  %v8250_v0 = vld [vmem:[%s12177_s27 + $0xd4] ss:$8 sps:$4 sm:$0xff]  }
 0x143   : > { %2859 = vmatprep.subr.bf16.mxu0 %v12137_v18  ;;  %8092 = vmatprep.subr.bf16.mxu1 %v12137_v18 }
 0x146   : > { %2860 = vmatpush2.bf16.msra.mxu0 %v1387_v5  ;;  %8108 = vmatpush2.bf16.msra.mxu1 %v1387_v5  ;;  %v8260_v5 = vld [vmem:[%s12177_s27 + $0xe0] ss:$8 sps:$4 sm:$0xff]  }
 0x147   : > { %2861 = vmatprep.subr.bf16.mxu0 %v12137_v18  ;;  %8093 = vmatprep.subr.bf16.mxu1 %v12137_v18 }
 0x14a   : > { %2862 = vmatpush2.bf16.msra.mxu0 %v1386_v44  ;;  %8109 = vmatpush2.bf16.msra.mxu1 %v1386_v44  ;;  %v8264_v44 = vld [vmem:[%s12177_s27 + $0x324] ss:$8 sps:$4 sm:$0xff]  }
 0x14b   : > { %2863 = vmatprep.subr.bf16.mxu0 %v12137_v18  ;;  %8094 = vmatprep.subr.bf16.mxu1 %v12137_v18 }
 0x14e   : > { %2864 = vmatpush2.bf16.msra.mxu0 %v1385_v55  ;;  %8110 = vmatpush2.bf16.msra.mxu1 %v1385_v55  ;;  %v8268_v55 = vld [vmem:[%s12177_s27 + $0x104] ss:$8 sps:$4 sm:$0xff]  }
 0x151   : > { %2866 = vmatmul.mubr.bf16.vlgmr.msra.gmra.mxu0 %v8172_v34  ;;  %3146 = vmatmul.mubr.bf16.vlgmr.msra.gmra.mxu1 %v8175_v48  ;;  %v8270_v34 = vld [vmem:[%s12177_s27 + $0x334] ss:$8 sps:$4 sm:$0xff]   ;;  %v8272_v48 = vld [vmem:[%s12177_s27 + $0x100] ss:$8 sps:$4 sm:$0xff]  }
 0x152   : > { %2873 = vmatprep.mubr.bf16.mxu0 %v8178_v9  ;;  %3153 = vmatprep.mubr.bf16.mxu1 %v8180_v10  ;;  %v8273_v9 = vld [vmem:[%s12177_s27 + $0x330] ss:$8 sps:$4 sm:$0xff]   ;;  %v8274_v10 = vld [vmem:[%s12177_s27 + $0x114] ss:$8 sps:$4 sm:$0xff]  }
 0x159   : > { %2874 = vmatmul.mubr.bf16.gmra.mxu0 %v8182_v11  ;;  %3154 = vmatmul.mubr.bf16.gmra.mxu1 %v8183_v12  ;;  %v8276_v11 = vld [vmem:[%s12177_s27 + $0x344] ss:$8 sps:$4 sm:$0xff]   ;;  %v8278_v12 = vld [vmem:[%s12177_s27 + $0x110] ss:$8 sps:$4 sm:$0xff]  }
 0x15a   : > { %2881 = vmatprep.mubr.bf16.mxu0 %v8184_v13  ;;  %3161 = vmatprep.mubr.bf16.mxu1 %v8186_v14  ;;  %v8279_v13 = vld [vmem:[%s12177_s27 + $0x340] ss:$8 sps:$4 sm:$0xff]   ;;  %v8280_v14 = vld [vmem:[%s12177_s27 + $0x124] ss:$8 sps:$4 sm:$0xff]  }
 0x161   : > { %2882 = vmatmul.mubr.bf16.gmra.mxu0 %v8188_v15  ;;  %3162 = vmatmul.mubr.bf16.gmra.mxu1 %v8189_v16  ;;  %v8282_v15 = vld [vmem:[%s12177_s27 + $0x354] ss:$8 sps:$4 sm:$0xff]   ;;  %v8284_v16 = vld [vmem:[%s12177_s27 + $0x120] ss:$8 sps:$4 sm:$0xff]  }
 0x162   : > { %2889 = vmatprep.mubr.bf16.mxu0 %v8190_v17  ;;  %3169 = vmatprep.mubr.bf16.mxu1 %v8192_v19  ;;  %v8285_v17 = vld [vmem:[%s12177_s27 + $0x350] ss:$8 sps:$4 sm:$0xff]   ;;  %v8286_v19 = vld [vmem:[%s12177_s27 + $0x134] ss:$8 sps:$4 sm:$0xff]  }
 0x169   : > { %2890 = vmatmul.mubr.bf16.gmra.mxu0 %v8194_v20  ;;  %3170 = vmatmul.mubr.bf16.gmra.mxu1 %v8195_v23  ;;  %v8288_v20 = vld [vmem:[%s12177_s27 + $0x364] ss:$8 sps:$4 sm:$0xff]   ;;  %v8290_v23 = vld [vmem:[%s12177_s27 + $0x130] ss:$8 sps:$4 sm:$0xff]  }
 0x16a   : > { %2897 = vmatprep.mubr.bf16.mxu0 %v8196_v25  ;;  %3177 = vmatprep.mubr.bf16.mxu1 %v8198_v21  ;;  %v8291_v25 = vld [vmem:[%s12177_s27 + $0x360] ss:$8 sps:$4 sm:$0xff]   ;;  %v8294_v21 = vld [vmem:[%s12177_s27 + $0x144] ss:$8 sps:$4 sm:$0xff]  }
 0x171   : > { %2898 = vmatmul.mubr.bf16.gmra.mxu0 %v8200_v26  ;;  %3178 = vmatmul.mubr.bf16.gmra.mxu1 %v8201_v27  ;;  %v8295_v26 = vld [vmem:[%s12177_s27 + $0x374] ss:$8 sps:$4 sm:$0xff]   ;;  %v8292_v27 = vld [vmem:[%s12177_s27 + $0x140] ss:$8 sps:$4 sm:$0xff]  }
 0x172   : > { %2905 = vmatprep.mubr.bf16.mxu0 %v8202_v28  ;;  %3185 = vmatprep.mubr.bf16.mxu1 %v8204_v29  ;;  %v8297_v28 = vld [vmem:[%s12177_s27 + $0x370] ss:$8 sps:$4 sm:$0xff]   ;;  %v8300_v29 = vld [vmem:[%s12177_s27 + $0x154] ss:$8 sps:$4 sm:$0xff]  }
 0x179   : > { %2906 = vmatmul.mubr.bf16.gmra.mxu0 %v8206_v30  ;;  %3186 = vmatmul.mubr.bf16.gmra.mxu1 %v8207_v24  ;;  %v8301_v30 = vld [vmem:[%s12177_s27 + $0x384] ss:$8 sps:$4 sm:$0xff]   ;;  %v8298_v24 = vld [vmem:[%s12177_s27 + $0x150] ss:$8 sps:$4 sm:$0xff]  }
 0x17a   : > { %2913 = vmatprep.mubr.bf16.mxu0 %v8208_v22  ;;  %3193 = vmatprep.mubr.bf16.mxu1 %v8210_v31  ;;  %v8303_v22 = vld [vmem:[%s12177_s27 + $0x380] ss:$8 sps:$4 sm:$0xff]   ;;  %v8306_v31 = vld [vmem:[%s12177_s27 + $0x164] ss:$8 sps:$4 sm:$0xff]  }
 0x181   : > { %2914 = vmatmul.mubr.bf16.gmra.mxu0 %v8212_v32  ;;  %3194 = vmatmul.mubr.bf16.gmra.mxu1 %v8213_v33  ;;  %v8307_v32 = vld [vmem:[%s12177_s27 + $0x394] ss:$8 sps:$4 sm:$0xff]   ;;  %v8304_v33 = vld [vmem:[%s12177_s27 + $0x160] ss:$8 sps:$4 sm:$0xff]  }
 0x182   : > { %2921 = vmatprep.mubr.bf16.mxu0 %v8214_v35  ;;  %3201 = vmatprep.mubr.bf16.mxu1 %v8216_v36  ;;  %v8309_v35 = vld [vmem:[%s12177_s27 + $0x390] ss:$8 sps:$4 sm:$0xff]   ;;  %v8312_v36 = vld [vmem:[%s12177_s27 + $0x174] ss:$8 sps:$4 sm:$0xff]  }
 0x189   : > { %2922 = vmatmul.mubr.bf16.gmra.mxu0 %v8218_v37  ;;  %3202 = vmatmul.mubr.bf16.gmra.mxu1 %v8219_v38  ;;  %v8313_v37 = vld [vmem:[%s12177_s27 + $0x3a4] ss:$8 sps:$4 sm:$0xff]   ;;  %v8310_v38 = vld [vmem:[%s12177_s27 + $0x170] ss:$8 sps:$4 sm:$0xff]  }
 0x18a   : > { %2929 = vmatprep.mubr.bf16.mxu0 %v8220_v39  ;;  %3209 = vmatprep.mubr.bf16.mxu1 %v8222_v40  ;;  %v8315_v39 = vld [vmem:[%s12177_s27 + $0x3a0] ss:$8 sps:$4 sm:$0xff]   ;;  %v8318_v40 = vld [vmem:[%s12177_s27 + $0x184] ss:$8 sps:$4 sm:$0xff]  }
 0x191   : > { %2930 = vmatmul.mubr.bf16.gmra.mxu0 %v8224_v41  ;;  %3210 = vmatmul.mubr.bf16.gmra.mxu1 %v8225_v42  ;;  %v8319_v41 = vld [vmem:[%s12177_s27 + $0x3b4] ss:$8 sps:$4 sm:$0xff]   ;;  %v8316_v42 = vld [vmem:[%s12177_s27 + $0x180] ss:$8 sps:$4 sm:$0xff]  }
 0x192   : > { %2937 = vmatprep.mubr.bf16.mxu0 %v8226_v43  ;;  %3217 = vmatprep.mubr.bf16.mxu1 %v8228_v45  ;;  %v8321_v43 = vld [vmem:[%s12177_s27 + $0x3b0] ss:$8 sps:$4 sm:$0xff]   ;;  %v8324_v45 = vld [vmem:[%s12177_s27 + $0x194] ss:$8 sps:$4 sm:$0xff]  }
 0x199   : > { %2938 = vmatmul.mubr.bf16.gmra.mxu0 %v8230_v46  ;;  %3218 = vmatmul.mubr.bf16.gmra.mxu1 %v8231_v47  ;;  %v8325_v46 = vld [vmem:[%s12177_s27 + $0x3c4] ss:$8 sps:$4 sm:$0xff]  }
 0x19a   : > { %2945 = vmatprep.mubr.bf16.mxu0 %v8232_v49  ;;  %3225 = vmatprep.mubr.bf16.mxu1 %v8234_v50 }
 0x1a1   : > { %2946 = vmatmul.mubr.bf16.gmra.mxu0 %v8236_v52  ;;  %3226 = vmatmul.mubr.bf16.gmra.mxu1 %v8237_v53 }
 0x1a2   : > { %2953 = vmatprep.mubr.bf16.mxu0 %v8238_v54  ;;  %3233 = vmatprep.mubr.bf16.mxu1 %v8240_v56  ;;  %v8322_v56 = vld [vmem:[%s12177_s27 + $0x190] ss:$8 sps:$4 sm:$0xff]  }
 0x1a9   : > { %2954 = vmatmul.mubr.bf16.gmra.mxu0 %v8242_v57  ;;  %3234 = vmatmul.mubr.bf16.gmra.mxu1 %v8243_v59  ;;  %v8327_v57 = vld [vmem:[%s12177_s27 + $0x3c0] ss:$8 sps:$4 sm:$0xff]   ;;  %v8330_v59 = vld [vmem:[%s12177_s27 + $0x1a4] ss:$8 sps:$4 sm:$0xff]  }
 0x1aa   : > { %2961 = vmatprep.mubr.bf16.mxu0 %v8244_v60  ;;  %3241 = vmatprep.mubr.bf16.mxu1 %v8246_v61  ;;  %v8331_v60 = vld [vmem:[%s12177_s27 + $0x3d4] ss:$8 sps:$4 sm:$0xff]  }
 0x1b1   : > { %2962 = vmatmul.mubr.bf16.gmra.mxu0 %v8248_v63  ;;  %3242 = vmatmul.mubr.bf16.gmra.mxu1 %v8249_v58 }
 0x1b2   : > { %2969 = vmatprep.mubr.bf16.mxu0 %v8250_v0  ;;  %3249 = vmatprep.mubr.bf16.mxu1 %v8252_v1  ;;  %v12136_v1 = vlaneseq }
 0x1b9   : > { %2970 = vmatmul.mubr.bf16.gmra.mxu0 %v8254_v2  ;;  %3250 = vmatmul.mubr.bf16.gmra.mxu1 %v8255_v3 }
 0x1ba   : > { %2977 = vmatprep.mubr.bf16.mxu0 %v8256_v62  ;;  %3257 = vmatprep.mubr.bf16.mxu1 %v8258_v4 }
 0x1c1   : > { %2978 = vmatmul.mubr.bf16.gmra.mxu0 %v8260_v5  ;;  %3258 = vmatmul.mubr.bf16.gmra.mxu1 %v8261_v6  ;;  %v8328_v5 = vld [vmem:[%s12177_s27 + $0x1a0] ss:$8 sps:$4 sm:$0xff]   ;;  %v8333_v6 = vld [vmem:[%s12177_s27 + $0x3d0] ss:$8 sps:$4 sm:$0xff]  }
 0x1c2   : > { %2985 = vmatprep.mubr.bf16.mxu0 %v8262_v51  ;;  %3265 = vmatprep.mubr.bf16.mxu1 %v8264_v44  ;;  %v9573_v51 = vshrl.u32 %v12136_v1, 7  ;;  %v8336_v44 = vld [vmem:[%s12177_s27 + $0x1b4] ss:$8 sps:$4 sm:$0xff]  }
 0x1c4   : > { %12179 = vst [vmem:[#allocation10_spill] sm:$0xff] %v9573_v51 }
 0x1c9   : > { %2986 = vmatmul.mubr.bf16.gmra.mxu0 %v8266_v7  ;;  %3266 = vmatmul.mubr.bf16.gmra.mxu1 %v8267_v8  ;;  %v8337_v7 = vld [vmem:[%s12177_s27 + $0x3e4] ss:$8 sps:$4 sm:$0xff]  }
 0x1ca   : > { %2993 = vmatprep.mubr.bf16.mxu0 %v8268_v55  ;;  %3273 = vmatprep.mubr.bf16.mxu1 %v8270_v34 }
 0x1d1   : > { %2994 = vmatmul.mubr.bf16.gmra.mxu0 %v8272_v48  ;;  %3274 = vmatmul.mubr.bf16.gmra.mxu1 %v8273_v9  ;;  %v9586_v9 = vsub.s32 0, %v9573_v51 }
 0x1d2   : > { %3001 = vmatprep.mubr.bf16.mxu0 %v8274_v10  ;;  %3281 = vmatprep.mubr.bf16.mxu1 %v8276_v11  ;;  %v9589_v10 = vsub.s32 2, %v9573_v51  ;;  %v9594_v11 = vld [vmem:[%s12182_s1] sm:$0xff] }
 0x1d3   : > { %12180 = vst [vmem:[#allocation11_spill] sm:$0xff] %v9586_v9 }
 0x1d4   : > { %12181 = vst [vmem:[#allocation12_spill] sm:$0xff] %v9589_v10 }
 0x1d9   : > { %3002 = vmatmul.mubr.bf16.gmra.mxu0 %v8278_v12  ;;  %3282 = vmatmul.mubr.bf16.gmra.mxu1 %v8279_v13 }
 0x1da   : > { %3009 = vmatprep.mubr.bf16.mxu0 %v8280_v14  ;;  %3289 = vmatprep.mubr.bf16.mxu1 %v8282_v15 }
 0x1e1   : > { %3010 = vmatmul.mubr.bf16.gmra.mxu0 %v8284_v16  ;;  %3290 = vmatmul.mubr.bf16.gmra.mxu1 %v8285_v17  ;;  %v8334_v16 = vld [vmem:[%s12177_s27 + $0x1b0] ss:$8 sps:$4 sm:$0xff]   ;;  %v8339_v17 = vld [vmem:[%s12177_s27 + $0x3e0] ss:$8 sps:$4 sm:$0xff]  }
 0x1e2   : > { %3017 = vmatprep.mubr.bf16.mxu0 %v8286_v19  ;;  %3297 = vmatprep.mubr.bf16.mxu1 %v8288_v20  ;;  %v9608_v19 = vrot.slane %v9594_v11, %v9586_v9  ;;  %v9612_v20 = vrot.slane %v9594_v11, %v9589_v10 }
 0x1e9   : > { %3018 = vmatmul.mubr.bf16.gmra.mxu0 %v8290_v23  ;;  %3298 = vmatmul.mubr.bf16.gmra.mxu1 %v8291_v25  ;;  %v8342_v23 = vld [vmem:[%s12177_s27 + $0x1c4] ss:$8 sps:$4 sm:$0xff]   ;;  %v8345_v25 = vld [vmem:[%s12177_s27 + $0x3f4] ss:$8 sps:$4 sm:$0xff]  }
 0x1ea   : > { %3025 = vmatprep.mubr.bf16.mxu0 %v8294_v21  ;;  %3305 = vmatprep.mubr.bf16.mxu1 %v8295_v26 }
 0x1f1   : > { %3026 = vmatmul.mubr.bf16.gmra.mxu0 %v8292_v27  ;;  %3306 = vmatmul.mubr.bf16.gmra.mxu1 %v8297_v28 }
 0x1f2   : > { %3033 = vmatprep.mubr.bf16.mxu0 %v8300_v29  ;;  %3313 = vmatprep.mubr.bf16.mxu1 %v8301_v30 }
 0x1f9   : > { %3034 = vmatmul.mubr.bf16.gmra.mxu0 %v8298_v24  ;;  %3314 = vmatmul.mubr.bf16.gmra.mxu1 %v8303_v22 }
 0x1fa   : > { %3041 = vmatprep.mubr.bf16.mxu0 %v8306_v31  ;;  %3321 = vmatprep.mubr.bf16.mxu1 %v8307_v32 }
 0x201   : > { %3042 = vmatmul.mubr.bf16.gmra.mxu0 %v8304_v33  ;;  %3322 = vmatmul.mubr.bf16.gmra.mxu1 %v8309_v35  ;;  %v8340_v35 = vld [vmem:[%s12177_s27 + $0x1c0] ss:$8 sps:$4 sm:$0xff]  }
 0x202   : > { %3049 = vmatprep.mubr.bf16.mxu0 %v8312_v36  ;;  %3329 = vmatprep.mubr.bf16.mxu1 %v8313_v37  ;;  %v8343_v36 = vld [vmem:[%s12177_s27 + $0x3f0] ss:$8 sps:$4 sm:$0xff]  }
 0x209   : > { %3050 = vmatmul.mubr.bf16.gmra.mxu0 %v8310_v38  ;;  %3330 = vmatmul.mubr.bf16.gmra.mxu1 %v8315_v39  ;;  %v8348_v39 = vld [vmem:[%s12177_s27 + $0x1d4] ss:$8 sps:$4 sm:$0xff]  }
 0x20a   : > { %3057 = vmatprep.mubr.bf16.mxu0 %v8318_v40  ;;  %3337 = vmatprep.mubr.bf16.mxu1 %v8319_v41  ;;  %v8351_v40 = vld [vmem:[%s12177_s27 + $0x404] ss:$8 sps:$4 sm:$0xff]  }
 0x211   : > { %v9542_v47 = vpop.f32.mrf.mxu0  ;;  %3058 = vmatmul.mubr.bf16.gmra.mxu0 %v8316_v42  ;;  %v3147_v49 = vpop.f32.mrf.mxu1  ;;  %3338 = vmatmul.mubr.bf16.gmra.mxu1 %v8321_v43 }
 0x212   : > { %3065 = vmatprep.mubr.bf16.mxu0 %v8324_v45  ;;  %3345 = vmatprep.mubr.bf16.mxu1 %v8325_v46  ;;  %v4102_v29 = vmul.f32 %v9612_v20, %v3147_v49 }
 0x213   : > { %v2869_v50 = vpop.f32.mrf.mxu0  ;;  %v3149_v52 = vpop.f32.mrf.mxu1 }
 0x215   : > { %v9544_v53 = vpop.f32.mrf.mxu0  ;;  %v3150_v54 = vpop.f32.mrf.mxu1 }
 0x216   : > { %v4103_v37 = vmul.f32 %v9612_v20, %v3150_v54 }
 0x217   : > { %v2872_v61 = vpop.f32.mrf.mxu0  ;;  %v3152_v63 = vpop.f32.mrf.mxu1 }
 0x218   : > { %v8349_v61 = vld [vmem:[%s12177_s27 + $0x400] ss:$8 sps:$4 sm:$0xff]  }
 0x219   : > { %v9558_v58 = vpop.f32.mrf.mxu0  ;;  %3066 = vmatmul.mubr.bf16.gmra.mxu0 %v8322_v56  ;;  %v9560_v0 = vpop.f32.mrf.mxu1  ;;  %3346 = vmatmul.mubr.bf16.gmra.mxu1 %v8327_v57 }
 0x21a   : > { %3073 = vmatprep.mubr.bf16.mxu0 %v8330_v59  ;;  %3353 = vmatprep.mubr.bf16.mxu1 %v8331_v60  ;;  %v4104_v49 = vmul.f32 %v9612_v20, %v9560_v0  ;;  %v8346_v60 = vld [vmem:[%s12177_s27 + $0x1d0] ss:$8 sps:$4 sm:$0xff]  }
 0x21b   : > { %v2877_v2 = vpop.f32.mrf.mxu0  ;;  %v3157_v3 = vpop.f32.mrf.mxu1 }
 0x21c   : > { %v8354_v2 = vld [vmem:[%s12177_s27 + $0x1e4] ss:$8 sps:$4 sm:$0xff]   ;;  %v8357_v3 = vld [vmem:[%s12177_s27 + $0x414] ss:$8 sps:$4 sm:$0xff]  }
 0x21d   : > { %v9562_v62 = vpop.f32.mrf.mxu0  ;;  %v9564_v4 = vpop.f32.mrf.mxu1 }
 0x21e   : > { %v4105_v63 = vmul.f32 %v9612_v20, %v9564_v4 }
 0x21f   : > { %v2880_v8 = vpop.f32.mrf.mxu0  ;;  %v3160_v55 = vpop.f32.mrf.mxu1 }
 0x221   : > { %v9581_v34 = vpop.f32.mrf.mxu0  ;;  %3074 = vmatmul.mubr.bf16.gmra.mxu0 %v8328_v5  ;;  %v9583_v48 = vpop.f32.mrf.mxu1  ;;  %3354 = vmatmul.mubr.bf16.gmra.mxu1 %v8333_v6 }
 0x222   : > { %3081 = vmatprep.mubr.bf16.mxu0 %v8336_v44  ;;  %3361 = vmatprep.mubr.bf16.mxu1 %v8337_v7  ;;  %v4106_v4 = vmul.f32 %v9612_v20, %v9583_v48 }
 0x223   : > { %v2885_v12 = vpop.f32.mrf.mxu0  ;;  %v3165_v13 = vpop.f32.mrf.mxu1 }
 0x225   : > { %v9596_v14 = vpop.f32.mrf.mxu0  ;;  %v9598_v15 = vpop.f32.mrf.mxu1 }
 0x226   : > { %v4107_v48 = vmul.f32 %v9612_v20, %v9598_v15 }
 0x227   : > { %v2888_v21 = vpop.f32.mrf.mxu0  ;;  %v3168_v26 = vpop.f32.mrf.mxu1 }
 0x228   : > { %v8355_v21 = vld [vmem:[%s12177_s27 + $0x410] ss:$8 sps:$4 sm:$0xff]  }
 0x229   : > { %v2891_v27 = vpop.f32.mrf.mxu0  ;;  %3082 = vmatmul.mubr.bf16.gmra.mxu0 %v8334_v16  ;;  %v9620_v28 = vpop.f32.mrf.mxu1  ;;  %3362 = vmatmul.mubr.bf16.gmra.mxu1 %v8339_v17 }
 0x22a   : > { %v4030_v30 = vmul.f32 %v9608_v19, %v2891_v27  ;;  %3089 = vmatprep.mubr.bf16.mxu0 %v8342_v23  ;;  %3369 = vmatprep.mubr.bf16.mxu1 %v8345_v25  ;;  %v8352_v25 = vld [vmem:[%s12177_s27 + $0x1e0] ss:$8 sps:$4 sm:$0xff]   ;;  %v8360_v27 = vld [vmem:[%s12177_s27 + $0x1f4] ss:$8 sps:$4 sm:$0xff]   ;;  %v4108_v15 = vmul.f32 %v9612_v20, %v9620_v28 }
 0x22b   : > { %v2893_v24 = vpop.f32.mrf.mxu0  ;;  %v3173_v22 = vpop.f32.mrf.mxu1 }
 0x22c   : > { %v9624_v31 = vadd.f32 %v4102_v29, %v4030_v30  ;;  %v8363_v29 = vld [vmem:[%s12177_s27 + $0x424] ss:$8 sps:$4 sm:$0xff]  }
 0x22d   : > { %v2894_v32 = vpop.f32.mrf.mxu0  ;;  %v9626_v33 = vpop.f32.mrf.mxu1 }
 0x22e   : > { %v4031_v38 = vmul.f32 %v9608_v19, %v2894_v32  ;;  %v4109_v28 = vmul.f32 %v9612_v20, %v9626_v33 }
 0x22f   : > { %v2896_v41 = vpop.f32.mrf.mxu0  ;;  %v3176_v42 = vpop.f32.mrf.mxu1 }
 0x230   : > { %v9642_v43 = vadd.f32 %v4103_v37, %v4031_v38  ;;  %v8358_v42 = vld [vmem:[%s12177_s27 + $0x1f0] ss:$8 sps:$4 sm:$0xff]  }
 0x231   : > { %v2899_v45 = vpop.f32.mrf.mxu0  ;;  %3090 = vmatmul.mubr.bf16.gmra.mxu0 %v8340_v35  ;;  %v9644_v46 = vpop.f32.mrf.mxu1  ;;  %3370 = vmatmul.mubr.bf16.gmra.mxu1 %v8343_v36 }
 0x232   : > { %v4032_v50 = vmul.f32 %v9608_v19, %v2899_v45  ;;  %3097 = vmatprep.mubr.bf16.mxu0 %v8348_v39  ;;  %3377 = vmatprep.mubr.bf16.mxu1 %v8351_v40  ;;  %v8361_v45 = vld [vmem:[%s12177_s27 + $0x420] ss:$8 sps:$4 sm:$0xff]   ;;  %v4110_v33 = vmul.f32 %v9612_v20, %v9644_v46 }
 0x233   : > { %v2901_v52 = vpop.f32.mrf.mxu0  ;;  %v3181_v54 = vpop.f32.mrf.mxu1 }
 0x234   : > { %v9649_v56 = vadd.f32 %v4104_v49, %v4032_v50  ;;  %v8366_v50 = vld [vmem:[%s12177_s27 + $0x204] ss:$8 sps:$4 sm:$0xff]   ;;  %v8369_v52 = vld [vmem:[%s12177_s27 + $0x434] ss:$8 sps:$4 sm:$0xff]  }
 0x235   : > { %v2902_v57 = vpop.f32.mrf.mxu0  ;;  %v9651_v59 = vpop.f32.mrf.mxu1 }
 0x236   : > { %v4033_v0 = vmul.f32 %v9608_v19, %v2902_v57  ;;  %v4111_v46 = vmul.f32 %v9612_v20, %v9651_v59 }
 0x237   : > { %v2904_v5 = vpop.f32.mrf.mxu0  ;;  %v3184_v6 = vpop.f32.mrf.mxu1 }
 0x238   : > { %v9668_v44 = vadd.f32 %v4105_v63, %v4033_v0 }
 0x239   : > { %v2907_v7 = vpop.f32.mrf.mxu0  ;;  %3098 = vmatmul.mubr.bf16.gmra.mxu0 %v8346_v60  ;;  %v9670_v8 = vpop.f32.mrf.mxu1  ;;  %3378 = vmatmul.mubr.bf16.gmra.mxu1 %v8349_v61 }
 0x23a   : > { %v4034_v55 = vmul.f32 %v9608_v19, %v2907_v7  ;;  %3105 = vmatprep.mubr.bf16.mxu0 %v8354_v2  ;;  %3385 = vmatprep.mubr.bf16.mxu1 %v8357_v3  ;;  %v4112_v59 = vmul.f32 %v9612_v20, %v9670_v8 }
 0x23b   : > { %v2909_v12 = vpop.f32.mrf.mxu0  ;;  %v3189_v13 = vpop.f32.mrf.mxu1 }
 0x23c   : > { %v9675_v16 = vadd.f32 %v4106_v4, %v4034_v55  ;;  %v8364_v4 = vld [vmem:[%s12177_s27 + $0x200] ss:$8 sps:$4 sm:$0xff]   ;;  %v8367_v55 = vld [vmem:[%s12177_s27 + $0x430] ss:$8 sps:$4 sm:$0xff]   ;;  %v8372_v13 = vld [vmem:[%s12177_s27 + $0x214] ss:$8 sps:$4 sm:$0xff]  }
 0x23d   : > { %v2910_v17 = vpop.f32.mrf.mxu0  ;;  %v9677_v23 = vpop.f32.mrf.mxu1 }
 0x23e   : > { %v4035_v26 = vmul.f32 %v9608_v19, %v2910_v17  ;;  %v8375_v17 = vld [vmem:[%s12177_s27 + $0x444] ss:$8 sps:$4 sm:$0xff]   ;;  %v4113_v8 = vmul.f32 %v9612_v20, %v9677_v23 }
 0x23f   : > { %v2912_v30 = vpop.f32.mrf.mxu0  ;;  %v3192_v24 = vpop.f32.mrf.mxu1 }
 0x240   : > { %v9694_v22 = vadd.f32 %v4107_v48, %v4035_v26 }
 0x241   : > { %v2915_v32 = vpop.f32.mrf.mxu0  ;;  %3106 = vmatmul.mubr.bf16.gmra.mxu0 %v8352_v25  ;;  %v9696_v35 = vpop.f32.mrf.mxu1  ;;  %3386 = vmatmul.mubr.bf16.gmra.mxu1 %v8355_v21 }
 0x242   : > { %v4036_v36 = vmul.f32 %v9608_v19, %v2915_v32  ;;  %3113 = vmatprep.mubr.bf16.mxu0 %v8360_v27  ;;  %3393 = vmatprep.mubr.bf16.mxu1 %v8363_v29  ;;  %v4114_v23 = vmul.f32 %v9612_v20, %v9696_v35 }
 0x243   : > { %v2917_v37 = vpop.f32.mrf.mxu0  ;;  %v3197_v38 = vpop.f32.mrf.mxu1 }
 0x244   : > { %v9701_v39 = vadd.f32 %v4108_v15, %v4036_v36  ;;  %v8370_v37 = vld [vmem:[%s12177_s27 + $0x210] ss:$8 sps:$4 sm:$0xff]   ;;  %v8373_v38 = vld [vmem:[%s12177_s27 + $0x440] ss:$8 sps:$4 sm:$0xff]  }
 0x245   : > { %v2918_v40 = vpop.f32.mrf.mxu0  ;;  %v9703_v41 = vpop.f32.mrf.mxu1 }
 0x246   : > { %v4037_v49 = vmul.f32 %v9608_v19, %v2918_v40  ;;  %v4115_v35 = vmul.f32 %v9612_v20, %v9703_v41 }
 0x247   : > { %v2920_v54 = vpop.f32.mrf.mxu0  ;;  %v3200_v57 = vpop.f32.mrf.mxu1 }
 0x248   : > { %v9720_v60 = vadd.f32 %v4109_v28, %v4037_v49 }
 0x249   : > { %v2923_v61 = vpop.f32.mrf.mxu0  ;;  %3114 = vmatmul.mubr.bf16.gmra.mxu0 %v8358_v42  ;;  %v9722_v63 = vpop.f32.mrf.mxu1  ;;  %3394 = vmatmul.mubr.bf16.gmra.mxu1 %v8361_v45  ;;  %v8378_v42 = vld [vmem:[%s12177_s27 + $0x224] ss:$8 sps:$4 sm:$0xff]   ;;  %v8381_v45 = vld [vmem:[%s12177_s27 + $0x454] ss:$8 sps:$4 sm:$0xff]  }
 0x24a   : > { %v4038_v0 = vmul.f32 %v9608_v19, %v2923_v61  ;;  %3121 = vmatprep.mubr.bf16.mxu0 %v8366_v50  ;;  %3401 = vmatprep.mubr.bf16.mxu1 %v8369_v52 }
 0x24b   : > { %v2925_v2 = vpop.f32.mrf.mxu0  ;;  %v3205_v3 = vpop.f32.mrf.mxu1 }
 0x24c   : > { %v9727_v5 = vadd.f32 %v4110_v33, %v4038_v0 }
 0x24d   : > { %v2926_v6 = vpop.f32.mrf.mxu0  ;;  %v9729_v7 = vpop.f32.mrf.mxu1 }
 0x24e   : > { %v4039_v12 = vmul.f32 %v9608_v19, %v2926_v6  ;;  %v8376_v6 = vld [vmem:[%s12177_s27 + $0x220] ss:$8 sps:$4 sm:$0xff]  }
 0x24f   : > { %v2928_v25 = vpop.f32.mrf.mxu0  ;;  %v3208_v21 = vpop.f32.mrf.mxu1 }
 0x250   : > { %v9746_v48 = vadd.f32 %v4111_v46, %v4039_v12  ;;  %v8384_v46 = vld [vmem:[%s12177_s27 + $0x464] ss:$8 sps:$4 sm:$0xff]  }
 0x251   : > { %v2931_v26 = vpop.f32.mrf.mxu0  ;;  %3122 = vmatmul.mubr.bf16.gmra.mxu0 %v8364_v4  ;;  %v9748_v27 = vpop.f32.mrf.mxu1  ;;  %3402 = vmatmul.mubr.bf16.gmra.mxu1 %v8367_v55  ;;  %v8379_v4 = vld [vmem:[%s12177_s27 + $0x450] ss:$8 sps:$4 sm:$0xff]  }
 0x252   : > { %v4040_v29 = vmul.f32 %v9608_v19, %v2931_v26  ;;  %3129 = vmatprep.mubr.bf16.mxu0 %v8372_v13  ;;  %3409 = vmatprep.mubr.bf16.mxu1 %v8375_v17  ;;  %v4116_v26 = vmul.f32 %v9612_v20, %v9722_v63  ;;  %v8387_v63 = vld [vmem:[%s12177_s27 + $0x474] ss:$8 sps:$4 sm:$0xff]  }
 0x253   : > { %v2933_v30 = vpop.f32.mrf.mxu0  ;;  %v3213_v24 = vpop.f32.mrf.mxu1 }
 0x254   : > { %v9753_v32 = vadd.f32 %v4112_v59, %v4040_v29 }
 0x255   : > { %v2934_v15 = vpop.f32.mrf.mxu0  ;;  %v3214_v36 = vpop.f32.mrf.mxu1 }
 0x256   : > { %v4041_v40 = vmul.f32 %v9608_v19, %v2934_v15 }
 0x257   : > { %v2936_v28 = vpop.f32.mrf.mxu0  ;;  %v3216_v49 = vpop.f32.mrf.mxu1 }
 0x258   : > { %v9770_v50 = vadd.f32 %v4113_v8, %v4041_v40 }
 0x259   : > { %v2939_v52 = vpop.f32.mrf.mxu0  ;;  %3130 = vmatmul.mubr.bf16.gmra.mxu0 %v8370_v37  ;;  %v3219_v54 = vpop.f32.mrf.mxu1  ;;  %3410 = vmatmul.mubr.bf16.gmra.mxu1 %v8373_v38  ;;  %v8382_v37 = vld [vmem:[%s12177_s27 + $0x460] ss:$8 sps:$4 sm:$0xff]   ;;  %v4117_v38 = vmul.f32 %v9612_v20, %v9729_v7 }
 0x25a   : > { %v4042_v57 = vmul.f32 %v9608_v19, %v2939_v52  ;;  %3137 = vmatprep.mubr.bf16.mxu0 %v8378_v42  ;;  %3417 = vmatprep.mubr.bf16.mxu1 %v8381_v45  ;;  %v4118_v52 = vmul.f32 %v9612_v20, %v9748_v27  ;;  %v8390_v27 = vld [vmem:[%s12177_s27 + $0x484] ss:$8 sps:$4 sm:$0xff]  }
 0x25b   : > { %v2941_v61 = vpop.f32.mrf.mxu0  ;;  %v3221_v33 = vpop.f32.mrf.mxu1 }
 0x25c   : > { %v9775_v0 = vadd.f32 %v4114_v23, %v4042_v57 }
 0x25d   : > { %v2942_v2 = vpop.f32.mrf.mxu0  ;;  %v3222_v3 = vpop.f32.mrf.mxu1 }
 0x25e   : > { %v4043_v55 = vmul.f32 %v9608_v19, %v2942_v2 }
 0x25f   : > { %v2944_v12 = vpop.f32.mrf.mxu0  ;;  %v3224_v13 = vpop.f32.mrf.mxu1 }
 0x260   : > { %v9789_v17 = vadd.f32 %v4115_v35, %v4043_v55 }
 0x261   : > { %v2947_v25 = vpop.f32.mrf.mxu0  ;;  %3138 = vmatmul.mubr.bf16.gmra.mxu0 %v8376_v6  ;;  %v3227_v21 = vpop.f32.mrf.mxu1  ;;  %3418 = vmatmul.mubr.bf16.gmra.mxu1 %v8379_v4  ;;  %v8385_v6 = vld [vmem:[%s12177_s27 + $0x470] ss:$8 sps:$4 sm:$0xff]   ;;  %v4119_v4 = vmul.f32 %v9612_v20, %v3214_v36 }
 0x262   : > { %v4044_v59 = vmul.f32 %v9608_v19, %v2947_v25  ;;  %3425 = vmatprep.mubr.bf16.mxu1 %v8384_v46 }
 0x263   : > { %v2949_v41 = vpop.f32.mrf.mxu0  ;;  %v3229_v29 = vpop.f32.mrf.mxu1 }
 0x264   : > { %v9794_v30 = vadd.f32 %v4116_v26, %v4044_v59  ;;  %v4120_v26 = vmul.f32 %v9612_v20, %v3219_v54  ;;  %v8393_v54 = vld [vmem:[%s12177_s27 + $0x494] ss:$8 sps:$4 sm:$0xff]  }
 0x265   : > { %v2950_v24 = vpop.f32.mrf.mxu0  ;;  %v3230_v15 = vpop.f32.mrf.mxu1 }
 0x266   : > { %v4045_v8 = vmul.f32 %v9608_v19, %v2950_v24 }
 0x267   : > { %v2952_v40 = vpop.f32.mrf.mxu0  ;;  %v3232_v42 = vpop.f32.mrf.mxu1 }
 0x268   : > { %v9805_v45 = vadd.f32 %v4117_v38, %v4045_v8  ;;  %v8388_v38 = vld [vmem:[%s12177_s27 + $0x480] ss:$8 sps:$4 sm:$0xff]   ;;  %v4121_v8 = vmul.f32 %v9612_v20, %v3222_v3 }
 0x269   : > { %v2955_v28 = vpop.f32.mrf.mxu0  ;;  %v3235_v49 = vpop.f32.mrf.mxu1  ;;  %3426 = vmatmul.mubr.bf16.gmra.mxu1 %v8382_v37 }
 0x26a   : > { %v4046_v23 = vmul.f32 %v9608_v19, %v2955_v28  ;;  %3433 = vmatprep.mubr.bf16.mxu1 %v8387_v63 }
 0x26b   : > { %v2957_v7 = vpop.f32.mrf.mxu0  ;;  %v3237_v57 = vpop.f32.mrf.mxu1 }
 0x26c   : > { %v9810_v61 = vadd.f32 %v4118_v52, %v4046_v23  ;;  %v4122_v7 = vmul.f32 %v9612_v20, %v3227_v21  ;;  %v8396_v21 = vld [vmem:[%s12177_s27 + $0x4a4] ss:$8 sps:$4 sm:$0xff]  }
 0x26d   : > { %v2958_v33 = vpop.f32.mrf.mxu0  ;;  %v3238_v2 = vpop.f32.mrf.mxu1 }
 0x26e   : > { %v4047_v35 = vmul.f32 %v9608_v19, %v2958_v33 }
 0x26f   : > { %v2960_v55 = vpop.f32.mrf.mxu0  ;;  %v3240_v46 = vpop.f32.mrf.mxu1 }
 0x270   : > { %v9820_v12 = vadd.f32 %v4119_v4, %v4047_v35  ;;  %v4123_v55 = vmul.f32 %v9612_v20, %v3230_v15 }
 0x271   : > { %v2963_v13 = vpop.f32.mrf.mxu0  ;;  %v3243_v25 = vpop.f32.mrf.mxu1  ;;  %3434 = vmatmul.mubr.bf16.gmra.mxu1 %v8385_v6 }
 0x272   : > { %v4048_v59 = vmul.f32 %v9608_v19, %v2963_v13  ;;  %3441 = vmatprep.mubr.bf16.mxu1 %v8390_v27  ;;  %v8391_v27 = vld [vmem:[%s12177_s27 + $0x490] ss:$8 sps:$4 sm:$0xff]  }
 0x273   : > { %v2965_v41 = vpop.f32.mrf.mxu0  ;;  %v3245_v36 = vpop.f32.mrf.mxu1 }
 0x274   : > { %v9824_v29 = vadd.f32 %v4120_v26, %v4048_v59 }
 0x275   : > { %v2966_v24 = vpop.f32.mrf.mxu0  ;;  %v3246_v37 = vpop.f32.mrf.mxu1 }
 0x276   : > { %v4049_v63 = vmul.f32 %v9608_v19, %v2966_v24  ;;  %v4124_v24 = vmul.f32 %v9612_v20, %v3235_v49  ;;  %v8399_v49 = vld [vmem:[%s12177_s27 + $0x4b4] ss:$8 sps:$4 sm:$0xff]  }
 0x277   : > { %v2968_v40 = vpop.f32.mrf.mxu0  ;;  %v3248_v42 = vpop.f32.mrf.mxu1 }
 0x278   : > { %v9834_v28 = vadd.f32 %v4121_v8, %v4049_v63  ;;  %v8394_v42 = vld [vmem:[%s12177_s27 + $0x4a0] ss:$8 sps:$4 sm:$0xff]  }
 0x279   : > { %v2971_v52 = vpop.f32.mrf.mxu0  ;;  %v3251_v23 = vpop.f32.mrf.mxu1  ;;  %3442 = vmatmul.mubr.bf16.gmra.mxu1 %v8388_v38 }
 0x27a   : > { %v4050_v57 = vmul.f32 %v9608_v19, %v2971_v52  ;;  %3449 = vmatprep.mubr.bf16.mxu1 %v8393_v54  ;;  %v4125_v52 = vmul.f32 %v9612_v20, %v3238_v2 }
 0x27b   : > { %v2973_v33 = vpop.f32.mrf.mxu0  ;;  %v3253_v3 = vpop.f32.mrf.mxu1 }
 0x27c   : > { %v9838_v6 = vadd.f32 %v4122_v7, %v4050_v57 }
 0x27d   : > { %v2974_v4 = vpop.f32.mrf.mxu0  ;;  %v3254_v35 = vpop.f32.mrf.mxu1 }
 0x27e   : > { %v4051_v46 = vmul.f32 %v9608_v19, %v2974_v4 }
 0x27f   : > { %v2976_v13 = vpop.f32.mrf.mxu0  ;;  %v3256_v26 = vpop.f32.mrf.mxu1 }
 0x280   : > { %v9848_v59 = vadd.f32 %v4123_v55, %v4051_v46  ;;  %v4126_v55 = vmul.f32 %v9612_v20, %v3243_v25  ;;  %v9866_v46 = vsub.s32 3, %v9573_v51  ;;  %v4127_v25 = vmul.f32 %v9612_v20, %v3246_v37 }
 0x281   : > { %v2979_v41 = vpop.f32.mrf.mxu0  ;;  %v3259_v36 = vpop.f32.mrf.mxu1  ;;  %3450 = vmatmul.mubr.bf16.gmra.mxu1 %v8391_v27 }
 0x282   : > { %v4052_v38 = vmul.f32 %v9608_v19, %v2979_v41  ;;  %3457 = vmatprep.mubr.bf16.mxu1 %v8396_v21  ;;  %12183 = vst [vmem:[#allocation13_spill] sm:$0xff] %v9866_v46  ;;  %v9870_v21 = vsub.s32 1, %v9573_v51 }
 0x283   : > { %v2981_v8 = vpop.f32.mrf.mxu0  ;;  %v3261_v15 = vpop.f32.mrf.mxu1 }
 0x284   : > { %v9852_v63 = vadd.f32 %v4124_v24, %v4052_v38  ;;  %12184 = vst [vmem:[#allocation14_spill] sm:$0xff] %v9870_v21  ;;  %v8397_v8 = vld [vmem:[%s12177_s27 + $0x4b0] ss:$8 sps:$4 sm:$0xff]   ;;  %v9880_v15 = vrot.slane %v9594_v11, %v9866_v46 }
 0x285   : > { %v2982_v54 = vpop.f32.mrf.mxu0  ;;  %v3262_v40 = vpop.f32.mrf.mxu1 }
 0x286   : > { %v4053_v7 = vmul.f32 %v9608_v19, %v2982_v54 }
 0x287   : > { %v2984_v57 = vpop.f32.mrf.mxu0  ;;  %v3264_v33 = vpop.f32.mrf.mxu1 }
 0x288   : > { %v9862_v3 = vadd.f32 %v4125_v52, %v4053_v7  ;;  %v8402_v52 = vld [vmem:[%s12177_s27 + $0x4c4] ss:$8 sps:$4 sm:$0xff]  }
 0x289   : > { %v2987_v4 = vpop.f32.mrf.mxu0  ;;  %v3267_v27 = vpop.f32.mrf.mxu1  ;;  %3458 = vmatmul.mubr.bf16.gmra.mxu1 %v8394_v42  ;;  %v9885_v42 = vrot.slane %v9594_v11, %v9870_v21 }
 0x28a   : > { %v4054_v2 = vmul.f32 %v9608_v19, %v2987_v4  ;;  %3465 = vmatprep.mubr.bf16.mxu1 %v8399_v49  ;;  %v4164_v4 = vmul.f32 %v9880_v15, %v3251_v23  ;;  %v8405_v23 = vld [vmem:[%s12177_s27 + $0x4d4] ss:$8 sps:$4 sm:$0xff]  }
 0x28b   : > { %v2989_v13 = vpop.f32.mrf.mxu0  ;;  %v3269_v26 = vpop.f32.mrf.mxu1 }
 0x28c   : > { %v9872_v41 = vadd.f32 %v4126_v55, %v4054_v2 }
 0x28d   : > { %v2990_v24 = vpop.f32.mrf.mxu0  ;;  %v3270_v38 = vpop.f32.mrf.mxu1 }
 0x28e   : > { %v4055_v54 = vmul.f32 %v9608_v19, %v2990_v24 }
 0x28f   : > { %v2992_v7 = vpop.f32.mrf.mxu0  ;;  %v3272_v49 = vpop.f32.mrf.mxu1 }
 0x290   : > { %v9890_v57 = vadd.f32 %v4127_v25, %v4055_v54  ;;  %v8400_v7 = vld [vmem:[%s12177_s27 + $0x4c0] ss:$8 sps:$4 sm:$0xff]   ;;  %v4165_v25 = vmul.f32 %v9880_v15, %v3254_v35 }
 0x291   : > { %v2995_v33 = vpop.f32.mrf.mxu0  ;;  %v3275_v37 = vpop.f32.mrf.mxu1  ;;  %3466 = vmatmul.mubr.bf16.gmra.mxu1 %v8397_v8 }
 0x292   : > { %v4060_v55 = vmul.f32 %v9885_v42, %v2995_v33  ;;  %3473 = vmatprep.mubr.bf16.mxu1 %v8402_v52 }
 0x293   : > { %v2997_v2 = vpop.f32.mrf.mxu0  ;;  %v3277_v13 = vpop.f32.mrf.mxu1 }
 0x294   : > { %v9894_v11 = vadd.f32 %v4164_v4, %v4060_v55  ;;  %v4166_v55 = vmul.f32 %v9880_v15, %v3259_v36  ;;  %v8408_v36 = vld [vmem:[%s12177_s27 + $0x4e4] ss:$8 sps:$4 sm:$0xff]  }
 0x295   : > { %v2998_v26 = vpop.f32.mrf.mxu0  ;;  %v3278_v24 = vpop.f32.mrf.mxu1 }
 0x296   : > { %v4061_v54 = vmul.f32 %v9885_v42, %v2998_v26 }
 0x297   : > { %v3000_v8 = vpop.f32.mrf.mxu0  ;;  %v3280_v52 = vpop.f32.mrf.mxu1 }
 0x298   : > { %v9904_v49 = vadd.f32 %v4165_v25, %v4061_v54  ;;  %v8403_v8 = vld [vmem:[%s12177_s27 + $0x4d0] ss:$8 sps:$4 sm:$0xff]   ;;  %v4167_v25 = vmul.f32 %v9880_v15, %v3262_v40 }
 0x299   : > { %v3003_v33 = vpop.f32.mrf.mxu0  ;;  %v3283_v4 = vpop.f32.mrf.mxu1  ;;  %3474 = vmatmul.mubr.bf16.gmra.mxu1 %v8400_v7 }
 0x29a   : > { %v4062_v2 = vmul.f32 %v9885_v42, %v3003_v33  ;;  %3481 = vmatprep.mubr.bf16.mxu1 %v8405_v23 }
 0x29b   : > { %v3005_v13 = vpop.f32.mrf.mxu0  ;;  %v3285_v35 = vpop.f32.mrf.mxu1 }
 0x29c   : > { %v9908_v1 = vadd.f32 %v4166_v55, %v4062_v2  ;;  %v4168_v2 = vmul.f32 %v9880_v15, %v3267_v27  ;;  %v8411_v27 = vld [vmem:[%s12177_s27 + $0x4f4] ss:$8 sps:$4 sm:$0xff]  }
 0x29d   : > { %v3006_v26 = vpop.f32.mrf.mxu0  ;;  %v3286_v18 = vpop.f32.mrf.mxu1 }
 0x29e   : > { %v4063_v54 = vmul.f32 %v9885_v42, %v3006_v26 }
 0x29f   : > { %v3008_v7 = vpop.f32.mrf.mxu0  ;;  %v3288_v23 = vpop.f32.mrf.mxu1 }
 0x2a0   : > { %v9918_v52 = vadd.f32 %v4167_v25, %v4063_v54  ;;  %v8406_v7 = vld [vmem:[%s12177_s27 + $0x4e0] ss:$8 sps:$4 sm:$0xff]   ;;  %v4169_v25 = vmul.f32 %v9880_v15, %v3270_v38 }
 0x2a1   : > { %v3011_v33 = vpop.f32.mrf.mxu0  ;;  %v3291_v55 = vpop.f32.mrf.mxu1  ;;  %3482 = vmatmul.mubr.bf16.gmra.mxu1 %v8403_v8 }
 0x2a2   : > { %v4064_v13 = vmul.f32 %v9885_v42, %v3011_v33  ;;  %3489 = vmatprep.mubr.bf16.mxu1 %v8408_v36 }
 0x2a3   : > { %v3013_v35 = vpop.f32.mrf.mxu0  ;;  %v3293_v40 = vpop.f32.mrf.mxu1 }
 0x2a4   : > { %v9922_v46 = vadd.f32 %v4168_v2, %v4064_v13  ;;  %v4170_v13 = vmul.f32 %v9880_v15, %v3275_v37  ;;  %v8414_v37 = vld [vmem:[%s12177_s27 + $0x504] ss:$8 sps:$4 sm:$0xff]  }
 0x2a5   : > { %v3014_v26 = vpop.f32.mrf.mxu0  ;;  %v3294_v21 = vpop.f32.mrf.mxu1 }
 0x2a6   : > { %v4065_v54 = vmul.f32 %v9885_v42, %v3014_v26 }
 0x2a7   : > { %v3016_v8 = vpop.f32.mrf.mxu0  ;;  %v3296_v36 = vpop.f32.mrf.mxu1 }
 0x2a8   : > { %v9932_v23 = vadd.f32 %v4169_v25, %v4065_v54  ;;  %v8409_v8 = vld [vmem:[%s12177_s27 + $0x4f0] ss:$8 sps:$4 sm:$0xff]   ;;  %v4171_v25 = vmul.f32 %v9880_v15, %v3278_v24 }
 0x2a9   : > { %v3019_v33 = vpop.f32.mrf.mxu0  ;;  %v3299_v2 = vpop.f32.mrf.mxu1  ;;  %3490 = vmatmul.mubr.bf16.gmra.mxu1 %v8406_v7 }
 0x2aa   : > { %12185 = vst [vmem:[#allocation15_spill] sm:$0xff] %v9932_v23  ;;  %v4066_v35 = vmul.f32 %v9885_v42, %v3019_v33  ;;  %3497 = vmatprep.mubr.bf16.mxu1 %v8411_v27 }
 0x2ab   : > { %v3021_v40 = vpop.f32.mrf.mxu0  ;;  %v3301_v38 = vpop.f32.mrf.mxu1 }
 0x2ac   : > { %v9936_v10 = vadd.f32 %v4170_v13, %v4066_v35  ;;  %v4172_v35 = vmul.f32 %v9880_v15, %v3283_v4  ;;  %v8417_v4 = vld [vmem:[%s12177_s27 + $0x514] ss:$8 sps:$4 sm:$0xff]  }
 0x2ad   : > { %v3022_v26 = vpop.f32.mrf.mxu0  ;;  %v3302_v9 = vpop.f32.mrf.mxu1 }
 0x2ae   : > { %12186 = vst [vmem:[#allocation16_spill] sm:$0xff] %v9936_v10  ;;  %v4067_v54 = vmul.f32 %v9885_v42, %v3022_v26 }
 0x2af   : > { %v3024_v7 = vpop.f32.mrf.mxu0  ;;  %v3304_v27 = vpop.f32.mrf.mxu1 }
 0x2b0   : > { %v9946_v36 = vadd.f32 %v4171_v25, %v4067_v54  ;;  %v8412_v7 = vld [vmem:[%s12177_s27 + $0x500] ss:$8 sps:$4 sm:$0xff]   ;;  %v4173_v25 = vmul.f32 %v9880_v15, %v3286_v18 }
 0x2b1   : > { %v3027_v33 = vpop.f32.mrf.mxu0  ;;  %v3307_v13 = vpop.f32.mrf.mxu1  ;;  %3498 = vmatmul.mubr.bf16.gmra.mxu1 %v8409_v8 }
 0x2b2   : > { %12187 = vst [vmem:[#allocation17_spill] sm:$0xff] %v9946_v36  ;;  %v4068_v40 = vmul.f32 %v9885_v42, %v3027_v33  ;;  %3505 = vmatprep.mubr.bf16.mxu1 %v8414_v37 }
 0x2b3   : > { %v3029_v38 = vpop.f32.mrf.mxu0  ;;  %v3309_v24 = vpop.f32.mrf.mxu1 }
 0x2b4   : > { %v9950_v10 = vadd.f32 %v4172_v35, %v4068_v40  ;;  %v4174_v40 = vmul.f32 %v9880_v15, %v3291_v55  ;;  %v8420_v55 = vld [vmem:[%s12177_s27 + $0x524] ss:$8 sps:$4 sm:$0xff]  }
 0x2b5   : > { %v3030_v26 = vpop.f32.mrf.mxu0  ;;  %v3310_v23 = vpop.f32.mrf.mxu1 }
 0x2b6   : > { %12188 = vst [vmem:[#allocation18_spill] sm:$0xff] %v9950_v10  ;;  %v4069_v54 = vmul.f32 %v9885_v42, %v3030_v26 }
 0x2b7   : > { %v3032_v8 = vpop.f32.mrf.mxu0  ;;  %v3312_v37 = vpop.f32.mrf.mxu1 }
 0x2b8   : > { %v9960_v27 = vadd.f32 %v4173_v25, %v4069_v54  ;;  %v8415_v8 = vld [vmem:[%s12177_s27 + $0x510] ss:$8 sps:$4 sm:$0xff]   ;;  %v4175_v25 = vmul.f32 %v9880_v15, %v3294_v21 }
 0x2b9   : > { %v3035_v33 = vpop.f32.mrf.mxu0  ;;  %v3315_v35 = vpop.f32.mrf.mxu1  ;;  %3506 = vmatmul.mubr.bf16.gmra.mxu1 %v8412_v7 }
 0x2ba   : > { %12189 = vst [vmem:[#allocation19_spill] sm:$0xff] %v9960_v27  ;;  %v4070_v38 = vmul.f32 %v9885_v42, %v3035_v33  ;;  %3513 = vmatprep.mubr.bf16.mxu1 %v8417_v4 }
 0x2bb   : > { %v3037_v24 = vpop.f32.mrf.mxu0  ;;  %v3317_v18 = vpop.f32.mrf.mxu1 }
 0x2bc   : > { %v9964_v10 = vadd.f32 %v4174_v40, %v4070_v38  ;;  %v4176_v38 = vmul.f32 %v9880_v15, %v3299_v2  ;;  %v8423_v2 = vld [vmem:[%s12177_s27 + $0x534] ss:$8 sps:$4 sm:$0xff]  }
 0x2bd   : > { %v3038_v26 = vpop.f32.mrf.mxu0  ;;  %v3318_v36 = vpop.f32.mrf.mxu1 }
 0x2be   : > { %12190 = vst [vmem:[#allocation20_spill] sm:$0xff] %v9964_v10  ;;  %v4071_v54 = vmul.f32 %v9885_v42, %v3038_v26 }
 0x2bf   : > { %v3040_v7 = vpop.f32.mrf.mxu0  ;;  %v3320_v4 = vpop.f32.mrf.mxu1 }
 0x2c0   : > { %v9974_v37 = vadd.f32 %v4175_v25, %v4071_v54  ;;  %v8418_v7 = vld [vmem:[%s12177_s27 + $0x520] ss:$8 sps:$4 sm:$0xff]   ;;  %v4177_v25 = vmul.f32 %v9880_v15, %v3302_v9 }
 0x2c1   : > { %v3043_v33 = vpop.f32.mrf.mxu0  ;;  %v3323_v40 = vpop.f32.mrf.mxu1  ;;  %3514 = vmatmul.mubr.bf16.gmra.mxu1 %v8415_v8 }
 0x2c2   : > { %12191 = vst [vmem:[#allocation21_spill] sm:$0xff] %v9974_v37  ;;  %v4072_v24 = vmul.f32 %v9885_v42, %v3043_v33  ;;  %3521 = vmatprep.mubr.bf16.mxu1 %v8420_v55 }
 0x2c3   : > { %v3045_v18 = vpop.f32.mrf.mxu0  ;;  %v3325_v21 = vpop.f32.mrf.mxu1 }
 0x2c4   : > { %v9978_v10 = vadd.f32 %v4176_v38, %v4072_v24  ;;  %v4178_v24 = vmul.f32 %v9880_v15, %v3307_v13  ;;  %v8426_v13 = vld [vmem:[%s12177_s27 + $0x544] ss:$8 sps:$4 sm:$0xff]  }
 0x2c5   : > { %v3046_v26 = vpop.f32.mrf.mxu0  ;;  %v3326_v27 = vpop.f32.mrf.mxu1 }
 0x2c6   : > { %12192 = vst [vmem:[#allocation22_spill] sm:$0xff] %v9978_v10  ;;  %v4073_v54 = vmul.f32 %v9885_v42, %v3046_v26 }
 0x2c7   : > { %v3048_v8 = vpop.f32.mrf.mxu0  ;;  %v3328_v55 = vpop.f32.mrf.mxu1 }
 0x2c8   : > { %v9988_v4 = vadd.f32 %v4177_v25, %v4073_v54  ;;  %v8421_v8 = vld [vmem:[%s12177_s27 + $0x530] ss:$8 sps:$4 sm:$0xff]   ;;  %v4179_v25 = vmul.f32 %v9880_v15, %v3310_v23 }
 0x2c9   : > { %v3051_v33 = vpop.f32.mrf.mxu0  ;;  %v3331_v38 = vpop.f32.mrf.mxu1  ;;  %3522 = vmatmul.mubr.bf16.gmra.mxu1 %v8418_v7 }
 0x2ca   : > { %12193 = vst [vmem:[#allocation23_spill] sm:$0xff] %v9988_v4  ;;  %v4074_v18 = vmul.f32 %v9885_v42, %v3051_v33  ;;  %3529 = vmatprep.mubr.bf16.mxu1 %v8423_v2 }
 0x2cb   : > { %v3053_v21 = vpop.f32.mrf.mxu0  ;;  %v3333_v9 = vpop.f32.mrf.mxu1 }
 0x2cc   : > { %v9992_v10 = vadd.f32 %v4178_v24, %v4074_v18  ;;  %v4180_v18 = vmul.f32 %v9880_v15, %v3315_v35  ;;  %v8429_v35 = vld [vmem:[%s12177_s27 + $0x554] ss:$8 sps:$4 sm:$0xff]  }
 0x2cd   : > { %v3054_v26 = vpop.f32.mrf.mxu0  ;;  %v3334_v37 = vpop.f32.mrf.mxu1 }
 0x2ce   : > { %12194 = vst [vmem:[#allocation24_spill] sm:$0xff] %v9992_v10  ;;  %v4075_v54 = vmul.f32 %v9885_v42, %v3054_v26 }
 0x2cf   : > { %v3056_v7 = vpop.f32.mrf.mxu0  ;;  %v3336_v2 = vpop.f32.mrf.mxu1 }
 0x2d0   : > { %v10002_v55 = vadd.f32 %v4179_v25, %v4075_v54  ;;  %v8424_v7 = vld [vmem:[%s12177_s27 + $0x540] ss:$8 sps:$4 sm:$0xff]   ;;  %v4181_v25 = vmul.f32 %v9880_v15, %v3318_v36 }
 0x2d1   : > { %v3059_v33 = vpop.f32.mrf.mxu0  ;;  %v3339_v24 = vpop.f32.mrf.mxu1  ;;  %3530 = vmatmul.mubr.bf16.gmra.mxu1 %v8421_v8 }
 0x2d2   : > { %12195 = vst [vmem:[#allocation25_spill] sm:$0xff] %v10002_v55  ;;  %v4076_v21 = vmul.f32 %v9885_v42, %v3059_v33  ;;  %3537 = vmatprep.mubr.bf16.mxu1 %v8426_v13 }
 0x2d3   : > { %v3061_v9 = vpop.f32.mrf.mxu0  ;;  %v3341_v23 = vpop.f32.mrf.mxu1 }
 0x2d4   : > { %v10006_v10 = vadd.f32 %v4180_v18, %v4076_v21  ;;  %v4182_v21 = vmul.f32 %v9880_v15, %v3323_v40  ;;  %v8432_v40 = vld [vmem:[%s12177_s27 + $0x564] ss:$8 sps:$4 sm:$0xff]  }
 0x2d5   : > { %v3062_v26 = vpop.f32.mrf.mxu0  ;;  %v3342_v4 = vpop.f32.mrf.mxu1 }
 0x2d6   : > { %12196 = vst [vmem:[#allocation26_spill] sm:$0xff] %v10006_v10  ;;  %v4077_v54 = vmul.f32 %v9885_v42, %v3062_v26 }
 0x2d7   : > { %v3064_v8 = vpop.f32.mrf.mxu0  ;;  %v3344_v13 = vpop.f32.mrf.mxu1 }
 0x2d8   : > { %v10016_v2 = vadd.f32 %v4181_v25, %v4077_v54  ;;  %v8427_v8 = vld [vmem:[%s12177_s27 + $0x550] ss:$8 sps:$4 sm:$0xff]   ;;  %v4183_v25 = vmul.f32 %v9880_v15, %v3326_v27 }
 0x2d9   : > { %v3067_v33 = vpop.f32.mrf.mxu0  ;;  %v3347_v18 = vpop.f32.mrf.mxu1  ;;  %3538 = vmatmul.mubr.bf16.gmra.mxu1 %v8424_v7 }
 0x2da   : > { %12197 = vst [vmem:[#allocation27_spill] sm:$0xff] %v10016_v2  ;;  %v4078_v9 = vmul.f32 %v9885_v42, %v3067_v33  ;;  %3545 = vmatprep.mubr.bf16.mxu1 %v8429_v35 }
 0x2db   : > { %v3069_v23 = vpop.f32.mrf.mxu0  ;;  %v3349_v36 = vpop.f32.mrf.mxu1 }
 0x2dc   : > { %v10020_v10 = vadd.f32 %v4182_v21, %v4078_v9  ;;  %v4184_v9 = vmul.f32 %v9880_v15, %v3331_v38  ;;  %v8435_v38 = vld [vmem:[%s12177_s27 + $0x574] ss:$8 sps:$4 sm:$0xff]  }
 0x2dd   : > { %v3070_v26 = vpop.f32.mrf.mxu0  ;;  %v3350_v55 = vpop.f32.mrf.mxu1 }
 0x2de   : > { %12198 = vst [vmem:[#allocation28_spill] sm:$0xff] %v10020_v10  ;;  %v4079_v54 = vmul.f32 %v9885_v42, %v3070_v26 }
 0x2df   : > { %v3072_v7 = vpop.f32.mrf.mxu0  ;;  %v3352_v35 = vpop.f32.mrf.mxu1 }
 0x2e0   : > { %v10030_v13 = vadd.f32 %v4183_v25, %v4079_v54  ;;  %v8430_v7 = vld [vmem:[%s12177_s27 + $0x560] ss:$8 sps:$4 sm:$0xff]   ;;  %v4185_v25 = vmul.f32 %v9880_v15, %v3334_v37 }
 0x2e1   : > { %v3075_v33 = vpop.f32.mrf.mxu0  ;;  %v3355_v21 = vpop.f32.mrf.mxu1  ;;  %3546 = vmatmul.mubr.bf16.gmra.mxu1 %v8427_v8 }
 0x2e2   : > { %12199 = vst [vmem:[#allocation29_spill] sm:$0xff] %v10030_v13  ;;  %v4080_v23 = vmul.f32 %v9885_v42, %v3075_v33  ;;  %3553 = vmatprep.mubr.bf16.mxu1 %v8432_v40 }
 0x2e3   : > { %v3077_v36 = vpop.f32.mrf.mxu0  ;;  %v3357_v27 = vpop.f32.mrf.mxu1 }
 0x2e4   : > { %v10034_v10 = vadd.f32 %v4184_v9, %v4080_v23  ;;  %v4186_v23 = vmul.f32 %v9880_v15, %v3339_v24  ;;  %v8438_v24 = vld [vmem:[%s12177_s27 + $0x584] ss:$8 sps:$4 sm:$0xff]  }
 0x2e5   : > { %v3078_v26 = vpop.f32.mrf.mxu0  ;;  %v3358_v2 = vpop.f32.mrf.mxu1 }
 0x2e6   : > { %12200 = vst [vmem:[#allocation30_spill] sm:$0xff] %v10034_v10  ;;  %v4081_v54 = vmul.f32 %v9885_v42, %v3078_v26 }
 0x2e7   : > { %v3080_v8 = vpop.f32.mrf.mxu0  ;;  %v3360_v40 = vpop.f32.mrf.mxu1 }
 0x2e8   : > { %v10044_v35 = vadd.f32 %v4185_v25, %v4081_v54  ;;  %v8433_v8 = vld [vmem:[%s12177_s27 + $0x570] ss:$8 sps:$4 sm:$0xff]   ;;  %v4187_v25 = vmul.f32 %v9880_v15, %v3342_v4 }
 0x2e9   : > { %v3083_v33 = vpop.f32.mrf.mxu0  ;;  %v3363_v9 = vpop.f32.mrf.mxu1  ;;  %3554 = vmatmul.mubr.bf16.gmra.mxu1 %v8430_v7 }
 0x2ea   : > { %12201 = vst [vmem:[#allocation31_spill] sm:$0xff] %v10044_v35  ;;  %v4082_v36 = vmul.f32 %v9885_v42, %v3083_v33  ;;  %3561 = vmatprep.mubr.bf16.mxu1 %v8435_v38 }
 0x2eb   : > { %v3085_v27 = vpop.f32.mrf.mxu0  ;;  %v3365_v37 = vpop.f32.mrf.mxu1 }
 0x2ec   : > { %v10048_v10 = vadd.f32 %v4186_v23, %v4082_v36  ;;  %v4188_v36 = vmul.f32 %v9880_v15, %v3347_v18  ;;  %v8441_v18 = vld [vmem:[%s12177_s27 + $0x594] ss:$8 sps:$4 sm:$0xff]  }
 0x2ed   : > { %v3086_v26 = vpop.f32.mrf.mxu0  ;;  %v3366_v13 = vpop.f32.mrf.mxu1 }
 0x2ee   : > { %12202 = vst [vmem:[#allocation32_spill] sm:$0xff] %v10048_v10  ;;  %v4083_v54 = vmul.f32 %v9885_v42, %v3086_v26 }
 0x2ef   : > { %v3088_v7 = vpop.f32.mrf.mxu0  ;;  %v3368_v38 = vpop.f32.mrf.mxu1 }
 0x2f0   : > { %v10058_v40 = vadd.f32 %v4187_v25, %v4083_v54  ;;  %v8436_v7 = vld [vmem:[%s12177_s27 + $0x580] ss:$8 sps:$4 sm:$0xff]   ;;  %v4189_v25 = vmul.f32 %v9880_v15, %v3350_v55 }
 0x2f1   : > { %v3091_v33 = vpop.f32.mrf.mxu0  ;;  %v3371_v23 = vpop.f32.mrf.mxu1  ;;  %3562 = vmatmul.mubr.bf16.gmra.mxu1 %v8433_v8 }
 0x2f2   : > { %12203 = vst [vmem:[#allocation33_spill] sm:$0xff] %v10058_v40  ;;  %v4084_v27 = vmul.f32 %v9885_v42, %v3091_v33  ;;  %3569 = vmatprep.mubr.bf16.mxu1 %v8438_v24 }
 0x2f3   : > { %v3093_v37 = vpop.f32.mrf.mxu0  ;;  %v3373_v4 = vpop.f32.mrf.mxu1 }
 0x2f4   : > { %v10062_v10 = vadd.f32 %v4188_v36, %v4084_v27  ;;  %v4190_v27 = vmul.f32 %v9880_v15, %v3355_v21  ;;  %v8444_v21 = vld [vmem:[%s12177_s27 + $0x5a4] ss:$8 sps:$4 sm:$0xff]  }
 0x2f5   : > { %v3094_v26 = vpop.f32.mrf.mxu0  ;;  %v3374_v35 = vpop.f32.mrf.mxu1 }
 0x2f6   : > { %12204 = vst [vmem:[#allocation34_spill] sm:$0xff] %v10062_v10  ;;  %v4085_v54 = vmul.f32 %v9885_v42, %v3094_v26 }
 0x2f7   : > { %v3096_v8 = vpop.f32.mrf.mxu0  ;;  %v3376_v24 = vpop.f32.mrf.mxu1 }
 0x2f8   : > { %v10072_v38 = vadd.f32 %v4189_v25, %v4085_v54  ;;  %v8439_v25 = vld [vmem:[%s12177_s27 + $0x590] ss:$8 sps:$4 sm:$0xff]   ;;  %v4191_v54 = vmul.f32 %v9880_v15, %v3358_v2 }
 0x2f9   : > { %v3099_v33 = vpop.f32.mrf.mxu0  ;;  %v10074_v36 = vpop.f32.mrf.mxu1  ;;  %3570 = vmatmul.mubr.bf16.gmra.mxu1 %v8436_v7 }
 0x2fa   : > { %12205 = vst [vmem:[#allocation35_spill] sm:$0xff] %v10072_v38  ;;  %v4086_v37 = vmul.f32 %v9885_v42, %v3099_v33  ;;  %3577 = vmatprep.mubr.bf16.mxu1 %v8441_v18 }
 0x2fb   : > { %v3101_v55 = vpop.f32.mrf.mxu0  ;;  %v3381_v4 = vpop.f32.mrf.mxu1 }
 0x2fc   : > { %v10078_v26 = vadd.f32 %v4190_v27, %v4086_v37  ;;  %v4192_v37 = vmul.f32 %v9880_v15, %v3363_v9  ;;  %v8447_v9 = vld [vmem:[%s12177_s27 + $0x5b4] ss:$8 sps:$4 sm:$0xff]  }
 0x2fd   : > { %v3102_v10 = vpop.f32.mrf.mxu0  ;;  %v10080_v40 = vpop.f32.mrf.mxu1 }
 0x2fe   : > { %12206 = vst [vmem:[#allocation36_spill] sm:$0xff] %v10078_v26  ;;  %v4087_v7 = vmul.f32 %v9885_v42, %v3102_v10 }
 0x2ff   : > { %v3104_v18 = vpop.f32.mrf.mxu0  ;;  %v3384_v8 = vpop.f32.mrf.mxu1 }
 0x300   : > { %v10090_v24 = vadd.f32 %v4191_v54, %v4087_v7  ;;  %v8442_v54 = vld [vmem:[%s12177_s27 + $0x5a0] ss:$8 sps:$4 sm:$0xff]   ;;  %v4193_v7 = vmul.f32 %v9880_v15, %v3366_v13 }
 0x301   : > { %v3107_v33 = vpop.f32.mrf.mxu0  ;;  %v10092_v27 = vpop.f32.mrf.mxu1  ;;  %3578 = vmatmul.mubr.bf16.gmra.mxu1 %v8439_v25 }
 0x302   : > { %v4088_v55 = vmul.f32 %v9885_v42, %v3107_v33  ;;  %3585 = vmatprep.mubr.bf16.mxu1 %v8444_v21 }
 0x303   : > { %v3109_v2 = vpop.f32.mrf.mxu0  ;;  %v3389_v4 = vpop.f32.mrf.mxu1 }
 0x304   : > { %v10096_v10 = vadd.f32 %v4192_v37, %v4088_v55  ;;  %v4194_v55 = vmul.f32 %v9880_v15, %v3371_v23 }
 0x305   : > { %v3110_v26 = vpop.f32.mrf.mxu0  ;;  %v10098_v38 = vpop.f32.mrf.mxu1 }
 0x306   : > { %12207 = vst [vmem:[#allocation37_spill] sm:$0xff] %v10096_v10  ;;  %v4089_v25 = vmul.f32 %v9885_v42, %v3110_v26  ;;  %v10115_v26 = vsub.s32 4, %v9573_v51 }
 0x307   : > { %v3112_v21 = vpop.f32.mrf.mxu0  ;;  %v3392_v18 = vpop.f32.mrf.mxu1 }
 0x308   : > { %v10108_v8 = vadd.f32 %v4193_v7, %v4089_v25  ;;  %12208 = vst [vmem:[#allocation38_spill] sm:$0xff] %v10115_v26  ;;  %v8445_v7 = vld [vmem:[%s12177_s27 + $0x5b0] ss:$8 sps:$4 sm:$0xff]   ;;  %v8450_v25 = vld [vmem:[%s12177_s27 + $0x5c4] ss:$8 sps:$4 sm:$0xff]  }
 0x309   : > { %v3115_v33 = vpop.f32.mrf.mxu0  ;;  %v10110_v37 = vpop.f32.mrf.mxu1  ;;  %3586 = vmatmul.mubr.bf16.gmra.mxu1 %v8442_v54  ;;  %v4195_v54 = vmul.f32 %v9880_v15, %v3374_v35 }
 0x30a   : > { %v4090_v2 = vmul.f32 %v9885_v42, %v3115_v33  ;;  %3593 = vmatprep.mubr.bf16.mxu1 %v8447_v9 }
 0x30b   : > { %v3117_v13 = vpop.f32.mrf.mxu0  ;;  %v3397_v4 = vpop.f32.mrf.mxu1 }
 0x30c   : > { %v10117_v10 = vadd.f32 %v4194_v55, %v4090_v2  ;;  %v4024_v55 = vmul.f32 %v9608_v19, %v9542_v47  ;;  %v10134_v2 = vld [vmem:[%s12182_s1] sm:$0xff] }
 0x30d   : > { %v3118_v21 = vpop.f32.mrf.mxu0  ;;  %v10119_v18 = vpop.f32.mrf.mxu1  ;;  %v10138_v13 = vrot.slane %v10134_v2, %v10115_v26 }
 0x30e   : > { %12209 = vst [vmem:[#allocation39_spill] sm:$0xff] %v10117_v10  ;;  %v4091_v23 = vmul.f32 %v9885_v42, %v3118_v21 }
 0x30f   : > { %v3120_v9 = vpop.f32.mrf.mxu0  ;;  %v3400_v33 = vpop.f32.mrf.mxu1  ;;  %v4232_v10 = vmul.f32 %v10138_v13, %v10074_v36 }
 0x310   : > { %v10140_v15 = vadd.f32 %v4195_v54, %v4091_v23  ;;  %v4025_v33 = vmul.f32 %v9608_v19, %v9544_v53  ;;  %v8453_v53 = vld [vmem:[%s12177_s27 + $0x5d4] ss:$8 sps:$4 sm:$0xff]  }
 0x311   : > { %v3123_v42 = vpop.f32.mrf.mxu0  ;;  %v3403_v35 = vpop.f32.mrf.mxu1  ;;  %3594 = vmatmul.mubr.bf16.gmra.mxu1 %v8445_v7  ;;  %v8448_v7 = vld [vmem:[%s12177_s27 + $0x5c0] ss:$8 sps:$4 sm:$0xff]  }
 0x312   : > { %12210 = vst [vmem:[#allocation40_spill] sm:$0xff] %v10140_v15  ;;  %v4096_v4 = vmul.f32 %v9612_v20, %v3123_v42  ;;  %v4238_v21 = vmul.f32 %v10138_v13, %v3403_v35  ;;  %3601 = vmatprep.mubr.bf16.mxu1 %v8450_v25 }
 0x313   : > { %v3125_v47 = vpop.f32.mrf.mxu0  ;;  %v3405_v9 = vpop.f32.mrf.mxu1 }
 0x314   : > { %v4128_v26 = vadd.f32 %v4096_v4, %v4024_v55  ;;  %v10149_v54 = vadd.f32 %v4238_v21, %v9624_v31  ;;  %v4026_v31 = vmul.f32 %v9608_v19, %v9558_v58  ;;  %v4233_v4 = vmul.f32 %v10138_v13, %v10080_v40 }
 0x315   : > { %v3126_v23 = vpop.f32.mrf.mxu0  ;;  %v3406_v15 = vpop.f32.mrf.mxu1  ;;  %v4027_v58 = vmul.f32 %v9608_v19, %v9562_v62  ;;  %v4234_v40 = vmul.f32 %v10138_v13, %v10092_v27  ;;  %v8456_v62 = vld [vmem:[%s12177_s27 + $0x5e4] ss:$8 sps:$4 sm:$0xff]  }
 0x316   : > { %v4097_v25 = vmul.f32 %v9612_v20, %v3126_v23  ;;  %v4239_v42 = vmul.f32 %v10138_v13, %v3406_v15  ;;  %v10159_v35 = vadd.f32 %v4232_v10, %v4128_v26 }
 0x317   : > { %v3128_v36 = vpop.f32.mrf.mxu0  ;;  %v3408_v55 = vpop.f32.mrf.mxu1 }
 0x318   : > { %v4129_v21 = vadd.f32 %v4097_v25, %v4025_v33  ;;  %v10166_v47 = vadd.f32 %v4239_v42, %v9642_v43  ;;  %v8451_v42 = vld [vmem:[%s12177_s27 + $0x5d0] ss:$8 sps:$4 sm:$0xff]  }
 0x319   : > { %v3131_v9 = vpop.f32.mrf.mxu0  ;;  %v3411_v15 = vpop.f32.mrf.mxu1  ;;  %3602 = vmatmul.mubr.bf16.gmra.mxu1 %v8448_v7 }
 0x31a   : > { %v4098_v23 = vmul.f32 %v9612_v20, %v3131_v9  ;;  %v4240_v10 = vmul.f32 %v10138_v13, %v3411_v15  ;;  %3609 = vmatprep.mubr.bf16.mxu1 %v8453_v53  ;;  %v10170_v26 = vadd.f32 %v4233_v4, %v4129_v21  ;;  %v4235_v9 = vmul.f32 %v10138_v13, %v10098_v38 }
 0x31b   : > { %v3133_v36 = vpop.f32.mrf.mxu0  ;;  %v3413_v55 = vpop.f32.mrf.mxu1  ;;  %v4236_v38 = vmul.f32 %v10138_v13, %v10110_v37 }
 0x31c   : > { %v4130_v43 = vadd.f32 %v4098_v23, %v4026_v31  ;;  %v10177_v33 = vadd.f32 %v4240_v10, %v9649_v56  ;;  %v4028_v56 = vmul.f32 %v9608_v19, %v9581_v34  ;;  %v4029_v34 = vmul.f32 %v9608_v19, %v9596_v14  ;;  %v8459_v14 = vld [vmem:[%s12177_s27 + $0x5f4] ss:$8 sps:$4 sm:$0xff]  }
 0x31d   : > { %v3134_v7 = vpop.f32.mrf.mxu0  ;;  %v3414_v25 = vpop.f32.mrf.mxu1 }
 0x31e   : > { %v4099_v53 = vmul.f32 %v9612_v20, %v3134_v7  ;;  %v4241_v4 = vmul.f32 %v10138_v13, %v3414_v25  ;;  %v10187_v21 = vadd.f32 %v4234_v40, %v4130_v43 }
 0x31f   : > { %v3136_v27 = vpop.f32.mrf.mxu0  ;;  %v3416_v31 = vpop.f32.mrf.mxu1 }
 0x320   : > { %v4131_v15 = vadd.f32 %v4099_v53, %v4027_v58  ;;  %v10194_v23 = vadd.f32 %v4241_v4, %v9668_v44  ;;  %v8454_v4 = vld [vmem:[%s12177_s27 + $0x5e0] ss:$8 sps:$4 sm:$0xff]  }
 0x321   : > { %v3139_v10 = vpop.f32.mrf.mxu0  ;;  %v3419_v36 = vpop.f32.mrf.mxu1  ;;  %3610 = vmatmul.mubr.bf16.gmra.mxu1 %v8451_v42 }
 0x322   : > { %v4100_v55 = vmul.f32 %v9612_v20, %v3139_v10  ;;  %v4242_v40 = vmul.f32 %v10138_v13, %v3419_v36  ;;  %3617 = vmatprep.mubr.bf16.mxu1 %v8456_v62  ;;  %v10198_v43 = vadd.f32 %v4235_v9, %v4131_v15 }
 0x323   : > { %v3141_v7 = vpop.f32.mrf.mxu0  ;;  %v3421_v25 = vpop.f32.mrf.mxu1 }
 0x324   : > { %v4132_v44 = vadd.f32 %v4100_v55, %v4028_v56  ;;  %v10205_v58 = vadd.f32 %v4242_v40, %v9675_v16  ;;  %v4237_v16 = vmul.f32 %v10138_v13, %v10119_v18  ;;  %v8457_v18 = vld [vmem:[%s12177_s27 + $0x5f0] ss:$8 sps:$4 sm:$0xff]  }
 0x325   : > { %v3142_v42 = vpop.f32.mrf.mxu0  ;;  %v3422_v53 = vpop.f32.mrf.mxu1 }
 0x326   : > { %v4101_v62 = vmul.f32 %v9612_v20, %v3142_v42  ;;  %v4243_v27 = vmul.f32 %v10138_v13, %v3422_v53  ;;  %v10215_v19 = vadd.f32 %v4236_v38, %v4132_v44 }
 0x327   : > { %v3424_v37 = vpop.f32.mrf.mxu1  ;;  %v3144_v31 = vpop.f32.mrf.mxu0 }
 0x328   : > { %v4133_v56 = vadd.f32 %v4101_v62, %v4029_v34  ;;  %v10220_v9 = vadd.f32 %v4243_v27, %v9694_v22  ;;  %v8462_v22 = vld [vmem:[%s12177_s27 + $0x604] ss:$8 sps:$4 sm:$0xff]  }
 0x329   : > { %v3427_v15 = vpop.f32.mrf.mxu1  ;;  %3618 = vmatmul.mubr.bf16.gmra.mxu1 %v8454_v4  ;;  %v8460_v4 = vld [vmem:[%s12177_s27 + $0x600] ss:$8 sps:$4 sm:$0xff]  }
 0x32a   : > { %v4244_v20 = vmul.f32 %v10138_v13, %v3427_v15  ;;  %3625 = vmatprep.mubr.bf16.mxu1 %v8459_v14  ;;  %v10223_v10 = vadd.f32 %v4237_v16, %v4133_v56  ;;  %v8463_v15 = vld [vmem:[%s12177_s27 + $0x610] ss:$8 sps:$4 sm:$0xff]  }
 0x32b   : > { %v3429_v36 = vpop.f32.mrf.mxu1 }
 0x32c   : > { %v10226_v55 = vadd.f32 %v4244_v20, %v9701_v39 }
 0x32d   : > { %v3430_v40 = vpop.f32.mrf.mxu1 }
 0x32e   : > { %v4245_v7 = vmul.f32 %v10138_v13, %v3430_v40 }
 0x32f   : > { %v3432_v25 = vpop.f32.mrf.mxu1 }
 0x330   : > { %v10236_v34 = vadd.f32 %v4245_v7, %v9720_v60  ;;  %v8465_v60 = vld [vmem:[%s12177_s27 + $0x614] ss:$8 sps:$4 sm:$0xff]  }
 0x331   : > { %v3435_v38 = vpop.f32.mrf.mxu1  ;;  %3626 = vmatmul.mubr.bf16.gmra.mxu1 %v8457_v18 }
 0x332   : > { %v4246_v39 = vmul.f32 %v10138_v13, %v3435_v38  ;;  %3633 = vmatprep.mubr.bf16.mxu1 %v8462_v22  ;;  %v8466_v38 = vld [vmem:[%s12177_s27 + $0x620] ss:$8 sps:$4 sm:$0xff]  }
 0x333   : > { %v3437_v44 = vpop.f32.mrf.mxu1 }
 0x334   : > { %v10240_v42 = vadd.f32 %v4246_v39, %v9727_v5 }
 0x335   : > { %v3438_v53 = vpop.f32.mrf.mxu1 }
 0x336   : > { %v4247_v62 = vmul.f32 %v10138_v13, %v3438_v53 }
 0x337   : > { %v3440_v27 = vpop.f32.mrf.mxu1 }
 0x338   : > { %v10250_v14 = vadd.f32 %v4247_v62, %v9746_v48  ;;  %v8468_v48 = vld [vmem:[%s12177_s27 + $0x624] ss:$8 sps:$4 sm:$0xff]  }
 0x339   : > { %v3443_v37 = vpop.f32.mrf.mxu1  ;;  %3634 = vmatmul.mubr.bf16.gmra.mxu1 %v8460_v4 }
 0x33a   : > { %v4248_v5 = vmul.f32 %v10138_v13, %v3443_v37  ;;  %3641 = vmatprep.mubr.bf16.mxu1 %v8465_v60  ;;  %v8469_v37 = vld [vmem:[%s12177_s27 + $0x630] ss:$8 sps:$4 sm:$0xff]  }
 0x33b   : > { %v3445_v31 = vpop.f32.mrf.mxu1 }
 0x33c   : > { %v10254_v16 = vadd.f32 %v4248_v5, %v9753_v32 }
 0x33d   : > { %v3446_v56 = vpop.f32.mrf.mxu1 }
 0x33e   : > { %v4249_v20 = vmul.f32 %v10138_v13, %v3446_v56 }
 0x33f   : > { %v3448_v36 = vpop.f32.mrf.mxu1 }
 0x340   : > { %v10264_v40 = vadd.f32 %v4249_v20, %v9770_v50  ;;  %v8471_v50 = vld [vmem:[%s12177_s27 + $0x634] ss:$8 sps:$4 sm:$0xff]  }
 0x341   : > { %v3451_v18 = vpop.f32.mrf.mxu1  ;;  %3642 = vmatmul.mubr.bf16.gmra.mxu1 %v8463_v15 }
 0x342   : > { %v4250_v32 = vmul.f32 %v10138_v13, %v3451_v18  ;;  %3649 = vmatprep.mubr.bf16.mxu1 %v8468_v48  ;;  %v8472_v18 = vld [vmem:[%s12177_s27 + $0x640] ss:$8 sps:$4 sm:$0xff]  }
 0x343   : > { %v3453_v7 = vpop.f32.mrf.mxu1 }
 0x344   : > { %v10268_v22 = vadd.f32 %v4250_v32, %v9775_v0 }
 0x345   : > { %v3454_v25 = vpop.f32.mrf.mxu1 }
 0x346   : > { %v4251_v39 = vmul.f32 %v10138_v13, %v3454_v25 }
 0x347   : > { %v3456_v44 = vpop.f32.mrf.mxu1 }
 0x348   : > { %v10278_v53 = vadd.f32 %v4251_v39, %v9789_v17  ;;  %v8474_v17 = vld [vmem:[%s12177_s27 + $0x644] ss:$8 sps:$4 sm:$0xff]  }
 0x349   : > { %v3459_v4 = vpop.f32.mrf.mxu1  ;;  %3650 = vmatmul.mubr.bf16.gmra.mxu1 %v8466_v38 }
 0x34a   : > { %v4252_v0 = vmul.f32 %v10138_v13, %v3459_v4  ;;  %3657 = vmatprep.mubr.bf16.mxu1 %v8471_v50  ;;  %v8475_v4 = vld [vmem:[%s12177_s27 + $0x650] ss:$8 sps:$4 sm:$0xff]  }
 0x34b   : > { %v3461_v62 = vpop.f32.mrf.mxu1 }
 0x34c   : > { %v10282_v60 = vadd.f32 %v4252_v0, %v9794_v30 }
 0x34d   : > { %v3462_v27 = vpop.f32.mrf.mxu1 }
 0x34e   : > { %v4253_v5 = vmul.f32 %v10138_v13, %v3462_v27 }
 0x34f   : > { %v3464_v31 = vpop.f32.mrf.mxu1 }
 0x350   : > { %v10292_v56 = vadd.f32 %v4253_v5, %v9805_v45  ;;  %v8477_v45 = vld [vmem:[%s12177_s27 + $0x654] ss:$8 sps:$4 sm:$0xff]  }
 0x351   : > { %v3467_v15 = vpop.f32.mrf.mxu1  ;;  %3658 = vmatmul.mubr.bf16.gmra.mxu1 %v8469_v37 }
 0x352   : > { %v4254_v30 = vmul.f32 %v10138_v13, %v3467_v15  ;;  %3665 = vmatprep.mubr.bf16.mxu1 %v8474_v17  ;;  %v8478_v15 = vld [vmem:[%s12177_s27 + $0x660] ss:$8 sps:$4 sm:$0xff]  }
 0x353   : > { %v3469_v20 = vpop.f32.mrf.mxu1 }
 0x354   : > { %v10296_v48 = vadd.f32 %v4254_v30, %v9810_v61 }
 0x355   : > { %v3470_v36 = vpop.f32.mrf.mxu1 }
 0x356   : > { %v4255_v32 = vmul.f32 %v10138_v13, %v3470_v36 }
 0x357   : > { %v3472_v7 = vpop.f32.mrf.mxu1 }
 0x358   : > { %v10306_v25 = vadd.f32 %v4255_v32, %v9820_v12  ;;  %v8480_v12 = vld [vmem:[%s12177_s27 + $0x664] ss:$8 sps:$4 sm:$0xff]  }
 0x359   : > { %v3475_v38 = vpop.f32.mrf.mxu1  ;;  %3666 = vmatmul.mubr.bf16.gmra.mxu1 %v8472_v18 }
 0x35a   : > { %v4256_v61 = vmul.f32 %v10138_v13, %v3475_v38  ;;  %3673 = vmatprep.mubr.bf16.mxu1 %v8477_v45  ;;  %v8481_v38 = vld [vmem:[%s12177_s27 + $0x670] ss:$8 sps:$4 sm:$0xff]  }
 0x35b   : > { %v3477_v39 = vpop.f32.mrf.mxu1 }
 0x35c   : > { %v10310_v50 = vadd.f32 %v4256_v61, %v9824_v29 }
 0x35d   : > { %v3478_v44 = vpop.f32.mrf.mxu1 }
 0x35e   : > { %v4257_v0 = vmul.f32 %v10138_v13, %v3478_v44 }
 0x35f   : > { %v3480_v62 = vpop.f32.mrf.mxu1 }
 0x360   : > { %v10320_v27 = vadd.f32 %v4257_v0, %v9834_v28  ;;  %v8483_v28 = vld [vmem:[%s12177_s27 + $0x674] ss:$8 sps:$4 sm:$0xff]   ;;  %v10352_v0 = vsub.s32 5, %v9573_v51 }
 0x361   : > { %v3483_v37 = vpop.f32.mrf.mxu1  ;;  %3674 = vmatmul.mubr.bf16.gmra.mxu1 %v8475_v4 }
 0x362   : > { %v4258_v29 = vmul.f32 %v10138_v13, %v3483_v37  ;;  %3681 = vmatprep.mubr.bf16.mxu1 %v8480_v12  ;;  %12211 = vst [vmem:[#allocation41_spill] sm:$0xff] %v10352_v0 }
 0x363   : > { %v3485_v5 = vpop.f32.mrf.mxu1 }
 0x364   : > { %v10324_v17 = vadd.f32 %v4258_v29, %v9838_v6  ;;  %v8484_v29 = vld [vmem:[%s12177_s27 + $0x680] ss:$8 sps:$4 sm:$0xff]   ;;  %v10363_v5 = vrot.slane %v10134_v2, %v10352_v0 }
 0x365   : > { %v3486_v31 = vpop.f32.mrf.mxu1 }
 0x366   : > { %v4259_v30 = vmul.f32 %v10138_v13, %v3486_v31  ;;  %v8489_v31 = vld [vmem:[%s12177_s27 + $0x694] ss:$8 sps:$4 sm:$0xff]  }
 0x367   : > { %v3488_v20 = vpop.f32.mrf.mxu1 }
 0x368   : > { %v10334_v36 = vadd.f32 %v4259_v30, %v9848_v59  ;;  %v8486_v59 = vld [vmem:[%s12177_s27 + $0x684] ss:$8 sps:$4 sm:$0xff]  }
 0x369   : > { %v3491_v18 = vpop.f32.mrf.mxu1  ;;  %3682 = vmatmul.mubr.bf16.gmra.mxu1 %v8478_v15 }
 0x36a   : > { %v4260_v6 = vmul.f32 %v10138_v13, %v3491_v18  ;;  %3689 = vmatprep.mubr.bf16.mxu1 %v8483_v28 }
 0x36b   : > { %v3493_v32 = vpop.f32.mrf.mxu1 }
 0x36c   : > { %v10338_v45 = vadd.f32 %v4260_v6, %v9852_v63  ;;  %v8487_v6 = vld [vmem:[%s12177_s27 + $0x690] ss:$8 sps:$4 sm:$0xff]  }
 0x36d   : > { %v3494_v7 = vpop.f32.mrf.mxu1 }
 0x36e   : > { %v4261_v61 = vmul.f32 %v10138_v13, %v3494_v7 }
 0x36f   : > { %v3496_v39 = vpop.f32.mrf.mxu1 }
 0x370   : > { %v10348_v44 = vadd.f32 %v4261_v61, %v9862_v3 }
 0x371   : > { %v3499_v4 = vpop.f32.mrf.mxu1  ;;  %3690 = vmatmul.mubr.bf16.gmra.mxu1 %v8481_v38 }
 0x372   : > { %v4262_v63 = vmul.f32 %v10138_v13, %v3499_v4  ;;  %3697 = vmatprep.mubr.bf16.mxu1 %v8486_v59 }
 0x373   : > { %v3501_v12 = vpop.f32.mrf.mxu1 }
 0x374   : > { %v10355_v62 = vadd.f32 %v4262_v63, %v9872_v41  ;;  %v8490_v63 = vld [vmem:[%s12177_s27 + $0x6a0] ss:$8 sps:$4 sm:$0xff]  }
 0x375   : > { %v3502_v37 = vpop.f32.mrf.mxu1 }
 0x376   : > { %v4263_v3 = vmul.f32 %v10138_v13, %v3502_v37 }
 0x377   : > { %v3504_v15 = vpop.f32.mrf.mxu1 }
 0x378   : > { %v10369_v30 = vadd.f32 %v4263_v3, %v9890_v57  ;;  %v8492_v57 = vld [vmem:[%s12177_s27 + $0x6a4] ss:$8 sps:$4 sm:$0xff]  }
 0x379   : > { %v3507_v41 = vpop.f32.mrf.mxu1  ;;  %3698 = vmatmul.mubr.bf16.gmra.mxu1 %v8484_v29 }
 0x37a   : > { %v4300_v28 = vmul.f32 %v10363_v5, %v3507_v41  ;;  %3705 = vmatprep.mubr.bf16.mxu1 %v8489_v31 }
 0x37b   : > { %v3509_v20 = vpop.f32.mrf.mxu1 }
 0x37c   : > { %v10373_v13 = vadd.f32 %v4300_v28, %v9894_v11  ;;  %v8493_v28 = vld [vmem:[%s12177_s27 + $0x6b0] ss:$8 sps:$4 sm:$0xff]  }
 0x37d   : > { %v3510_v18 = vpop.f32.mrf.mxu1 }
 0x37e   : > { %v4301_v32 = vmul.f32 %v10363_v5, %v3510_v18 }
 0x37f   : > { %v3512_v7 = vpop.f32.mrf.mxu1 }
 0x380   : > { %v10383_v38 = vadd.f32 %v4301_v32, %v9904_v49  ;;  %v8495_v49 = vld [vmem:[%s12177_s27 + $0x6b4] ss:$8 sps:$4 sm:$0xff]  }
 0x381   : > { %v3515_v61 = vpop.f32.mrf.mxu1  ;;  %3706 = vmatmul.mubr.bf16.gmra.mxu1 %v8487_v6  ;;  %v12212_v6 = vld [vmem:[#allocation15_spill] sm:$0xff] }
 0x382   : > { %v4302_v11 = vmul.f32 %v10363_v5, %v3515_v61  ;;  %3713 = vmatprep.mubr.bf16.mxu1 %v8492_v57  ;;  %v12213_v61 = vld [vmem:[#allocation16_spill] sm:$0xff] }
 0x383   : > { %v3517_v59 = vpop.f32.mrf.mxu1 }
 0x384   : > { %v10387_v39 = vadd.f32 %v4302_v11, %v9908_v1 }
 0x385   : > { %v3518_v4 = vpop.f32.mrf.mxu1 }
 0x386   : > { %v4303_v12 = vmul.f32 %v10363_v5, %v3518_v4  ;;  %v8496_v4 = vld [vmem:[%s12177_s27 + $0x6c0] ss:$8 sps:$4 sm:$0xff]  }
 0x387   : > { %v3520_v37 = vpop.f32.mrf.mxu1 }
 0x388   : > { %v10397_v29 = vadd.f32 %v4303_v12, %v9918_v52  ;;  %v8498_v52 = vld [vmem:[%s12177_s27 + $0x6c4] ss:$8 sps:$4 sm:$0xff]   ;;  %v8501_v12 = vld [vmem:[%s12177_s27 + $0x6d4] ss:$8 sps:$4 sm:$0xff]  }
 0x389   : > { %v3523_v3 = vpop.f32.mrf.mxu1  ;;  %3714 = vmatmul.mubr.bf16.gmra.mxu1 %v8490_v63  ;;  %v12214_v37 = vld [vmem:[#allocation17_spill] sm:$0xff] }
 0x38a   : > { %v4304_v1 = vmul.f32 %v10363_v5, %v3523_v3  ;;  %3721 = vmatprep.mubr.bf16.mxu1 %v8495_v49 }
 0x38b   : > { %v3525_v31 = vpop.f32.mrf.mxu1 }
 0x38c   : > { %v10401_v15 = vadd.f32 %v4304_v1, %v9922_v46 }
 0x38d   : > { %v3526_v41 = vpop.f32.mrf.mxu1 }
 0x38e   : > { %v4305_v20 = vmul.f32 %v10363_v5, %v3526_v41 }
 0x38f   : > { %v3528_v18 = vpop.f32.mrf.mxu1 }
 0x390   : > { %v10411_v32 = vadd.f32 %v4305_v20, %v12212_v6  ;;  %v8499_v18 = vld [vmem:[%s12177_s27 + $0x6d0] ss:$8 sps:$4 sm:$0xff]  }
 0x391   : > { %v3531_v57 = vpop.f32.mrf.mxu1  ;;  %3722 = vmatmul.mubr.bf16.gmra.mxu1 %v8493_v28  ;;  %v12215_v28 = vld [vmem:[#allocation18_spill] sm:$0xff] }
 0x392   : > { %v4306_v46 = vmul.f32 %v10363_v5, %v3531_v57  ;;  %3729 = vmatprep.mubr.bf16.mxu1 %v8498_v52  ;;  %v8504_v57 = vld [vmem:[%s12177_s27 + $0x6e4] ss:$8 sps:$4 sm:$0xff]  }
 0x393   : > { %v3533_v7 = vpop.f32.mrf.mxu1 }
 0x394   : > { %v10415_v11 = vadd.f32 %v4306_v46, %v12213_v61  ;;  %v12216_v7 = vld [vmem:[#allocation19_spill] sm:$0xff] }
 0x395   : > { %v3534_v59 = vpop.f32.mrf.mxu1 }
 0x396   : > { %v4307_v63 = vmul.f32 %v10363_v5, %v3534_v59 }
 0x397   : > { %v3536_v49 = vpop.f32.mrf.mxu1 }
 0x398   : > { %v10425_v3 = vadd.f32 %v4307_v63, %v12214_v37 }
 0x399   : > { %v3539_v1 = vpop.f32.mrf.mxu1  ;;  %3730 = vmatmul.mubr.bf16.gmra.mxu1 %v8496_v4 }
 0x39a   : > { %v4308_v31 = vmul.f32 %v10363_v5, %v3539_v1  ;;  %3737 = vmatprep.mubr.bf16.mxu1 %v8501_v12  ;;  %v12217_v12 = vld [vmem:[#allocation20_spill] sm:$0xff]  ;;  %v8502_v1 = vld [vmem:[%s12177_s27 + $0x6e0] ss:$8 sps:$4 sm:$0xff]  }
 0x39b   : > { %v3541_v41 = vpop.f32.mrf.mxu1 }
 0x39c   : > { %v10429_v20 = vadd.f32 %v4308_v31, %v12215_v28  ;;  %v8507_v41 = vld [vmem:[%s12177_s27 + $0x6f4] ss:$8 sps:$4 sm:$0xff]  }
 0x39d   : > { %v3542_v52 = vpop.f32.mrf.mxu1 }
 0x39e   : > { %v4309_v6 = vmul.f32 %v10363_v5, %v3542_v52  ;;  %v12218_v52 = vld [vmem:[#allocation21_spill] sm:$0xff] }
 0x39f   : > { %v3544_v46 = vpop.f32.mrf.mxu1 }
 0x3a0   : > { %v10439_v61 = vadd.f32 %v4309_v6, %v12216_v7  ;;  %v12219_v7 = vld [vmem:[#allocation22_spill] sm:$0xff] }
 0x3a1   : > { %v3547_v59 = vpop.f32.mrf.mxu1  ;;  %3738 = vmatmul.mubr.bf16.gmra.mxu1 %v8499_v18 }
 0x3a2   : > { %v4310_v4 = vmul.f32 %v10363_v5, %v3547_v59  ;;  %3745 = vmatprep.mubr.bf16.mxu1 %v8504_v57 }
 0x3a3   : > { %v3549_v63 = vpop.f32.mrf.mxu1 }
 0x3a4   : > { %v10443_v49 = vadd.f32 %v4310_v4, %v12217_v12  ;;  %v8505_v63 = vld [vmem:[%s12177_s27 + $0x6f0] ss:$8 sps:$4 sm:$0xff]  }
 0x3a5   : > { %v3550_v37 = vpop.f32.mrf.mxu1 }
 0x3a6   : > { %v4311_v31 = vmul.f32 %v10363_v5, %v3550_v37  ;;  %v8510_v37 = vld [vmem:[%s12177_s27 + $0x704] ss:$8 sps:$4 sm:$0xff]  }
 0x3a7   : > { %v3552_v28 = vpop.f32.mrf.mxu1 }
 0x3a8   : > { %v10453_v18 = vadd.f32 %v4311_v31, %v12218_v52 }
 0x3a9   : > { %v3555_v6 = vpop.f32.mrf.mxu1  ;;  %3746 = vmatmul.mubr.bf16.gmra.mxu1 %v8502_v1  ;;  %v12220_v1 = vld [vmem:[#allocation23_spill] sm:$0xff] }
 0x3aa   : > { %v4312_v57 = vmul.f32 %v10363_v5, %v3555_v6  ;;  %3753 = vmatprep.mubr.bf16.mxu1 %v8507_v41 }
 0x3ab   : > { %v3557_v46 = vpop.f32.mrf.mxu1 }
 0x3ac   : > { %v10457_v59 = vadd.f32 %v4312_v57, %v12219_v7  ;;  %v12222_v57 = vld [vmem:[#allocation24_spill] sm:$0xff] }
 0x3ad   : > { %v3558_v4 = vpop.f32.mrf.mxu1 }
 0x3ae   : > { %v4313_v12 = vmul.f32 %v10363_v5, %v3558_v4  ;;  %v8508_v4 = vld [vmem:[%s12177_s27 + $0x700] ss:$8 sps:$4 sm:$0xff]  }
 0x3af   : > { %v3560_v31 = vpop.f32.mrf.mxu1 }
 0x3b0   : > { %v10467_v28 = vadd.f32 %v4313_v12, %v12220_v1  ;;  %v8513_v12 = vld [vmem:[%s12177_s27 + $0x714] ss:$8 sps:$4 sm:$0xff]  }
 0x3b1   : > { %v3563_v41 = vpop.f32.mrf.mxu1  ;;  %3754 = vmatmul.mubr.bf16.gmra.mxu1 %v8505_v63  ;;  %v12224_v63 = vld [vmem:[#allocation25_spill] sm:$0xff] }
 0x3b2   : > { %12221 = vst [vmem:[#allocation15_spill] sm:$0xff] %v10467_v28  ;;  %v4314_v52 = vmul.f32 %v10363_v5, %v3563_v41  ;;  %3761 = vmatprep.mubr.bf16.mxu1 %v8510_v37  ;;  %v8556_v37 = vld [vmem:[%s12226_s26 + $0x8] sm:$0xff]  }
 0x3b3   : > { %v3565_v6 = vpop.f32.mrf.mxu1  ;;  %7983 = vmatprep.subr.bf16.mxu0 %v8556_v37 }
 0x3b4   : > { %v10471_v46 = vadd.f32 %v4314_v52, %v12222_v57  ;;  %7984 = vmatpush3.bf16.msra.mxu0 %v8556_v37  ;;  %v12227_v57 = vld [vmem:[#allocation26_spill] sm:$0xff] }
 0x3b5   : > { %v3566_v7 = vpop.f32.mrf.mxu1 }
 0x3b6   : > { %12223 = vst [vmem:[#allocation16_spill] sm:$0xff] %v10471_v46  ;;  %v4315_v0 = vmul.f32 %v10363_v5, %v3566_v7 }
 0x3b7   : > { %v3568_v31 = vpop.f32.mrf.mxu1 }
 0x3b8   : > { %v10481_v1 = vadd.f32 %v4315_v0, %v12224_v63  ;;  %v8511_v0 = vld [vmem:[%s12177_s27 + $0x710] ss:$8 sps:$4 sm:$0xff]  }
 0x3b9   : > { %v3571_v41 = vpop.f32.mrf.mxu1  ;;  %3762 = vmatmul.mubr.bf16.gmra.mxu1 %v8508_v4  ;;  %v8516_v4 = vld [vmem:[%s12177_s27 + $0x724] ss:$8 sps:$4 sm:$0xff]  }
 0x3ba   : > { %12225 = vst [vmem:[#allocation17_spill] sm:$0xff] %v10481_v1  ;;  %v4316_v52 = vmul.f32 %v10363_v5, %v3571_v41  ;;  %3769 = vmatprep.mubr.bf16.mxu1 %v8513_v12  ;;  %v12229_v41 = vld [vmem:[#allocation27_spill] sm:$0xff] }
 0x3bb   : > { %v3573_v6 = vpop.f32.mrf.mxu1 }
 0x3bc   : > { %v10488_v7 = vadd.f32 %v4316_v52, %v12227_v57  ;;  %v12231_v57 = vld [vmem:[#allocation28_spill] sm:$0xff] }
 0x3bd   : > { %v3574_v46 = vpop.f32.mrf.mxu1 }
 0x3be   : > { %12228 = vst [vmem:[#allocation18_spill] sm:$0xff] %v10488_v7  ;;  %v4317_v31 = vmul.f32 %v10363_v5, %v3574_v46  ;;  %v8514_v46 = vld [vmem:[%s12177_s27 + $0x720] ss:$8 sps:$4 sm:$0xff]  }
 0x3bf   : > { %v3576_v63 = vpop.f32.mrf.mxu1 }
 0x3c0   : > { %v10498_v12 = vadd.f32 %v4317_v31, %v12229_v41  ;;  %v8519_v31 = vld [vmem:[%s12177_s27 + $0x734] ss:$8 sps:$4 sm:$0xff]  }
 0x3c1   : > { %v3579_v6 = vpop.f32.mrf.mxu1  ;;  %3770 = vmatmul.mubr.bf16.gmra.mxu1 %v8511_v0  ;;  %v12233_v0 = vld [vmem:[#allocation29_spill] sm:$0xff] }
 0x3c2   : > { %12230 = vst [vmem:[#allocation19_spill] sm:$0xff] %v10498_v12  ;;  %v4318_v37 = vmul.f32 %v10363_v5, %v3579_v6  ;;  %3777 = vmatprep.mubr.bf16.mxu1 %v8516_v4 }
 0x3c3   : > { %v3581_v52 = vpop.f32.mrf.mxu1 }
 0x3c4   : > { %v10502_v7 = vadd.f32 %v4318_v37, %v12231_v57  ;;  %v12235_v52 = vld [vmem:[#allocation30_spill] sm:$0xff] }
 0x3c5   : > { %v3582_v1 = vpop.f32.mrf.mxu1 }
 0x3c6   : > { %12232 = vst [vmem:[#allocation20_spill] sm:$0xff] %v10502_v7  ;;  %v4319_v28 = vmul.f32 %v10363_v5, %v3582_v1  ;;  %v8517_v1 = vld [vmem:[%s12177_s27 + $0x730] ss:$8 sps:$4 sm:$0xff]  }
 0x3c7   : > { %v3584_v63 = vpop.f32.mrf.mxu1 }
 0x3c8   : > { %v10512_v41 = vadd.f32 %v4319_v28, %v12233_v0  ;;  %v8522_v28 = vld [vmem:[%s12177_s27 + $0x744] ss:$8 sps:$4 sm:$0xff]  }
 0x3c9   : > { %v3587_v4 = vpop.f32.mrf.mxu1  ;;  %3778 = vmatmul.mubr.bf16.gmra.mxu1 %v8514_v46  ;;  %v12237_v46 = vld [vmem:[#allocation31_spill] sm:$0xff] }
 0x3ca   : > { %12234 = vst [vmem:[#allocation21_spill] sm:$0xff] %v10512_v41  ;;  %v4320_v6 = vmul.f32 %v10363_v5, %v3587_v4  ;;  %3785 = vmatprep.mubr.bf16.mxu1 %v8519_v31 }
 0x3cb   : > { %v3589_v37 = vpop.f32.mrf.mxu1 }
 0x3cc   : > { %v10516_v57 = vadd.f32 %v4320_v6, %v12235_v52  ;;  %v12239_v37 = vld [vmem:[#allocation32_spill] sm:$0xff] }
 0x3cd   : > { %v3590_v7 = vpop.f32.mrf.mxu1 }
 0x3ce   : > { %12236 = vst [vmem:[#allocation22_spill] sm:$0xff] %v10516_v57  ;;  %v4321_v12 = vmul.f32 %v10363_v5, %v3590_v7  ;;  %v8520_v7 = vld [vmem:[%s12177_s27 + $0x740] ss:$8 sps:$4 sm:$0xff]  }
 0x3cf   : > { %v3592_v63 = vpop.f32.mrf.mxu1 }
 0x3d0   : > { %v10526_v0 = vadd.f32 %v4321_v12, %v12237_v46  ;;  %v8525_v12 = vld [vmem:[%s12177_s27 + $0x754] ss:$8 sps:$4 sm:$0xff]  }
 0x3d1   : > { %v3595_v31 = vpop.f32.mrf.mxu1  ;;  %3786 = vmatmul.mubr.bf16.gmra.mxu1 %v8517_v1  ;;  %v12241_v1 = vld [vmem:[#allocation33_spill] sm:$0xff] }
 0x3d2   : > { %12238 = vst [vmem:[#allocation23_spill] sm:$0xff] %v10526_v0  ;;  %v4322_v4 = vmul.f32 %v10363_v5, %v3595_v31  ;;  %3793 = vmatprep.mubr.bf16.mxu1 %v8522_v28 }
 0x3d3   : > { %v3597_v6 = vpop.f32.mrf.mxu1 }
 0x3d4   : > { %v10530_v52 = vadd.f32 %v4322_v4, %v12239_v37  ;;  %v12243_v6 = vld [vmem:[#allocation34_spill] sm:$0xff] }
 0x3d5   : > { %v3598_v57 = vpop.f32.mrf.mxu1 }
 0x3d6   : > { %12240 = vst [vmem:[#allocation24_spill] sm:$0xff] %v10530_v52  ;;  %v4323_v41 = vmul.f32 %v10363_v5, %v3598_v57  ;;  %v8523_v57 = vld [vmem:[%s12177_s27 + $0x750] ss:$8 sps:$4 sm:$0xff]  }
 0x3d7   : > { %v3600_v63 = vpop.f32.mrf.mxu1 }
 0x3d8   : > { %v10540_v46 = vadd.f32 %v4323_v41, %v12241_v1  ;;  %v8528_v41 = vld [vmem:[%s12177_s27 + $0x764] ss:$8 sps:$4 sm:$0xff]  }
 0x3d9   : > { %v3603_v28 = vpop.f32.mrf.mxu1  ;;  %3794 = vmatmul.mubr.bf16.gmra.mxu1 %v8520_v7  ;;  %v12245_v7 = vld [vmem:[#allocation35_spill] sm:$0xff] }
 0x3da   : > { %12242 = vst [vmem:[#allocation25_spill] sm:$0xff] %v10540_v46  ;;  %v4324_v31 = vmul.f32 %v10363_v5, %v3603_v28  ;;  %3801 = vmatprep.mubr.bf16.mxu1 %v8525_v12 }
 0x3db   : > { %v3605_v4 = vpop.f32.mrf.mxu1 }
 0x3dc   : > { %v10544_v37 = vadd.f32 %v4324_v31, %v12243_v6  ;;  %v12246_v4 = vld [vmem:[#allocation36_spill] sm:$0xff] }
 0x3dd   : > { %v3606_v52 = vpop.f32.mrf.mxu1 }
 0x3de   : > { %12244 = vst [vmem:[#allocation26_spill] sm:$0xff] %v10544_v37  ;;  %v4325_v0 = vmul.f32 %v10363_v5, %v3606_v52  ;;  %v8526_v52 = vld [vmem:[%s12177_s27 + $0x760] ss:$8 sps:$4 sm:$0xff]  }
 0x3df   : > { %v3608_v63 = vpop.f32.mrf.mxu1 }
 0x3e0   : > { %v10554_v1 = vadd.f32 %v4325_v0, %v12245_v7  ;;  %v8531_v0 = vld [vmem:[%s12177_s27 + $0x774] ss:$8 sps:$4 sm:$0xff]  }
 0x3e1   : > { %v3611_v12 = vpop.f32.mrf.mxu1  ;;  %3802 = vmatmul.mubr.bf16.gmra.mxu1 %v8523_v57 }
 0x3e2   : > { %v4326_v28 = vmul.f32 %v10363_v5, %v3611_v12  ;;  %3809 = vmatprep.mubr.bf16.mxu1 %v8528_v41 }
 0x3e3   : > { %v3613_v31 = vpop.f32.mrf.mxu1 }
 0x3e4   : > { %v10558_v6 = vadd.f32 %v4326_v28, %v12246_v4  ;;  %v12248_v28 = vld [vmem:[#allocation37_spill] sm:$0xff] }
 0x3e5   : > { %v3614_v37 = vpop.f32.mrf.mxu1 }
 0x3e6   : > { %12247 = vst [vmem:[#allocation27_spill] sm:$0xff] %v10558_v6  ;;  %v4327_v46 = vmul.f32 %v10363_v5, %v3614_v37  ;;  %v8529_v37 = vld [vmem:[%s12177_s27 + $0x770] ss:$8 sps:$4 sm:$0xff]  }
 0x3e7   : > { %v3616_v63 = vpop.f32.mrf.mxu1 }
 0x3e8   : > { %v10568_v57 = vadd.f32 %v4327_v46, %v10090_v24  ;;  %v8534_v24 = vld [vmem:[%s12177_s27 + $0x784] ss:$8 sps:$4 sm:$0xff]  }
 0x3e9   : > { %v3619_v41 = vpop.f32.mrf.mxu1  ;;  %3810 = vmatmul.mubr.bf16.gmra.mxu1 %v8526_v52 }
 0x3ea   : > { %v4328_v7 = vmul.f32 %v10363_v5, %v3619_v41  ;;  %3817 = vmatprep.mubr.bf16.mxu1 %v8531_v0  ;;  %v10586_v41 = vsub.s32 6, %v9573_v51 }
 0x3eb   : > { %v3621_v12 = vpop.f32.mrf.mxu1 }
 0x3ec   : > { %v10572_v31 = vadd.f32 %v4328_v7, %v12248_v28  ;;  %12249 = vst [vmem:[#allocation28_spill] sm:$0xff] %v10586_v41  ;;  %v12250_v12 = vld [vmem:[#allocation39_spill] sm:$0xff] }
 0x3ed   : > { %v3622_v4 = vpop.f32.mrf.mxu1 }
 0x3ee   : > { %v4329_v6 = vmul.f32 %v10363_v5, %v3622_v4 }
 0x3ef   : > { %v3624_v46 = vpop.f32.mrf.mxu1 }
 0x3f0   : > { %v10582_v52 = vadd.f32 %v4329_v6, %v10108_v8  ;;  %v8532_v46 = vld [vmem:[%s12177_s27 + $0x780] ss:$8 sps:$4 sm:$0xff]   ;;  %v10597_v6 = vrot.slane %v10134_v2, %v10586_v41  ;;  %v8535_v2 = vld [vmem:[%s12177_s27 + $0x790] ss:$8 sps:$4 sm:$0xff]  }
 0x3f1   : > { %v3627_v0 = vpop.f32.mrf.mxu1  ;;  %3818 = vmatmul.mubr.bf16.gmra.mxu1 %v8529_v37  ;;  %v8537_v37 = vld [vmem:[%s12177_s27 + $0x794] ss:$8 sps:$4 sm:$0xff]  }
 0x3f2   : > { %v4330_v63 = vmul.f32 %v10363_v5, %v3627_v0  ;;  %3825 = vmatprep.mubr.bf16.mxu1 %v8534_v24  ;;  %v12252_v0 = vld [vmem:[#allocation40_spill] sm:$0xff] }
 0x3f3   : > { %v3629_v7 = vpop.f32.mrf.mxu1 }
 0x3f4   : > { %v10589_v28 = vadd.f32 %v4330_v63, %v12250_v12 }
 0x3f5   : > { %v3630_v4 = vpop.f32.mrf.mxu1 }
 0x3f6   : > { %12251 = vst [vmem:[#allocation29_spill] sm:$0xff] %v10589_v28  ;;  %v4331_v8 = vmul.f32 %v10363_v5, %v3630_v4 }
 0x3f7   : > { %v3632_v24 = vpop.f32.mrf.mxu1 }
 0x3f8   : > { %v10603_v7 = vadd.f32 %v4331_v8, %v12252_v0  ;;  %v8540_v8 = vld [vmem:[%s12177_s27 + $0x7a4] ss:$8 sps:$4 sm:$0xff]  }
 0x3f9   : > { %v3635_v63 = vpop.f32.mrf.mxu1  ;;  %3826 = vmatmul.mubr.bf16.gmra.mxu1 %v8532_v46 }
 0x3fa   : > { %v4368_v12 = vmul.f32 %v10597_v6, %v3635_v63  ;;  %3833 = vmatprep.mubr.bf16.mxu1 %v8537_v37 }
 0x3fb   : > { %v3637_v28 = vpop.f32.mrf.mxu1 }
 0x3fc   : > { %v10607_v5 = vadd.f32 %v4368_v12, %v10159_v35  ;;  %v8538_v12 = vld [vmem:[%s12177_s27 + $0x7a0] ss:$8 sps:$4 sm:$0xff]  }
 0x3fd   : > { %v3638_v4 = vpop.f32.mrf.mxu1 }
 0x3fe   : > { %v4369_v41 = vmul.f32 %v10597_v6, %v3638_v4 }
 0x3ff   : > { %v3640_v24 = vpop.f32.mrf.mxu1 }
 0x400   : > { %v10617_v46 = vadd.f32 %v4369_v41, %v10170_v26  ;;  %v8543_v26 = vld [vmem:[%s12177_s27 + $0x7b4] ss:$8 sps:$4 sm:$0xff]  }
 0x401   : > { %v3643_v37 = vpop.f32.mrf.mxu1  ;;  %3834 = vmatmul.mubr.bf16.gmra.mxu1 %v8535_v2 }
 0x402   : > { %v4370_v35 = vmul.f32 %v10597_v6, %v3643_v37  ;;  %3841 = vmatprep.mubr.bf16.mxu1 %v8540_v8 }
 0x403   : > { %v3645_v28 = vpop.f32.mrf.mxu1 }
 0x404   : > { %v10621_v0 = vadd.f32 %v4370_v35, %v10187_v21  ;;  %v8541_v28 = vld [vmem:[%s12177_s27 + $0x7b0] ss:$8 sps:$4 sm:$0xff]  }
 0x405   : > { %v3646_v63 = vpop.f32.mrf.mxu1 }
 0x406   : > { %v4371_v4 = vmul.f32 %v10597_v6, %v3646_v63 }
 0x407   : > { %v3648_v41 = vpop.f32.mrf.mxu1 }
 0x408   : > { %v10631_v2 = vadd.f32 %v4371_v4, %v10198_v43  ;;  %v8546_v43 = vld [vmem:[%s12177_s27 + $0x7c4] ss:$8 sps:$4 sm:$0xff]  }
 0x409   : > { %v3651_v8 = vpop.f32.mrf.mxu1  ;;  %3842 = vmatmul.mubr.bf16.gmra.mxu1 %v8538_v12 }
 0x40a   : > { %v4372_v21 = vmul.f32 %v10597_v6, %v3651_v8  ;;  %3849 = vmatprep.mubr.bf16.mxu1 %v8543_v26 }
 0x40b   : > { %v3653_v24 = vpop.f32.mrf.mxu1 }
 0x40c   : > { %v10635_v37 = vadd.f32 %v4372_v21, %v10215_v19  ;;  %v8544_v24 = vld [vmem:[%s12177_s27 + $0x7c0] ss:$8 sps:$4 sm:$0xff]  }
 0x40d   : > { %v3654_v35 = vpop.f32.mrf.mxu1 }
 0x40e   : > { %v4373_v63 = vmul.f32 %v10597_v6, %v3654_v35 }
 0x40f   : > { %v3656_v4 = vpop.f32.mrf.mxu1 }
 0x410   : > { %v10645_v12 = vadd.f32 %v4373_v63, %v10223_v10  ;;  %v8549_v10 = vld [vmem:[%s12177_s27 + $0x7d4] ss:$8 sps:$4 sm:$0xff]  }
 0x411   : > { %v3659_v26 = vpop.f32.mrf.mxu1  ;;  %3850 = vmatmul.mubr.bf16.gmra.mxu1 %v8541_v28 }
 0x412   : > { %v4374_v19 = vmul.f32 %v10597_v6, %v3659_v26  ;;  %3857 = vmatprep.mubr.bf16.mxu1 %v8546_v43 }
 0x413   : > { %v3661_v41 = vpop.f32.mrf.mxu1 }
 0x414   : > { %v10649_v8 = vadd.f32 %v4374_v19, %v10149_v54  ;;  %v8547_v41 = vld [vmem:[%s12177_s27 + $0x7d0] ss:$8 sps:$4 sm:$0xff]  }
 0x415   : > { %v3662_v21 = vpop.f32.mrf.mxu1 }
 0x416   : > { %v4375_v35 = vmul.f32 %v10597_v6, %v3662_v21 }
 0x417   : > { %v3664_v63 = vpop.f32.mrf.mxu1 }
 0x418   : > { %v10659_v28 = vadd.f32 %v4375_v35, %v10166_v47  ;;  %v8552_v47 = vld [vmem:[%s12177_s27 + $0x7e4] ss:$8 sps:$4 sm:$0xff]  }
 0x419   : > { %v3667_v43 = vpop.f32.mrf.mxu1  ;;  %3858 = vmatmul.mubr.bf16.gmra.mxu1 %v8544_v24 }
 0x41a   : > { %v4376_v54 = vmul.f32 %v10597_v6, %v3667_v43  ;;  %3865 = vmatprep.mubr.bf16.mxu1 %v8549_v10 }
 0x41b   : > { %v3669_v4 = vpop.f32.mrf.mxu1 }
 0x41c   : > { %v10663_v26 = vadd.f32 %v4376_v54, %v10177_v33  ;;  %v8550_v4 = vld [vmem:[%s12177_s27 + $0x7e0] ss:$8 sps:$4 sm:$0xff]  }
 0x41d   : > { %v3670_v19 = vpop.f32.mrf.mxu1 }
 0x41e   : > { %v4377_v21 = vmul.f32 %v10597_v6, %v3670_v19 }
 0x41f   : > { %v3672_v35 = vpop.f32.mrf.mxu1 }
 0x420   : > { %v10673_v24 = vadd.f32 %v4377_v21, %v10194_v23  ;;  %v8555_v23 = vld [vmem:[%s12177_s27 + $0x7f4] ss:$8 sps:$4 sm:$0xff]  }
 0x421   : > { %v3675_v10 = vpop.f32.mrf.mxu1  ;;  %3866 = vmatmul.mubr.bf16.gmra.mxu1 %v8547_v41 }
 0x422   : > { %v4378_v33 = vmul.f32 %v10597_v6, %v3675_v10  ;;  %3873 = vmatprep.mubr.bf16.mxu1 %v8552_v47 }
 0x423   : > { %v3677_v63 = vpop.f32.mrf.mxu1 }
 0x424   : > { %v10677_v43 = vadd.f32 %v4378_v33, %v10205_v58  ;;  %v8553_v63 = vld [vmem:[%s12177_s27 + $0x7f0] ss:$8 sps:$4 sm:$0xff]  }
 0x425   : > { %v3678_v54 = vpop.f32.mrf.mxu1 }
 0x426   : > { %v4379_v19 = vmul.f32 %v10597_v6, %v3678_v54 }
 0x427   : > { %v3680_v21 = vpop.f32.mrf.mxu1 }
 0x428   : > { %v10687_v41 = vadd.f32 %v4379_v19, %v10220_v9  ;;  %v8559_v9 = vld [vmem:[%s12177_s27 + $0x804] ss:$8 sps:$4 sm:$0xff]  }
 0x429   : > { %v3683_v47 = vpop.f32.mrf.mxu1  ;;  %3874 = vmatmul.mubr.bf16.gmra.mxu1 %v8550_v4 }
 0x42a   : > { %v4380_v58 = vmul.f32 %v10597_v6, %v3683_v47  ;;  %3881 = vmatprep.mubr.bf16.mxu1 %v8555_v23 }
 0x42b   : > { %v3685_v35 = vpop.f32.mrf.mxu1 }
 0x42c   : > { %v10691_v10 = vadd.f32 %v4380_v58, %v10226_v55  ;;  %v8557_v35 = vld [vmem:[%s12177_s27 + $0x800] ss:$8 sps:$4 sm:$0xff]  }
 0x42d   : > { %v3686_v33 = vpop.f32.mrf.mxu1 }
 0x42e   : > { %v4381_v54 = vmul.f32 %v10597_v6, %v3686_v33 }
 0x42f   : > { %v3688_v19 = vpop.f32.mrf.mxu1 }
 0x430   : > { %v10701_v4 = vadd.f32 %v4381_v54, %v10236_v34  ;;  %v8562_v34 = vld [vmem:[%s12177_s27 + $0x814] ss:$8 sps:$4 sm:$0xff]  }
 0x431   : > { %v3691_v23 = vpop.f32.mrf.mxu1  ;;  %3882 = vmatmul.mubr.bf16.gmra.mxu1 %v8553_v63 }
 0x432   : > { %v4382_v55 = vmul.f32 %v10597_v6, %v3691_v23  ;;  %3889 = vmatprep.mubr.bf16.mxu1 %v8559_v9 }
 0x433   : > { %v3693_v21 = vpop.f32.mrf.mxu1 }
 0x434   : > { %v10705_v47 = vadd.f32 %v4382_v55, %v10240_v42  ;;  %v8560_v21 = vld [vmem:[%s12177_s27 + $0x810] ss:$8 sps:$4 sm:$0xff]  }
 0x435   : > { %v3694_v58 = vpop.f32.mrf.mxu1 }
 0x436   : > { %v4383_v33 = vmul.f32 %v10597_v6, %v3694_v58 }
 0x437   : > { %v3696_v54 = vpop.f32.mrf.mxu1 }
 0x438   : > { %v10715_v63 = vadd.f32 %v4383_v33, %v10250_v14  ;;  %v8565_v14 = vld [vmem:[%s12177_s27 + $0x824] ss:$8 sps:$4 sm:$0xff]  }
 0x439   : > { %v3699_v9 = vpop.f32.mrf.mxu1  ;;  %3890 = vmatmul.mubr.bf16.gmra.mxu1 %v8557_v35 }
 0x43a   : > { %v4384_v42 = vmul.f32 %v10597_v6, %v3699_v9  ;;  %3897 = vmatprep.mubr.bf16.mxu1 %v8562_v34 }
 0x43b   : > { %v3701_v19 = vpop.f32.mrf.mxu1 }
 0x43c   : > { %v10719_v23 = vadd.f32 %v4384_v42, %v10254_v16  ;;  %v8605_v42 = vld [vmem:[%s12226_s26] sm:$0xff]  }
 0x43d   : > { %v3702_v55 = vpop.f32.mrf.mxu1  ;;  %7985 = vmatprep.subr.bf16.mxu0 %v8605_v42 }
 0x43e   : > { %v4385_v58 = vmul.f32 %v10597_v6, %v3702_v55  ;;  %v8563_v55 = vld [vmem:[%s12177_s27 + $0x820] ss:$8 sps:$4 sm:$0xff]   ;;  %7986 = vmatpush3.bf16.msra.mxu0 %v8605_v42 }
 0x43f   : > { %v3704_v33 = vpop.f32.mrf.mxu1 }
 0x440   : > { %v10729_v35 = vadd.f32 %v4385_v58, %v10264_v40 }
 0x441   : > { %v3707_v34 = vpop.f32.mrf.mxu1  ;;  %3898 = vmatmul.mubr.bf16.gmra.mxu1 %v8560_v21  ;;  %v8568_v21 = vld [vmem:[%s12177_s27 + $0x834] ss:$8 sps:$4 sm:$0xff]  }
 0x442   : > { %v4386_v16 = vmul.f32 %v10597_v6, %v3707_v34  ;;  %3905 = vmatprep.mubr.bf16.mxu1 %v8565_v14  ;;  %v12253_v14 = vmov 0  }
 0x443   : > { %v3709_v54 = vpop.f32.mrf.mxu1  ;;  %5399 = vmatprep.subr.bf16.mxu0 %v12253_v14 }
 0x444   : > { %v10733_v9 = vadd.f32 %v4386_v16, %v10268_v22 }
 0x445   : > { %v3710_v19 = vpop.f32.mrf.mxu1 }
 0x446   : > { %v4387_v40 = vmul.f32 %v10597_v6, %v3710_v19 }
 0x447   : > { %v3712_v58 = vpop.f32.mrf.mxu1 }
 0x448   : > { %v10746_v22 = vadd.f32 %v4387_v40, %v10278_v53  ;;  %v8566_v58 = vld [vmem:[%s12177_s27 + $0x830] ss:$8 sps:$4 sm:$0xff]   ;;  %v8571_v53 = vld [vmem:[%s12177_s27 + $0x844] ss:$8 sps:$4 sm:$0xff]  }
 0x449   : > { %v3715_v33 = vpop.f32.mrf.mxu1  ;;  %3906 = vmatmul.mubr.bf16.gmra.mxu1 %v8563_v55 }
 0x44a   : > { %v4388_v34 = vmul.f32 %v10597_v6, %v3715_v33  ;;  %3913 = vmatprep.mubr.bf16.mxu1 %v8568_v21 }
 0x44b   : > { %v3717_v16 = vpop.f32.mrf.mxu1 }
 0x44c   : > { %v10751_v54 = vadd.f32 %v4388_v34, %v10282_v60 }
 0x44d   : > { %v3718_v19 = vpop.f32.mrf.mxu1 }
 0x44e   : > { %v4389_v42 = vmul.f32 %v10597_v6, %v3718_v19  ;;  %v8569_v19 = vld [vmem:[%s12177_s27 + $0x840] ss:$8 sps:$4 sm:$0xff]  }
 0x44f   : > { %v3720_v40 = vpop.f32.mrf.mxu1 }
 0x450   : > { %v10761_v55 = vadd.f32 %v4389_v42, %v10292_v56  ;;  %v8574_v56 = vld [vmem:[%s12177_s27 + $0x854] ss:$8 sps:$4 sm:$0xff]  }
 0x451   : > { %v3723_v21 = vpop.f32.mrf.mxu1  ;;  %3914 = vmatmul.mubr.bf16.gmra.mxu1 %v8566_v58 }
 0x452   : > { %12254 = vst [vmem:[#allocation30_spill] sm:$0xff] %v10761_v55  ;;  %v4390_v60 = vmul.f32 %v10597_v6, %v3723_v21  ;;  %3921 = vmatprep.mubr.bf16.mxu1 %v8571_v53 }
 0x453   : > { %v3725_v33 = vpop.f32.mrf.mxu1 }
 0x454   : > { %v10765_v34 = vadd.f32 %v4390_v60, %v10296_v48  ;;  %v8572_v33 = vld [vmem:[%s12177_s27 + $0x850] ss:$8 sps:$4 sm:$0xff]  }
 0x455   : > { %v3726_v16 = vpop.f32.mrf.mxu1 }
 0x456   : > { %12255 = vst [vmem:[#allocation31_spill] sm:$0xff] %v10765_v34  ;;  %v4391_v14 = vmul.f32 %v10597_v6, %v3726_v16 }
 0x457   : > { %v3728_v42 = vpop.f32.mrf.mxu1 }
 0x458   : > { %v10775_v58 = vadd.f32 %v4391_v14, %v10306_v25  ;;  %v8577_v25 = vld [vmem:[%s12177_s27 + $0x864] ss:$8 sps:$4 sm:$0xff]  }
 0x459   : > { %v3731_v53 = vpop.f32.mrf.mxu1  ;;  %3922 = vmatmul.mubr.bf16.gmra.mxu1 %v8569_v19 }
 0x45a   : > { %12256 = vst [vmem:[#allocation32_spill] sm:$0xff] %v10775_v58  ;;  %v4392_v48 = vmul.f32 %v10597_v6, %v3731_v53  ;;  %3929 = vmatprep.mubr.bf16.mxu1 %v8574_v56 }
 0x45b   : > { %v3733_v40 = vpop.f32.mrf.mxu1 }
 0x45c   : > { %v10779_v21 = vadd.f32 %v4392_v48, %v10310_v50  ;;  %v8575_v40 = vld [vmem:[%s12177_s27 + $0x860] ss:$8 sps:$4 sm:$0xff]  }
 0x45d   : > { %v3734_v60 = vpop.f32.mrf.mxu1 }
 0x45e   : > { %12257 = vst [vmem:[#allocation33_spill] sm:$0xff] %v10779_v21  ;;  %v4393_v16 = vmul.f32 %v10597_v6, %v3734_v60 }
 0x45f   : > { %v3736_v14 = vpop.f32.mrf.mxu1 }
 0x460   : > { %v10789_v19 = vadd.f32 %v4393_v16, %v10320_v27  ;;  %v8580_v27 = vld [vmem:[%s12177_s27 + $0x874] ss:$8 sps:$4 sm:$0xff]  }
 0x461   : > { %v3739_v56 = vpop.f32.mrf.mxu1  ;;  %3930 = vmatmul.mubr.bf16.gmra.mxu1 %v8572_v33 }
 0x462   : > { %12258 = vst [vmem:[#allocation34_spill] sm:$0xff] %v10789_v19  ;;  %v4394_v50 = vmul.f32 %v10597_v6, %v3739_v56  ;;  %3937 = vmatprep.mubr.bf16.mxu1 %v8577_v25 }
 0x463   : > { %v3741_v42 = vpop.f32.mrf.mxu1 }
 0x464   : > { %v10793_v53 = vadd.f32 %v4394_v50, %v10324_v17  ;;  %v8578_v42 = vld [vmem:[%s12177_s27 + $0x870] ss:$8 sps:$4 sm:$0xff]  }
 0x465   : > { %v3742_v48 = vpop.f32.mrf.mxu1 }
 0x466   : > { %12259 = vst [vmem:[#allocation35_spill] sm:$0xff] %v10793_v53  ;;  %v4395_v60 = vmul.f32 %v10597_v6, %v3742_v48 }
 0x467   : > { %v3744_v16 = vpop.f32.mrf.mxu1 }
 0x468   : > { %v10803_v33 = vadd.f32 %v4395_v60, %v10334_v36  ;;  %v8583_v36 = vld [vmem:[%s12177_s27 + $0x884] ss:$8 sps:$4 sm:$0xff]   ;;  %v10821_v16 = vsub.s32 7, %v9573_v51 }
 0x469   : > { %v3747_v25 = vpop.f32.mrf.mxu1  ;;  %3938 = vmatmul.mubr.bf16.gmra.mxu1 %v8575_v40 }
 0x46a   : > { %12260 = vst [vmem:[#allocation36_spill] sm:$0xff] %v10803_v33  ;;  %v4396_v17 = vmul.f32 %v10597_v6, %v3747_v25  ;;  %3945 = vmatprep.mubr.bf16.mxu1 %v8580_v27  ;;  %12263 = vst [vmem:[#allocation40_spill] sm:$0xff] %v10821_v16 }
 0x46b   : > { %v3749_v14 = vpop.f32.mrf.mxu1 }
 0x46c   : > { %v10807_v56 = vadd.f32 %v4396_v17, %v10338_v45 }
 0x46d   : > { %v3750_v50 = vpop.f32.mrf.mxu1 }
 0x46e   : > { %12261 = vst [vmem:[#allocation37_spill] sm:$0xff] %v10807_v56  ;;  %v4397_v48 = vmul.f32 %v10597_v6, %v3750_v50  ;;  %v8581_v50 = vld [vmem:[%s12177_s27 + $0x880] ss:$8 sps:$4 sm:$0xff]  }
 0x46f   : > { %v3752_v60 = vpop.f32.mrf.mxu1 }
 0x470   : > { %v10817_v40 = vadd.f32 %v4397_v48, %v10348_v44 }
 0x471   : > { %v3755_v27 = vpop.f32.mrf.mxu1  ;;  %3946 = vmatmul.mubr.bf16.gmra.mxu1 %v8578_v42  ;;  %v8851_v42 = vld [vmem:[%s12182_s1] sm:$0xff] }
 0x472   : > { %12262 = vst [vmem:[#allocation39_spill] sm:$0xff] %v10817_v40  ;;  %v4398_v45 = vmul.f32 %v10597_v6, %v3755_v27  ;;  %3953 = vmatprep.mubr.bf16.mxu1 %v8583_v36  ;;  %v10834_v48 = vrot.slane %v8851_v42, %v10821_v16  ;;  %v8586_v36 = vld [vmem:[%s12177_s27 + $0x894] ss:$8 sps:$4 sm:$0xff]   ;;  %v8584_v42 = vld [vmem:[%s12177_s27 + $0x890] ss:$8 sps:$4 sm:$0xff]  }
 0x473   : > { %v3757_v25 = vpop.f32.mrf.mxu1  ;;  %v12266_v16 = vld [vmem:[#allocation15_spill] sm:$0xff] }
 0x474   : > { %v10824_v17 = vadd.f32 %v4398_v45, %v10355_v62 }
 0x475   : > { %v3758_v14 = vpop.f32.mrf.mxu1 }
 0x476   : > { %12264 = vst [vmem:[#allocation42_spill] sm:$0xff] %v10824_v17  ;;  %v4399_v44 = vmul.f32 %v10597_v6, %v3758_v14  ;;  %v12268_v17 = vld [vmem:[#allocation17_spill] sm:$0xff] }
 0x477   : > { %v3760_v62 = vpop.f32.mrf.mxu1 }
 0x478   : > { %v10840_v60 = vadd.f32 %v4399_v44, %v10369_v30  ;;  %v8589_v30 = vld [vmem:[%s12177_s27 + $0x8a4] ss:$8 sps:$4 sm:$0xff]  }
 0x479   : > { %v3763_v27 = vpop.f32.mrf.mxu1  ;;  %3954 = vmatmul.mubr.bf16.gmra.mxu1 %v8581_v50 }
 0x47a   : > { %12265 = vst [vmem:[#allocation43_spill] sm:$0xff] %v10840_v60  ;;  %v4436_v45 = vmul.f32 %v10834_v48, %v3763_v27  ;;  %3961 = vmatprep.mubr.bf16.mxu1 %v8586_v36 }
 0x47b   : > { %v3765_v6 = vpop.f32.mrf.mxu1 }
 0x47c   : > { %v10844_v25 = vadd.f32 %v4436_v45, %v10373_v13  ;;  %v8587_v6 = vld [vmem:[%s12177_s27 + $0x8a0] ss:$8 sps:$4 sm:$0xff]  }
 0x47d   : > { %v3766_v14 = vpop.f32.mrf.mxu1 }
 0x47e   : > { %v4437_v51 = vmul.f32 %v10834_v48, %v3766_v14 }
 0x47f   : > { %v3768_v44 = vpop.f32.mrf.mxu1 }
 0x480   : > { %v10854_v50 = vadd.f32 %v4437_v51, %v10383_v38  ;;  %v8592_v51 = vld [vmem:[%s12177_s27 + $0x8b4] ss:$8 sps:$4 sm:$0xff]  }
 0x481   : > { %v3771_v36 = vpop.f32.mrf.mxu1  ;;  %3962 = vmatmul.mubr.bf16.gmra.mxu1 %v8584_v42 }
 0x482   : > { %v4438_v13 = vmul.f32 %v10834_v48, %v3771_v36  ;;  %3969 = vmatprep.mubr.bf16.mxu1 %v8589_v30 }
 0x483   : > { %v3773_v62 = vpop.f32.mrf.mxu1 }
 0x484   : > { %v10858_v27 = vadd.f32 %v4438_v13, %v10387_v39  ;;  %v8590_v62 = vld [vmem:[%s12177_s27 + $0x8b0] ss:$8 sps:$4 sm:$0xff]  }
 0x485   : > { %v3774_v45 = vpop.f32.mrf.mxu1 }
 0x486   : > { %v4439_v14 = vmul.f32 %v10834_v48, %v3774_v45 }
 0x487   : > { %v3776_v38 = vpop.f32.mrf.mxu1 }
 0x488   : > { %v10868_v42 = vadd.f32 %v4439_v14, %v10397_v29  ;;  %v8595_v29 = vld [vmem:[%s12177_s27 + $0x8c4] ss:$8 sps:$4 sm:$0xff]  }
 0x489   : > { %v3779_v30 = vpop.f32.mrf.mxu1  ;;  %3970 = vmatmul.mubr.bf16.gmra.mxu1 %v8587_v6 }
 0x48a   : > { %v4440_v39 = vmul.f32 %v10834_v48, %v3779_v30  ;;  %3977 = vmatprep.mubr.bf16.mxu1 %v8592_v51 }
 0x48b   : > { %v3781_v44 = vpop.f32.mrf.mxu1 }
 0x48c   : > { %v10872_v36 = vadd.f32 %v4440_v39, %v10401_v15  ;;  %v8593_v44 = vld [vmem:[%s12177_s27 + $0x8c0] ss:$8 sps:$4 sm:$0xff]  }
 0x48d   : > { %v3782_v13 = vpop.f32.mrf.mxu1 }
 0x48e   : > { %v4441_v45 = vmul.f32 %v10834_v48, %v3782_v13 }
 0x48f   : > { %v3784_v14 = vpop.f32.mrf.mxu1 }
 0x490   : > { %v10882_v6 = vadd.f32 %v4441_v45, %v10411_v32  ;;  %v8598_v32 = vld [vmem:[%s12177_s27 + $0x8d4] ss:$8 sps:$4 sm:$0xff]  }
 0x491   : > { %v3787_v51 = vpop.f32.mrf.mxu1  ;;  %3978 = vmatmul.mubr.bf16.gmra.mxu1 %v8590_v62 }
 0x492   : > { %v4442_v15 = vmul.f32 %v10834_v48, %v3787_v51  ;;  %3985 = vmatprep.mubr.bf16.mxu1 %v8595_v29 }
 0x493   : > { %v3789_v38 = vpop.f32.mrf.mxu1 }
 0x494   : > { %v10886_v30 = vadd.f32 %v4442_v15, %v10415_v11  ;;  %v8596_v38 = vld [vmem:[%s12177_s27 + $0x8d0] ss:$8 sps:$4 sm:$0xff]  }
 0x495   : > { %v3790_v39 = vpop.f32.mrf.mxu1 }
 0x496   : > { %v4443_v13 = vmul.f32 %v10834_v48, %v3790_v39 }
 0x497   : > { %v3792_v45 = vpop.f32.mrf.mxu1 }
 0x498   : > { %v10896_v62 = vadd.f32 %v4443_v13, %v10425_v3  ;;  %v8601_v3 = vld [vmem:[%s12177_s27 + $0x8e4] ss:$8 sps:$4 sm:$0xff]  }
 0x499   : > { %v3795_v29 = vpop.f32.mrf.mxu1  ;;  %3986 = vmatmul.mubr.bf16.gmra.mxu1 %v8593_v44 }
 0x49a   : > { %v4444_v11 = vmul.f32 %v10834_v48, %v3795_v29  ;;  %3993 = vmatprep.mubr.bf16.mxu1 %v8598_v32 }
 0x49b   : > { %v3797_v14 = vpop.f32.mrf.mxu1 }
 0x49c   : > { %v10900_v51 = vadd.f32 %v4444_v11, %v10429_v20  ;;  %v8599_v14 = vld [vmem:[%s12177_s27 + $0x8e0] ss:$8 sps:$4 sm:$0xff]  }
 0x49d   : > { %v3798_v15 = vpop.f32.mrf.mxu1 }
 0x49e   : > { %v4445_v39 = vmul.f32 %v10834_v48, %v3798_v15 }
 0x49f   : > { %v3800_v13 = vpop.f32.mrf.mxu1 }
 0x4a0   : > { %v10910_v44 = vadd.f32 %v4445_v39, %v10439_v61  ;;  %v8604_v61 = vld [vmem:[%s12177_s27 + $0x8f4] ss:$8 sps:$4 sm:$0xff]  }
 0x4a1   : > { %v3803_v32 = vpop.f32.mrf.mxu1  ;;  %3994 = vmatmul.mubr.bf16.gmra.mxu1 %v8596_v38 }
 0x4a2   : > { %v4446_v20 = vmul.f32 %v10834_v48, %v3803_v32  ;;  %4001 = vmatprep.mubr.bf16.mxu1 %v8601_v3 }
 0x4a3   : > { %v3805_v45 = vpop.f32.mrf.mxu1 }
 0x4a4   : > { %v10914_v29 = vadd.f32 %v4446_v20, %v10443_v49  ;;  %v8602_v45 = vld [vmem:[%s12177_s27 + $0x8f0] ss:$8 sps:$4 sm:$0xff]  }
 0x4a5   : > { %v3806_v11 = vpop.f32.mrf.mxu1 }
 0x4a6   : > { %v4447_v15 = vmul.f32 %v10834_v48, %v3806_v11 }
 0x4a7   : > { %v3808_v39 = vpop.f32.mrf.mxu1 }
 0x4a8   : > { %v10924_v38 = vadd.f32 %v4447_v15, %v10453_v18 }
 0x4a9   : > { %v3811_v3 = vpop.f32.mrf.mxu1  ;;  %4002 = vmatmul.mubr.bf16.gmra.mxu1 %v8599_v14 }
 0x4aa   : > { %v4448_v49 = vmul.f32 %v10834_v48, %v3811_v3  ;;  %4009 = vmatprep.mubr.bf16.mxu1 %v8604_v61  ;;  %v12267_v3 = vld [vmem:[#allocation16_spill] sm:$0xff] }
 0x4ab   : > { %v3813_v13 = vpop.f32.mrf.mxu1 }
 0x4ac   : > { %v10928_v32 = vadd.f32 %v4448_v49, %v10457_v59 }
 0x4ad   : > { %v3814_v20 = vpop.f32.mrf.mxu1 }
 0x4ae   : > { %v4449_v11 = vmul.f32 %v10834_v48, %v3814_v20 }
 0x4af   : > { %v3816_v39 = vpop.f32.mrf.mxu1 }
 0x4b0   : > { %v10935_v18 = vadd.f32 %v4449_v11, %v12266_v16  ;;  %v12269_v11 = vld [vmem:[#allocation18_spill] sm:$0xff] }
 0x4b1   : > { %v3819_v15 = vpop.f32.mrf.mxu1  ;;  %4010 = vmatmul.mubr.bf16.gmra.mxu1 %v8602_v45 }
 0x4b2   : > { %v4450_v14 = vmul.f32 %v10834_v48, %v3819_v15 }
 0x4b3   : > { %v3821_v61 = vpop.f32.mrf.mxu1 }
 0x4b4   : > { %v10939_v13 = vadd.f32 %v4450_v14, %v12267_v3  ;;  %v12270_v14 = vld [vmem:[#allocation19_spill] sm:$0xff] }
 0x4b5   : > { %v3822_v59 = vpop.f32.mrf.mxu1 }
 0x4b6   : > { %v4451_v49 = vmul.f32 %v10834_v48, %v3822_v59 }
 0x4b7   : > { %v3824_v60 = vpop.f32.mrf.mxu1 }
 0x4b8   : > { %v10943_v40 = vadd.f32 %v4451_v49, %v12268_v17  ;;  %v12271_v17 = vld [vmem:[#allocation20_spill] sm:$0xff] }
 0x4b9   : > { %v3827_v20 = vpop.f32.mrf.mxu1 }
 0x4ba   : > { %v4452_v39 = vmul.f32 %v10834_v48, %v3827_v20 }
 0x4bb   : > { %v3829_v16 = vpop.f32.mrf.mxu1 }
 0x4bc   : > { %v10947_v56 = vadd.f32 %v4452_v39, %v12269_v11  ;;  %v12272_v39 = vld [vmem:[#allocation21_spill] sm:$0xff] }
 0x4bd   : > { %v3830_v45 = vpop.f32.mrf.mxu1 }
 0x4be   : > { %v4453_v15 = vmul.f32 %v10834_v48, %v3830_v45 }
 0x4bf   : > { %v3832_v61 = vpop.f32.mrf.mxu1 }
 0x4c0   : > { %v10951_v3 = vadd.f32 %v4453_v15, %v12270_v14  ;;  %v12273_v15 = vld [vmem:[#allocation22_spill] sm:$0xff] }
 0x4c1   : > { %v3835_v33 = vpop.f32.mrf.mxu1 }
 0x4c2   : > { %v4454_v60 = vmul.f32 %v10834_v48, %v3835_v33 }
 0x4c3   : > { %v3837_v59 = vpop.f32.mrf.mxu1 }
 0x4c4   : > { %v10955_v49 = vadd.f32 %v4454_v60, %v12271_v17  ;;  %v12274_v60 = vld [vmem:[#allocation23_spill] sm:$0xff] }
 0x4c5   : > { %v3838_v53 = vpop.f32.mrf.mxu1 }
 0x4c6   : > { %v4455_v20 = vmul.f32 %v10834_v48, %v3838_v53 }
 0x4c7   : > { %v3840_v16 = vpop.f32.mrf.mxu1 }
 0x4c8   : > { %v10959_v11 = vadd.f32 %v4455_v20, %v12272_v39  ;;  %v12276_v20 = vld [vmem:[#allocation24_spill] sm:$0xff] }
 0x4c9   : > { %v3843_v19 = vpop.f32.mrf.mxu1 }
 0x4ca   : > { %v4456_v45 = vmul.f32 %v10834_v48, %v3843_v19 }
 0x4cb   : > { %v3845_v61 = vpop.f32.mrf.mxu1 }
 0x4cc   : > { %v10963_v14 = vadd.f32 %v4456_v45, %v12273_v15  ;;  %v12277_v45 = vld [vmem:[#allocation25_spill] sm:$0xff] }
 0x4cd   : > { %v3846_v21 = vpop.f32.mrf.mxu1 }
 0x4ce   : > { %v4457_v33 = vmul.f32 %v10834_v48, %v3846_v21 }
 0x4cf   : > { %v3848_v59 = vpop.f32.mrf.mxu1 }
 0x4d0   : > { %v10967_v17 = vadd.f32 %v4457_v33, %v12274_v60  ;;  %v12279_v33 = vld [vmem:[#allocation26_spill] sm:$0xff] }
 0x4d1   : > { %v3851_v58 = vpop.f32.mrf.mxu1 }
 0x4d2   : > { %12275 = vst [vmem:[#allocation15_spill] sm:$0xff] %v10967_v17  ;;  %v4458_v53 = vmul.f32 %v10834_v48, %v3851_v58 }
 0x4d3   : > { %v3853_v16 = vpop.f32.mrf.mxu1 }
 0x4d4   : > { %v10971_v39 = vadd.f32 %v4458_v53, %v12276_v20 }
 0x4d5   : > { %v3854_v34 = vpop.f32.mrf.mxu1 }
 0x4d6   : > { %v4459_v19 = vmul.f32 %v10834_v48, %v3854_v34 }
 0x4d7   : > { %v3856_v61 = vpop.f32.mrf.mxu1 }
 0x4d8   : > { %v10975_v15 = vadd.f32 %v4459_v19, %v12277_v45  ;;  %v12280_v19 = vld [vmem:[#allocation27_spill] sm:$0xff] }
 0x4d9   : > { %v3859_v55 = vpop.f32.mrf.mxu1 }
 0x4da   : > { %12278 = vst [vmem:[#allocation16_spill] sm:$0xff] %v10975_v15  ;;  %v4460_v21 = vmul.f32 %v10834_v48, %v3859_v55 }
 0x4db   : > { %v3861_v59 = vpop.f32.mrf.mxu1 }
 0x4dc   : > { %v10979_v60 = vadd.f32 %v4460_v21, %v12279_v33 }
 0x4dd   : > { %v3862_v17 = vpop.f32.mrf.mxu1 }
 0x4de   : > { %v4461_v58 = vmul.f32 %v10834_v48, %v3862_v17 }
 0x4df   : > { %v3864_v16 = vpop.f32.mrf.mxu1 }
 0x4e0   : > { %v10983_v53 = vadd.f32 %v4461_v58, %v10554_v1 }
 0x4e1   : > { %v3867_v20 = vpop.f32.mrf.mxu1 }
 0x4e2   : > { %v4462_v34 = vmul.f32 %v10834_v48, %v3867_v20 }
 0x4e3   : > { %v3869_v61 = vpop.f32.mrf.mxu1 }
 0x4e4   : > { %v10987_v45 = vadd.f32 %v4462_v34, %v12280_v19 }
 0x4e5   : > { %v3870_v15 = vpop.f32.mrf.mxu1 }
 0x4e6   : > { %v4463_v55 = vmul.f32 %v10834_v48, %v3870_v15 }
 0x4e7   : > { %v3872_v59 = vpop.f32.mrf.mxu1 }
 0x4e8   : > { %v10991_v21 = vadd.f32 %v4463_v55, %v10568_v57  ;;  %v12282_v57 = vld [vmem:[#allocation29_spill] sm:$0xff] }
 0x4e9   : > { %v3875_v33 = vpop.f32.mrf.mxu1 }
 0x4ea   : > { %12281 = vst [vmem:[#allocation17_spill] sm:$0xff] %v10991_v21  ;;  %v4464_v17 = vmul.f32 %v10834_v48, %v3875_v33 }
 0x4eb   : > { %v3877_v16 = vpop.f32.mrf.mxu1 }
 0x4ec   : > { %v10995_v1 = vadd.f32 %v4464_v17, %v10572_v31  ;;  %v11009_v31 = vld [vmem:[%s12182_s1 + $0x8] ss:$0 sm:$0xff] }
 0x4ed   : > { %v3878_v58 = vpop.f32.mrf.mxu1 }
 0x4ee   : > { %v4465_v20 = vmul.f32 %v10834_v48, %v3878_v58 }
 0x4ef   : > { %v3880_v61 = vpop.f32.mrf.mxu1 }
 0x4f0   : > { %v10999_v34 = vadd.f32 %v4465_v20, %v10582_v52 }
 0x4f1   : > { %v3883_v19 = vpop.f32.mrf.mxu1 }
 0x4f2   : > { %v4466_v15 = vmul.f32 %v10834_v48, %v3883_v19 }
 0x4f3   : > { %v3885_v59 = vpop.f32.mrf.mxu1 }
 0x4f4   : > { %v11003_v55 = vadd.f32 %v4466_v15, %v12282_v57 }
 0x4f5   : > { %v3886_v21 = vpop.f32.mrf.mxu1 }
 0x4f6   : > { %12283 = vst [vmem:[#allocation18_spill] sm:$0xff] %v11003_v55  ;;  %v4467_v33 = vmul.f32 %v10834_v48, %v3886_v21  ;;  %v11021_v21 = vld [vmem:[%s12285_s4] ss:$0 sm:$0xff]  ;;  %s702_s4 = sand.u32 1, %s8904_s30  }
 0x4f7   : > { %v3888_v16 = vpop.f32.mrf.mxu1  ;;  %s7346_s3 = sshll.u32 %s702_s4, 2  ;;  %s7269_s26 = scalar_lea.sflag [#allocation3], %s702_s4 }
 0x4f8   : > { %v11012_v17 = vadd.f32 %v4467_v33, %v10603_v7  ;;  %s704_s6 = scalar_lea.vmem [#allocation2], %s7346_s3 }
 0x4f9   : > { %v3891_v52 = vpop.f32.mrf.mxu1  ;;  %s7283_s24 = sshll.u32 %s704_s6, 4  ;;  %s7284_s24 = int_to_ptr.vmem [resolvable:$true] %s7283_s24 }
 0x4fa   : > { %12284 = vst [vmem:[#allocation19_spill] sm:$0xff] %v11012_v17  ;;  %v4504_v58 = vmul.f32 %v11009_v31, %v3891_v52  ;;  %s8852_s29 = scalar_lea.vmem %s7284_s24, 64 }
 0x4fb   : > { %v3893_v20 = vpop.f32.mrf.mxu1  ;;  %p8853_p11 = scmp.ne.s32.totalorder %s7284_s24, %s8852_s29 }
 0x4fc   : > { %v4536_v61 = vadd.f32 %v4504_v58, %v10607_v5 }
 0x4fd   : > { %v3894_v19 = vpop.f32.mrf.mxu1  ;;  %p8854_p12 = pnand %p8853_p11, %p9077_p5 }
 0x4fe   : > { %v4568_v15 = vadd.f32 %v4536_v61, %v10844_v25  ;;  %v4505_v48 = vmul.f32 %v11009_v31, %v3894_v19 }
 0x4ff   : > { %v3896_v59 = vpop.f32.mrf.mxu1  ;;  %p8855_p13 = pneg %p8854_p12 }
 0x500   : > { %v4537_v7 = vadd.f32 %v4505_v48, %v10617_v46  ;;  %v4607_v33 = vadd.f32 %v11021_v21, %v4568_v15 }
 0x501   : > { %v3899_v57 = vpop.f32.mrf.mxu1 }
 0x502   : > { %v4569_v16 = vadd.f32 %v4537_v7, %v10854_v50  ;;  %v4506_v5 = vmul.f32 %v11009_v31, %v3899_v57  ;;  %v4639_v61 = vmax.f32 %v4607_v33, 0.0 }
 0x503   : > { %v3901_v52 = vpop.f32.mrf.mxu1 }
 0x504   : > { %v4608_v25 = vadd.f32 %v11021_v21, %v4569_v16  ;;  %v4538_v58 = vadd.f32 %v4506_v5, %v10621_v0 }
 0x505   : > { %v3902_v20 = vpop.f32.mrf.mxu1 }
 0x506   : > { %v4640_v19 = vmax.f32 %v4608_v25, 0.0  ;;  %v4570_v17 = vadd.f32 %v4538_v58, %v10858_v27  ;;  %v4507_v59 = vmul.f32 %v11009_v31, %v3902_v20 }
 0x507   : > { %v3904_v46 = vpop.f32.mrf.mxu1 }
 0x508   : > { %v4539_v48 = vadd.f32 %v4507_v59, %v10631_v2  ;;  %v4671_v15 = vpack.c.bf16 %v4640_v19, %v4639_v61  ;;  %v4609_v50 = vadd.f32 %v11021_v21, %v4570_v17 }
 0x509   : > { %v3907_v55 = vpop.f32.mrf.mxu1 }
 0x50a   : > { %v4571_v7 = vadd.f32 %v4539_v48, %v10868_v42  ;;  %v4508_v57 = vmul.f32 %v11009_v31, %v3907_v55  ;;  %7987 = vmatprep.mubr.msk.bf16.mxu0 %vm847_vm0, %v4671_v15  ;;  %v4641_v5 = vmax.f32 %v4609_v50, 0.0 }
 0x50b   : > { %v3909_v0 = vpop.f32.mrf.mxu1 }
 0x50c   : > { %v4610_v33 = vadd.f32 %v11021_v21, %v4571_v7  ;;  %v4540_v27 = vadd.f32 %v4508_v57, %v10635_v37 }
 0x50d   : > { %v3910_v16 = vpop.f32.mrf.mxu1 }
 0x50e   : > { %v4642_v52 = vmax.f32 %v4610_v33, 0.0  ;;  %v4572_v2 = vadd.f32 %v4540_v27, %v10872_v36  ;;  %v4509_v25 = vmul.f32 %v11009_v31, %v3910_v16 }
 0x50f   : > { %v3912_v58 = vpop.f32.mrf.mxu1 }
 0x510   : > { %v4672_v17 = vpack.c.bf16 %v4642_v52, %v4641_v5  ;;  %v4541_v42 = vadd.f32 %v4509_v25, %v10645_v12  ;;  %v4611_v55 = vadd.f32 %v11021_v21, %v4572_v2 }
 0x511   : > { %v3915_v20 = vpop.f32.mrf.mxu1 }
 0x512   : > { %v4573_v61 = vadd.f32 %v4541_v42, %v10882_v6  ;;  %v4510_v19 = vmul.f32 %v11009_v31, %v3915_v20  ;;  %7988 = vmatmul.mubr.msk.bf16.vlgmr.msra.gmra.mxu0 %vm847_vm0, %v4672_v17  ;;  %v4643_v48 = vmax.f32 %v4611_v55, 0.0 }
 0x513   : > { %v3917_v37 = vpop.f32.mrf.mxu1 }
 0x514   : > { %v4612_v59 = vadd.f32 %v11021_v21, %v4573_v61  ;;  %v4542_v36 = vadd.f32 %v4510_v19, %v10649_v8 }
 0x515   : > { %v3918_v46 = vpop.f32.mrf.mxu1 }
 0x516   : > { %v4644_v15 = vmax.f32 %v4612_v59, 0.0  ;;  %v4574_v50 = vadd.f32 %v4542_v36, %v10886_v30  ;;  %v4511_v12 = vmul.f32 %v11009_v31, %v3918_v46 }
 0x517   : > { %v3920_v7 = vpop.f32.mrf.mxu1 }
 0x518   : > { %v4543_v57 = vadd.f32 %v4511_v12, %v10659_v28  ;;  %v4673_v6 = vpack.c.bf16 %v4644_v15, %v4643_v48  ;;  %v4613_v33 = vadd.f32 %v11021_v21, %v4574_v50 }
 0x519   : > { %v3923_v0 = vpop.f32.mrf.mxu1 }
 0x51a   : > { %v4575_v27 = vadd.f32 %v4543_v57, %v10896_v62  ;;  %v4512_v16 = vmul.f32 %v11009_v31, %v3923_v0  ;;  %7991 = vmatprep.mubr.msk.bf16.mxu0 %vm847_vm0, %v4673_v6  ;;  %v4645_v2 = vmax.f32 %v4613_v33, 0.0 }
 0x51b   : > { %v3925_v8 = vpop.f32.mrf.mxu1 }
 0x51c   : > { %v4614_v5 = vadd.f32 %v11021_v21, %v4575_v27  ;;  %v4544_v30 = vadd.f32 %v4512_v16, %v10663_v26 }
 0x51d   : > { %v3926_v52 = vpop.f32.mrf.mxu1 }
 0x51e   : > { %v4646_v25 = vmax.f32 %v4614_v5, 0.0  ;;  %v4576_v28 = vadd.f32 %v4544_v30, %v10900_v51  ;;  %v4513_v58 = vmul.f32 %v11009_v31, %v3926_v52 }
 0x51f   : > { %v3928_v17 = vpop.f32.mrf.mxu1 }
 0x520   : > { %v4674_v42 = vpack.c.bf16 %v4646_v25, %v4645_v2  ;;  %v4545_v62 = vadd.f32 %v4513_v58, %v10673_v24  ;;  %v4615_v55 = vadd.f32 %v11021_v21, %v4576_v28 }
 0x521   : > { %v3931_v20 = vpop.f32.mrf.mxu1 }
 0x522   : > { %v4577_v61 = vadd.f32 %v4545_v62, %v10910_v44  ;;  %v4514_v19 = vmul.f32 %v11009_v31, %v3931_v20  ;;  %7992 = vmatmul.mubr.msk.bf16.gmra.mxu0 %vm847_vm0, %v4674_v42  ;;  %v4647_v36 = vmax.f32 %v4615_v55, 0.0 }
 0x523   : > { %v3933_v26 = vpop.f32.mrf.mxu1 }
 0x524   : > { %v4616_v37 = vadd.f32 %v11021_v21, %v4577_v61  ;;  %v4546_v51 = vadd.f32 %v4514_v19, %v10677_v43 }
 0x525   : > { %v3934_v59 = vpop.f32.mrf.mxu1 }
 0x526   : > { %v4648_v46 = vmax.f32 %v4616_v37, 0.0  ;;  %v4578_v48 = vadd.f32 %v4546_v51, %v10914_v29  ;;  %v4515_v24 = vmul.f32 %v11009_v31, %v3934_v59 }
 0x527   : > { %v3936_v15 = vpop.f32.mrf.mxu1 }
 0x528   : > { %v4547_v50 = vadd.f32 %v4515_v24, %v10687_v41  ;;  %v4675_v44 = vpack.c.bf16 %v4648_v46, %v4647_v36  ;;  %v4617_v7 = vadd.f32 %v11021_v21, %v4578_v48 }
 0x529   : > { %v3939_v12 = vpop.f32.mrf.mxu1 }
 0x52a   : > { %v4579_v57 = vadd.f32 %v4547_v50, %v10924_v38  ;;  %v4516_v6 = vmul.f32 %v11009_v31, %v3939_v12  ;;  %7995 = vmatprep.mubr.msk.bf16.mxu0 %vm847_vm0, %v4675_v44  ;;  %v4649_v27 = vmax.f32 %v4617_v7, 0.0 }
 0x52b   : > { %v3941_v43 = vpop.f32.mrf.mxu1 }
 0x52c   : > { %v4618_v0 = vadd.f32 %v11021_v21, %v4579_v57  ;;  %v4548_v29 = vadd.f32 %v4516_v6, %v10691_v10 }
 0x52d   : > { %v3942_v33 = vpop.f32.mrf.mxu1 }
 0x52e   : > { %v4650_v16 = vmax.f32 %v4618_v0, 0.0  ;;  %v4580_v41 = vadd.f32 %v4548_v29, %v10928_v32  ;;  %v4517_v8 = vmul.f32 %v11009_v31, %v3942_v33 }
 0x52f   : > { %v3944_v5 = vpop.f32.mrf.mxu1 }
 0x530   : > { %v4676_v30 = vpack.c.bf16 %v4650_v16, %v4649_v27  ;;  %v4549_v38 = vadd.f32 %v4517_v8, %v10701_v4  ;;  %v4619_v2 = vadd.f32 %v11021_v21, %v4580_v41 }
 0x531   : > { %v3947_v52 = vpop.f32.mrf.mxu1 }
 0x532   : > { %v4581_v25 = vadd.f32 %v4549_v38, %v10935_v18  ;;  %v4518_v28 = vmul.f32 %v11009_v31, %v3947_v52  ;;  %7996 = vmatmul.mubr.msk.bf16.gmra.mxu0 %vm847_vm0, %v4676_v30  ;;  %v4651_v42 = vmax.f32 %v4619_v2, 0.0 }
 0x533   : > { %v3949_v10 = vpop.f32.mrf.mxu1 }
 0x534   : > { %v4620_v58 = vadd.f32 %v11021_v21, %v4581_v25  ;;  %v4550_v32 = vadd.f32 %v4518_v28, %v10705_v47 }
 0x535   : > { %v3950_v17 = vpop.f32.mrf.mxu1 }
 0x536   : > { %v4652_v62 = vmax.f32 %v4620_v58, 0.0  ;;  %v4582_v20 = vadd.f32 %v4550_v32, %v10939_v13  ;;  %v4519_v4 = vmul.f32 %v11009_v31, %v3950_v17  ;;  %v12286_v32 = vld [vmem:[#allocation30_spill] sm:$0xff] }
 0x537   : > { %v3952_v55 = vpop.f32.mrf.mxu1 }
 0x538   : > { %v4551_v61 = vadd.f32 %v4519_v4, %v10715_v63  ;;  %v4677_v18 = vpack.c.bf16 %v4652_v62, %v4651_v42  ;;  %v4621_v26 = vadd.f32 %v11021_v21, %v4582_v20  ;;  %v12287_v62 = vld [vmem:[#allocation15_spill] sm:$0xff] }
 0x539   : > { %v3955_v19 = vpop.f32.mrf.mxu1 }
 0x53a   : > { %v4583_v37 = vadd.f32 %v4551_v61, %v10943_v40  ;;  %v4520_v51 = vmul.f32 %v11009_v31, %v3955_v19  ;;  %7999 = vmatprep.mubr.msk.bf16.mxu0 %vm847_vm0, %v4677_v18  ;;  %v4653_v46 = vmax.f32 %v4621_v26, 0.0  ;;  %v12288_v61 = vld [vmem:[#allocation31_spill] sm:$0xff] }
 0x53b   : > { %v3957_v47 = vpop.f32.mrf.mxu1 }
 0x53c   : > { %v4622_v59 = vadd.f32 %v11021_v21, %v4583_v37  ;;  %v4552_v13 = vadd.f32 %v4520_v51, %v10719_v23 }
 0x53d   : > { %v3958_v36 = vpop.f32.mrf.mxu1 }
 0x53e   : > { %v4654_v48 = vmax.f32 %v4622_v59, 0.0  ;;  %v4584_v63 = vadd.f32 %v4552_v13, %v10947_v56  ;;  %v4521_v24 = vmul.f32 %v11009_v31, %v3958_v36  ;;  %v12289_v59 = vld [vmem:[#allocation32_spill] sm:$0xff] }
 0x53f   : > { %v3960_v15 = vpop.f32.mrf.mxu1 }
 0x540   : > { %v4678_v50 = vpack.c.bf16 %v4654_v48, %v4653_v46  ;;  %v4553_v40 = vadd.f32 %v4521_v24, %v10729_v35  ;;  %v4623_v12 = vadd.f32 %v11021_v21, %v4584_v63  ;;  %v12290_v63 = vld [vmem:[#allocation16_spill] sm:$0xff] }
 0x541   : > { %v3963_v44 = vpop.f32.mrf.mxu1 }
 0x542   : > { %v4585_v7 = vadd.f32 %v4553_v40, %v10951_v3  ;;  %v4522_v57 = vmul.f32 %v11009_v31, %v3963_v44  ;;  %8000 = vmatmul.mubr.msk.bf16.gmra.mxu0 %vm847_vm0, %v4678_v50  ;;  %v4655_v0 = vmax.f32 %v4623_v12, 0.0  ;;  %v12291_v44 = vld [vmem:[#allocation33_spill] sm:$0xff] }
 0x543   : > { %v3965_v23 = vpop.f32.mrf.mxu1 }
 0x544   : > { %v4624_v6 = vadd.f32 %v11021_v21, %v4585_v7  ;;  %v4554_v56 = vadd.f32 %v4522_v57, %v10733_v9 }
 0x545   : > { %v3966_v43 = vpop.f32.mrf.mxu1 }
 0x546   : > { %v4656_v29 = vmax.f32 %v4624_v6, 0.0  ;;  %v4586_v33 = vadd.f32 %v4554_v56, %v10955_v49  ;;  %v4523_v35 = vmul.f32 %v11009_v31, %v3966_v43 }
 0x547   : > { %v3968_v27 = vpop.f32.mrf.mxu1 }
 0x548   : > { %v4555_v16 = vadd.f32 %v4523_v35, %v10746_v22  ;;  %v4679_v3 = vpack.c.bf16 %v4656_v29, %v4655_v0  ;;  %v4625_v8 = vadd.f32 %v11021_v21, %v4586_v33  ;;  %v12292_v0 = vld [vmem:[#allocation34_spill] sm:$0xff] }
 0x549   : > { %v3971_v41 = vpop.f32.mrf.mxu1 }
 0x54a   : > { %v4587_v5 = vadd.f32 %v4555_v16, %v10959_v11  ;;  %v4524_v30 = vmul.f32 %v11009_v31, %v3971_v41  ;;  %8003 = vmatprep.mubr.msk.bf16.mxu0 %vm847_vm0, %v4679_v3  ;;  %v4657_v2 = vmax.f32 %v4625_v8, 0.0  ;;  %v12293_v8 = vld [vmem:[#allocation35_spill] sm:$0xff] }
 0x54b   : > { %v3973_v9 = vpop.f32.mrf.mxu1 }
 0x54c   : > { %v4626_v38 = vadd.f32 %v11021_v21, %v4587_v5  ;;  %v4556_v49 = vadd.f32 %v4524_v30, %v10751_v54 }
 0x54d   : > { %v3974_v52 = vpop.f32.mrf.mxu1 }
 0x54e   : > { %v4658_v25 = vmax.f32 %v4626_v38, 0.0  ;;  %v4588_v22 = vadd.f32 %v4556_v49, %v10963_v14  ;;  %v4525_v28 = vmul.f32 %v11009_v31, %v3974_v52 }
 0x54f   : > { %v3976_v10 = vpop.f32.mrf.mxu1 }
 0x550   : > { %v4680_v58 = vpack.c.bf16 %v4658_v25, %v4657_v2  ;;  %v4557_v11 = vadd.f32 %v4525_v28, %v12286_v32  ;;  %v4627_v42 = vadd.f32 %v11021_v21, %v4588_v22  ;;  %v12294_v2 = vld [vmem:[#allocation36_spill] sm:$0xff]  ;;  %v12295_v10 = vld [vmem:[#allocation17_spill] sm:$0xff] }
 0x551   : > { %v3979_v17 = vpop.f32.mrf.mxu1 }
 0x552   : > { %v4589_v20 = vadd.f32 %v4557_v11, %v12287_v62  ;;  %v4526_v4 = vmul.f32 %v11009_v31, %v3979_v17  ;;  %8004 = vmatmul.mubr.msk.bf16.gmra.mxu0 %vm847_vm0, %v4680_v58  ;;  %v4659_v19 = vmax.f32 %v4627_v42, 0.0  ;;  %v12296_v42 = vld [vmem:[#allocation37_spill] sm:$0xff] }
 0x553   : > { %v3981_v54 = vpop.f32.mrf.mxu1 }
 0x554   : > { %v4628_v55 = vadd.f32 %v11021_v21, %v4589_v20  ;;  %v4558_v14 = vadd.f32 %v4526_v4, %v12288_v61 }
 0x555   : > { %v3982_v18 = vpop.f32.mrf.mxu1 }
 0x556   : > { %v4660_v26 = vmax.f32 %v4628_v55, 0.0  ;;  %v4590_v37 = vadd.f32 %v4558_v14, %v10971_v39  ;;  %v4527_v51 = vmul.f32 %v11009_v31, %v3982_v18  ;;  %v12297_v18 = vld [vmem:[#allocation39_spill] sm:$0xff] }
 0x557   : > { %v3984_v47 = vpop.f32.mrf.mxu1 }
 0x558   : > { %v4559_v13 = vadd.f32 %v4527_v51, %v12289_v59  ;;  %v4681_v36 = vpack.c.bf16 %v4660_v26, %v4659_v19  ;;  %v4629_v48 = vadd.f32 %v11021_v21, %v4590_v37 }
 0x559   : > { %v3987_v46 = vpop.f32.mrf.mxu1 }
 0x55a   : > { %v4591_v24 = vadd.f32 %v4559_v13, %v12290_v63  ;;  %v4528_v15 = vmul.f32 %v11009_v31, %v3987_v46  ;;  %8007 = vmatprep.mubr.msk.bf16.mxu0 %vm847_vm0, %v4681_v36  ;;  %v4661_v7 = vmax.f32 %v4629_v48, 0.0  ;;  %v12298_v36 = vld [vmem:[#allocation42_spill] sm:$0xff] }
 0x55b   : > { %v3989_v50 = vpop.f32.mrf.mxu1 }
 0x55c   : > { %v4630_v40 = vadd.f32 %v11021_v21, %v4591_v24  ;;  %v4560_v39 = vadd.f32 %v4528_v15, %v12291_v44  ;;  %v12299_v24 = vld [vmem:[#allocation18_spill] sm:$0xff]  ;;  %v12300_v44 = vld [vmem:[#allocation43_spill] sm:$0xff] }
 0x55d   : > { %v3990_v12 = vpop.f32.mrf.mxu1 }
 0x55e   : > { %v4662_v57 = vmax.f32 %v4630_v40, 0.0  ;;  %v4592_v23 = vadd.f32 %v4560_v39, %v10979_v60  ;;  %v4529_v6 = vmul.f32 %v11009_v31, %v3990_v12 }
 0x55f   : > { %v3992_v56 = vpop.f32.mrf.mxu1 }
 0x560   : > { %v4682_v43 = vpack.c.bf16 %v4662_v57, %v4661_v7  ;;  %v4561_v29 = vadd.f32 %v4529_v6, %v12292_v0  ;;  %v4631_v35 = vadd.f32 %v11021_v21, %v4592_v23  ;;  %v12301_v7 = vld [vmem:[#allocation19_spill] sm:$0xff] }
 0x561   : > { %v3995_v33 = vpop.f32.mrf.mxu1 }
 0x562   : > { %v4593_v27 = vadd.f32 %v4561_v29, %v10983_v53  ;;  %v4530_v16 = vmul.f32 %v11009_v31, %v3995_v33  ;;  %8008 = vmatmul.mubr.msk.bf16.gmra.mxu0 %vm847_vm0, %v4682_v43  ;;  %v4663_v30 = vmax.f32 %v4631_v35, 0.0 }
 0x563   : > { %v3997_v3 = vpop.f32.mrf.mxu1 }
 0x564   : > { %v4632_v41 = vadd.f32 %v11021_v21, %v4593_v27  ;;  %v4562_v60 = vadd.f32 %v4530_v16, %v12293_v8  ;;  %v8608_v27 = vld [vmem:[%s12302_s8 + $0x4] ss:$8 sps:$4 sm:$0xff]  }
 0x565   : > { %v3998_v5 = vpop.f32.mrf.mxu1 }
 0x566   : > { %v4664_v9 = vmax.f32 %v4632_v41, 0.0  ;;  %v4594_v38 = vadd.f32 %v4562_v60, %v10987_v45  ;;  %v4531_v49 = vmul.f32 %v11009_v31, %v3998_v5 }
 0x567   : > { %v4000_v52 = vpop.f32.mrf.mxu1 }
 0x568   : > { %v4563_v25 = vadd.f32 %v4531_v49, %v12294_v2  ;;  %v4683_v53 = vpack.c.bf16 %v4664_v9, %v4663_v30  ;;  %v4633_v28 = vadd.f32 %v11021_v21, %v4594_v38  ;;  %v11171_v9 = vld [vmem:[%s12303_s0] ss:$0 sm:$0xff] }
 0x569   : > { %v4003_v22 = vpop.f32.mrf.mxu1 }
 0x56a   : > { %v4595_v58 = vadd.f32 %v4563_v25, %v12295_v10  ;;  %v4532_v32 = vmul.f32 %v11009_v31, %v4003_v22  ;;  %8011 = vmatprep.mubr.msk.bf16.mxu0 %vm847_vm0, %v4683_v53  ;;  %v4665_v20 = vmax.f32 %v4633_v28, 0.0 }
 0x56b   : > { %v4005_v11 = vpop.f32.mrf.mxu1 }
 0x56c   : > { %v4634_v17 = vadd.f32 %v11021_v21, %v4595_v58  ;;  %v4564_v45 = vadd.f32 %v4532_v32, %v12296_v42 }
 0x56d   : > { %v4006_v62 = vpop.f32.mrf.mxu1 }
 0x56e   : > { %v4666_v4 = vmax.f32 %v4634_v17, 0.0  ;;  %v4596_v54 = vadd.f32 %v4564_v45, %v10995_v1  ;;  %v4533_v55 = vmul.f32 %v11009_v31, %v4006_v62  ;;  %v12304_v45 = vmov 0  }
 0x56f   : > { %v4008_v61 = vpop.f32.mrf.mxu1 }
 0x570   : > { %v4684_v14 = vpack.c.bf16 %v4666_v4, %v4665_v20  ;;  %v4565_v19 = vadd.f32 %v4533_v55, %v12297_v18  ;;  %v4635_v37 = vadd.f32 %v11021_v21, %v4596_v54 }
 0x571   : > { %v4011_v26 = vpop.f32.mrf.mxu1 }
 0x572   : > { %v4597_v51 = vadd.f32 %v4565_v19, %v10999_v34  ;;  %v4534_v47 = vmul.f32 %v11009_v31, %v4011_v26  ;;  %8012 = vmatmul.mubr.msk.bf16.gmra.mxu0 %vm847_vm0, %v4684_v14  ;;  %v4667_v48 = vmax.f32 %v4635_v37, 0.0 }
 0x573   : > { %v4013_v59 = vpop.f32.mrf.mxu1 }
 0x574   : > { %v4636_v13 = vadd.f32 %v11021_v21, %v4597_v51  ;;  %v4566_v1 = vadd.f32 %v4534_v47, %v12298_v36 }
 0x575   : > { %v4014_v46 = vpop.f32.mrf.mxu1 }
 0x576   : > { %v4668_v63 = vmax.f32 %v4636_v13, 0.0  ;;  %v4598_v15 = vadd.f32 %v4566_v1, %v12299_v24  ;;  %v4535_v50 = vmul.f32 %v11009_v31, %v4014_v46 }
 0x577   : > { %v4016_v40 = vpop.f32.mrf.mxu1 }
 0x578   : > { %v4567_v39 = vadd.f32 %v4535_v50, %v12300_v44  ;;  %v4685_v34 = vpack.c.bf16 %v4668_v63, %v4667_v48  ;;  %v4637_v12 = vadd.f32 %v11021_v21, %v4598_v15 }
 0x57a   : > { %v4599_v57 = vadd.f32 %v4567_v39, %v12301_v7  ;;  %8015 = vmatprep.mubr.msk.bf16.mxu0 %vm847_vm0, %v4685_v34  ;;  %v4669_v6 = vmax.f32 %v4637_v12, 0.0 }
 0x57c   : > { %v4638_v23 = vadd.f32 %v11021_v21, %v4599_v57 }
 0x57e   : > { %v4670_v56 = vmax.f32 %v4638_v23, 0.0 }
 0x580   : > { %v4686_v43 = vpack.c.bf16 %v4670_v56, %v4669_v6 }
 0x582   : > { %8016 = vmatmul.mubr.msk.bf16.gmra.mxu0 %vm847_vm0, %v4686_v43 }
 0x583   : > { %5431 = vmatprep.mubr.bf16.mxu0 %v8608_v27 }
 0x5d2   : > { %v7989_v0 = vpop.f32.mrf.mxu0 }
 0x5d3   : > { %v4801_v24 = vadd.f32 %v7989_v0, %v11171_v9 }
 0x5d4   : > { %v11163_v29 = vpop.f32.mrf.mxu0 }
 0x5d5   : > { %v4921_v34 = vmax.f32 %v4801_v24, 0.0  ;;  %v4793_v12 = vadd.f32 %v11171_v9, %v11163_v29 }
 0x5d6   : > { %v7990_v31 = vpop.f32.mrf.mxu0 }
 0x5d7   : > { %v4804_v1 = vadd.f32 %v7990_v31, %v11171_v9  ;;  %v4919_v6 = vmax.f32 %v4793_v12, 0.0  ;;  %v8617_v12 = vld [vmem:[%s12302_s8 + $0x34] ss:$8 sps:$4 sm:$0xff]  }
 0x5d8   : > { %v4795_v33 = vpop.f32.mrf.mxu0 }
 0x5d9   : > { %v4922_v50 = vmax.f32 %v4804_v1, 0.0  ;;  %v4796_v40 = vadd.f32 %v11171_v9, %v4795_v33 }
 0x5db   : > { %v5024_v7 = vpack.c.bf16 %v4922_v50, %v4921_v34  ;;  %v4920_v57 = vmax.f32 %v4796_v40, 0.0  ;;  %v8612_v34 = vld [vmem:[%s12302_s8 + $0x20] ss:$8 sps:$4 sm:$0xff]  }
 0x5dd   : > { %v5023_v43 = vpack.c.bf16 %v4920_v57, %v4919_v6  ;;  %v8620_v57 = vld [vmem:[%s12302_s8 + $0x44] ss:$8 sps:$4 sm:$0xff]   ;;  %v8623_v6 = vld [vmem:[%s12302_s8 + $0x54] ss:$8 sps:$4 sm:$0xff]  }
 0x5e2   : > { %v7993_v35 = vpop.f32.mrf.mxu0 }
 0x5e3   : > { %v4817_v19 = vadd.f32 %v7993_v35, %v11171_v9 }
 0x5e4   : > { %v4808_v16 = vpop.f32.mrf.mxu0 }
 0x5e5   : > { %v4925_v13 = vmax.f32 %v4817_v19, 0.0  ;;  %v4809_v36 = vadd.f32 %v11171_v9, %v4808_v16 }
 0x5e6   : > { %v7994_v3 = vpop.f32.mrf.mxu0 }
 0x5e7   : > { %v4820_v61 = vadd.f32 %v7994_v3, %v11171_v9  ;;  %v4923_v15 = vmax.f32 %v4809_v36, 0.0 }
 0x5e8   : > { %v4811_v41 = vpop.f32.mrf.mxu0 }
 0x5e9   : > { %v4926_v37 = vmax.f32 %v4820_v61, 0.0  ;;  %v4812_v51 = vadd.f32 %v11171_v9, %v4811_v41 }
 0x5eb   : > { %v5026_v46 = vpack.c.bf16 %v4926_v37, %v4925_v13  ;;  %v4924_v48 = vmax.f32 %v4812_v51, 0.0 }
 0x5ed   : > { %v5025_v44 = vpack.c.bf16 %v4924_v48, %v4923_v15 }
 0x5f2   : > { %v7997_v21 = vpop.f32.mrf.mxu0 }
 0x5f3   : > { %v4833_v17 = vadd.f32 %v7997_v21, %v11171_v9 }
 0x5f4   : > { %v4824_v8 = vpop.f32.mrf.mxu0 }
 0x5f5   : > { %v4929_v54 = vmax.f32 %v4833_v17, 0.0  ;;  %v4825_v55 = vadd.f32 %v11171_v9, %v4824_v8 }
 0x5f6   : > { %v7998_v60 = vpop.f32.mrf.mxu0 }
 0x5f7   : > { %v4836_v58 = vadd.f32 %v7998_v60, %v11171_v9  ;;  %v4927_v26 = vmax.f32 %v4825_v55, 0.0 }
 0x5f8   : > { %v4827_v5 = vpop.f32.mrf.mxu0 }
 0x5f9   : > { %v4930_v62 = vmax.f32 %v4836_v58, 0.0  ;;  %v4828_v20 = vadd.f32 %v11171_v9, %v4827_v5 }
 0x5fb   : > { %v5028_v14 = vpack.c.bf16 %v4930_v62, %v4929_v54  ;;  %v4928_v18 = vmax.f32 %v4828_v20, 0.0 }
 0x5fd   : > { %v5027_v47 = vpack.c.bf16 %v4928_v18, %v4927_v26 }
 0x602   : > { %v8001_v30 = vpop.f32.mrf.mxu0 }
 0x603   : > { %v4849_v49 = vadd.f32 %v8001_v30, %v11171_v9 }
 0x604   : > { %v4840_v38 = vpop.f32.mrf.mxu0 }
 0x605   : > { %v4933_v53 = vmax.f32 %v4849_v49, 0.0  ;;  %v4841_v22 = vadd.f32 %v11171_v9, %v4840_v38 }
 0x606   : > { %v8002_v52 = vpop.f32.mrf.mxu0 }
 0x607   : > { %v4852_v2 = vadd.f32 %v8002_v52, %v11171_v9  ;;  %v4931_v42 = vmax.f32 %v4841_v22, 0.0 }
 0x608   : > { %v4843_v25 = vpop.f32.mrf.mxu0 }
 0x609   : > { %v4934_v28 = vmax.f32 %v4852_v2, 0.0  ;;  %v4844_v10 = vadd.f32 %v11171_v9, %v4843_v25 }
 0x60b   : > { %v5030_v32 = vpack.c.bf16 %v4934_v28, %v4933_v53  ;;  %v4932_v11 = vmax.f32 %v4844_v10, 0.0 }
 0x60d   : > { %5400 = vmatpush1.bf16.msra.mxu0 %v5030_v32  ;;  %v5029_v4 = vpack.c.bf16 %v4932_v11, %v4931_v42 }
 0x60e   : > { %5401 = vmatprep.subr.bf16.mxu0 %v12304_v45 }
 0x611   : > { %5402 = vmatpush1.bf16.msra.mxu0 %v5029_v4 }
 0x612   : > { %5403 = vmatprep.subr.bf16.mxu0 %v12304_v45  ;;  %v11187_v59 = vpop.f32.mrf.mxu0 }
 0x614   : > { %v11192_v63 = vpop.f32.mrf.mxu0 }
 0x615   : > { %5404 = vmatpush1.bf16.msra.mxu0 %v5028_v14  ;;  %v4857_v24 = vadd.f32 %v11171_v9, %v11192_v63  ;;  %v8614_v63 = vld [vmem:[%s12302_s8 + $0x24] ss:$8 sps:$4 sm:$0xff]  }
 0x616   : > { %5405 = vmatprep.subr.bf16.mxu0 %v12304_v45  ;;  %v8006_v39 = vpop.f32.mrf.mxu0 }
 0x617   : > { %v4868_v26 = vadd.f32 %v8006_v39, %v11171_v9  ;;  %v4935_v40 = vmax.f32 %v4857_v24, 0.0  ;;  %v8611_v39 = vld [vmem:[%s12302_s8 + $0x14] ss:$8 sps:$4 sm:$0xff]  }
 0x618   : > { %v4859_v23 = vpop.f32.mrf.mxu0 }
 0x619   : > { %5406 = vmatpush1.bf16.msra.mxu0 %v5027_v47  ;;  %v4865_v47 = vadd.f32 %v11187_v59, %v11171_v9  ;;  %v4938_v36 = vmax.f32 %v4868_v26, 0.0  ;;  %v4860_v1 = vadd.f32 %v11171_v9, %v4859_v23  ;;  %v8618_v23 = vld [vmem:[%s12302_s8 + $0x40] ss:$8 sps:$4 sm:$0xff]   ;;  %v8680_v26 = vld [vmem:[%s12302_s8 + $0x184] ss:$8 sps:$4 sm:$0xff]  }
 0x61a   : > { %5407 = vmatprep.subr.bf16.mxu0 %v12304_v45 }
 0x61b   : > { %v4937_v48 = vmax.f32 %v4865_v47, 0.0  ;;  %v4936_v50 = vmax.f32 %v4860_v1, 0.0  ;;  %v8682_v1 = vld [vmem:[%s12302_s8 + $0x190] ss:$8 sps:$4 sm:$0xff]  }
 0x61d   : > { %5408 = vmatpush1.bf16.msra.mxu0 %v5026_v46  ;;  %v5032_v15 = vpack.c.bf16 %v4938_v36, %v4937_v48  ;;  %v5031_v59 = vpack.c.bf16 %v4936_v50, %v4935_v40  ;;  %v8685_v40 = vld [vmem:[%s12302_s8 + $0x1a0] ss:$8 sps:$4 sm:$0xff]  }
 0x61e   : > { %5409 = vmatprep.subr.bf16.mxu0 %v12304_v45 }
 0x621   : > { %5410 = vmatpush1.bf16.msra.mxu0 %v5025_v44  ;;  %v8606_v44 = vld [vmem:[%s12302_s8] ss:$8 sps:$4 sm:$0xff]  }
 0x622   : > { %5411 = vmatprep.subr.bf16.mxu0 %v12304_v45  ;;  %v8009_v56 = vpop.f32.mrf.mxu0 }
 0x623   : > { %v4881_v4 = vadd.f32 %v8009_v56, %v11171_v9  ;;  %v8621_v56 = vld [vmem:[%s12302_s8 + $0x50] ss:$8 sps:$4 sm:$0xff]  }
 0x624   : > { %v4872_v0 = vpop.f32.mrf.mxu0 }
 0x625   : > { %5412 = vmatpush1.bf16.msra.mxu0 %v5024_v7  ;;  %v4941_v18 = vmax.f32 %v4881_v4, 0.0  ;;  %v4873_v19 = vadd.f32 %v11171_v9, %v4872_v0  ;;  %v8615_v7 = vld [vmem:[%s12302_s8 + $0x30] ss:$8 sps:$4 sm:$0xff]   ;;  %v8624_v0 = vld [vmem:[%s12302_s8 + $0x60] ss:$8 sps:$4 sm:$0xff]  }
 0x626   : > { %5413 = vmatprep.subr.bf16.mxu0 %v12304_v45  ;;  %v8010_v31 = vpop.f32.mrf.mxu0  ;;  %v8666_v4 = vld [vmem:[%s12302_s8 + $0x140] ss:$8 sps:$4 sm:$0xff]  }
 0x627   : > { %v4884_v42 = vadd.f32 %v8010_v31, %v11171_v9  ;;  %v4939_v13 = vmax.f32 %v4873_v19, 0.0  ;;  %v8629_v31 = vld [vmem:[%s12302_s8 + $0x74] ss:$8 sps:$4 sm:$0xff]   ;;  %v8675_v19 = vld [vmem:[%s12302_s8 + $0x170] ss:$8 sps:$4 sm:$0xff]  }
 0x628   : > { %v4875_v33 = vpop.f32.mrf.mxu0 }
 0x629   : > { %5414 = vmatpush1.bf16.msra.mxu0 %v5023_v43  ;;  %v4942_v55 = vmax.f32 %v4884_v42, 0.0  ;;  %v4876_v61 = vadd.f32 %v11171_v9, %v4875_v33  ;;  %v8626_v43 = vld [vmem:[%s12302_s8 + $0x64] ss:$8 sps:$4 sm:$0xff]   ;;  %v8627_v33 = vld [vmem:[%s12302_s8 + $0x70] ss:$8 sps:$4 sm:$0xff]  }
 0x62a   : > { %5415 = vmatprep.subr.bf16.mxu0 %v12304_v45  ;;  %v8709_v42 = vld [vmem:[%s12113_s11 + $0x10] sm:$0xff]  }
 0x62b   : > { %v5034_v37 = vpack.c.bf16 %v4942_v55, %v4941_v18  ;;  %v4940_v51 = vmax.f32 %v4876_v61, 0.0  ;;  %v8669_v55 = vld [vmem:[%s12302_s8 + $0x150] ss:$8 sps:$4 sm:$0xff]   ;;  %v8674_v61 = vld [vmem:[%s12302_s8 + $0x164] ss:$8 sps:$4 sm:$0xff]  }
 0x62c   : > { %v8677_v18 = vld [vmem:[%s12302_s8 + $0x174] ss:$8 sps:$4 sm:$0xff]  }
 0x62d   : > { %v5033_v46 = vpack.c.bf16 %v4940_v51, %v4939_v13  ;;  %v8684_v51 = vld [vmem:[%s12302_s8 + $0x194] ss:$8 sps:$4 sm:$0xff]  }
 0x632   : > { %v8013_v35 = vpop.f32.mrf.mxu0 }
 0x633   : > { %v4897_v22 = vadd.f32 %v8013_v35, %v11171_v9  ;;  %v8632_v35 = vld [vmem:[%s12302_s8 + $0x84] ss:$8 sps:$4 sm:$0xff]  }
 0x634   : > { %v4888_v29 = vpop.f32.mrf.mxu0 }
 0x635   : > { %v4945_v11 = vmax.f32 %v4897_v22, 0.0  ;;  %v4889_v17 = vadd.f32 %v11171_v9, %v4888_v29  ;;  %v8630_v29 = vld [vmem:[%s12302_s8 + $0x80] ss:$8 sps:$4 sm:$0xff]   ;;  %v8656_v22 = vld [vmem:[%s12302_s8 + $0x104] ss:$8 sps:$4 sm:$0xff]  }
 0x636   : > { %v8014_v27 = vpop.f32.mrf.mxu0 }
 0x637   : > { %v4900_v2 = vadd.f32 %v8014_v27, %v11171_v9  ;;  %v4943_v54 = vmax.f32 %v4889_v17, 0.0  ;;  %v8635_v27 = vld [vmem:[%s12302_s8 + $0x94] ss:$8 sps:$4 sm:$0xff]  }
 0x638   : > { %v4891_v16 = vpop.f32.mrf.mxu0  ;;  %v8665_v17 = vld [vmem:[%s12302_s8 + $0x134] ss:$8 sps:$4 sm:$0xff]  }
 0x639   : > { %v4946_v10 = vmax.f32 %v4900_v2, 0.0  ;;  %v4892_v58 = vadd.f32 %v11171_v9, %v4891_v16  ;;  %v8633_v16 = vld [vmem:[%s12302_s8 + $0x90] ss:$8 sps:$4 sm:$0xff]   ;;  %v8648_v2 = vld [vmem:[%s12302_s8 + $0xe0] ss:$8 sps:$4 sm:$0xff]  }
 0x63b   : > { %v5036_v62 = vpack.c.bf16 %v4946_v10, %v4945_v11  ;;  %v4944_v20 = vmax.f32 %v4892_v58, 0.0  ;;  %v8659_v10 = vld [vmem:[%s12302_s8 + $0x114] ss:$8 sps:$4 sm:$0xff]   ;;  %v8657_v58 = vld [vmem:[%s12302_s8 + $0x110] ss:$8 sps:$4 sm:$0xff]  }
 0x63c   : > { %v8660_v11 = vld [vmem:[%s12302_s8 + $0x120] ss:$8 sps:$4 sm:$0xff]  }
 0x63d   : > { %v5035_v14 = vpack.c.bf16 %v4944_v20, %v4943_v54  ;;  %v8668_v20 = vld [vmem:[%s12302_s8 + $0x144] ss:$8 sps:$4 sm:$0xff]   ;;  %v8671_v54 = vld [vmem:[%s12302_s8 + $0x154] ss:$8 sps:$4 sm:$0xff]  }
 0x642   : > { %v8017_v3 = vpop.f32.mrf.mxu0 }
 0x643   : > { %v4913_v21 = vadd.f32 %v8017_v3, %v11171_v9  ;;  %v8638_v3 = vld [vmem:[%s12302_s8 + $0xa4] ss:$8 sps:$4 sm:$0xff]  }
 0x644   : > { %v4904_v41 = vpop.f32.mrf.mxu0 }
 0x645   : > { %v4949_v30 = vmax.f32 %v4913_v21, 0.0  ;;  %v4905_v38 = vadd.f32 %v11171_v9, %v4904_v41  ;;  %v8681_v41 = vld [vmem:[%s12113_s11 + $0x18] sm:$0xff]   ;;  %v8636_v21 = vld [vmem:[%s12302_s8 + $0xa0] ss:$8 sps:$4 sm:$0xff]  }
 0x646   : > { %v8018_v8 = vpop.f32.mrf.mxu0 }
 0x647   : > { %v4916_v60 = vadd.f32 %v8018_v8, %v11171_v9  ;;  %v4947_v28 = vmax.f32 %v4905_v38, 0.0  ;;  %v8641_v8 = vld [vmem:[%s12302_s8 + $0xb4] ss:$8 sps:$4 sm:$0xff]  }
 0x648   : > { %v4907_v5 = vpop.f32.mrf.mxu0  ;;  %v8647_v38 = vld [vmem:[%s12302_s8 + $0xd4] ss:$8 sps:$4 sm:$0xff]  }
 0x649   : > { %v4950_v49 = vmax.f32 %v4916_v60, 0.0  ;;  %v4908_v52 = vadd.f32 %v11171_v9, %v4907_v5  ;;  %v8609_v9 = vld [vmem:[%s12302_s8 + $0x10] ss:$8 sps:$4 sm:$0xff]   ;;  %v8644_v5 = vld [vmem:[%s12302_s8 + $0xc4] ss:$8 sps:$4 sm:$0xff]  }
 0x64a   : > { %v8639_v60 = vld [vmem:[%s12302_s8 + $0xb0] ss:$8 sps:$4 sm:$0xff]  }
 0x64b   : > { %v5038_v25 = vpack.c.bf16 %v4950_v49, %v4949_v30  ;;  %v4948_v53 = vmax.f32 %v4908_v52, 0.0  ;;  %v8642_v30 = vld [vmem:[%s12302_s8 + $0xc0] ss:$8 sps:$4 sm:$0xff]   ;;  %v8645_v49 = vld [vmem:[%s12302_s8 + $0xd0] ss:$8 sps:$4 sm:$0xff]  }
 0x64c   : > { %v8650_v52 = vld [vmem:[%s12302_s8 + $0xe4] ss:$8 sps:$4 sm:$0xff]  }
 0x64d   : > { %5416 = vmatpush2.bf16.msra.mxu0 %v5038_v25  ;;  %v5037_v32 = vpack.c.bf16 %v4948_v53, %v4947_v28  ;;  %v8653_v25 = vld [vmem:[%s12302_s8 + $0xf4] ss:$8 sps:$4 sm:$0xff]   ;;  %v8651_v53 = vld [vmem:[%s12302_s8 + $0xf0] ss:$8 sps:$4 sm:$0xff]   ;;  %v8654_v28 = vld [vmem:[%s12302_s8 + $0x100] ss:$8 sps:$4 sm:$0xff]  }
 0x64e   : > { %5417 = vmatprep.subr.bf16.mxu0 %v12304_v45 }
 0x651   : > { %5418 = vmatpush2.bf16.msra.mxu0 %v5037_v32  ;;  %v8662_v32 = vld [vmem:[%s12302_s8 + $0x124] ss:$8 sps:$4 sm:$0xff]  }
 0x652   : > { %5419 = vmatprep.subr.bf16.mxu0 %v12304_v45 }
 0x655   : > { %5420 = vmatpush2.bf16.msra.mxu0 %v5036_v62  ;;  %v8663_v62 = vld [vmem:[%s12302_s8 + $0x130] ss:$8 sps:$4 sm:$0xff]  }
 0x656   : > { %5421 = vmatprep.subr.bf16.mxu0 %v12304_v45 }
 0x659   : > { %5422 = vmatpush2.bf16.msra.mxu0 %v5035_v14  ;;  %v8672_v14 = vld [vmem:[%s12302_s8 + $0x160] ss:$8 sps:$4 sm:$0xff]  }
 0x65a   : > { %5423 = vmatprep.subr.bf16.mxu0 %v12304_v45 }
 0x65d   : > { %5424 = vmatpush2.bf16.msra.mxu0 %v5034_v37  ;;  %v8678_v37 = vld [vmem:[%s12302_s8 + $0x180] ss:$8 sps:$4 sm:$0xff]  }
 0x65e   : > { %5425 = vmatprep.subr.bf16.mxu0 %v12304_v45 }
 0x661   : > { %5426 = vmatpush2.bf16.msra.mxu0 %v5033_v46  ;;  %v8687_v46 = vld [vmem:[%s12302_s8 + $0x1a4] ss:$8 sps:$4 sm:$0xff]  }
 0x662   : > { %5427 = vmatprep.subr.bf16.mxu0 %v12304_v45 }
 0x665   : > { %5428 = vmatpush2.bf16.msra.mxu0 %v5032_v15 }
 0x666   : > { %5429 = vmatprep.subr.bf16.mxu0 %v12304_v45 }
 0x669   : > { %5430 = vmatpush2.bf16.msra.mxu0 %v5031_v59  ;;  %v8690_v59 = vld [vmem:[%s12302_s8 + $0x1b4] ss:$8 sps:$4 sm:$0xff]  }
 0x66a   : > { %8019 = vmatprep.subr.bf16.mxu0 %v8681_v41 }
 0x66c   : > { %5432 = vmatmul.mubr.bf16.vlgmr.msra.gmra.mxu0 %v8606_v44 }
 0x66d   : > { %5439 = vmatprep.mubr.bf16.mxu0 %v8611_v39  ;;  %8020 = vmatpush3.bf16.msra.mxu0 %v8681_v41 }
 0x66e   : > { %8021 = vmatprep.subr.bf16.mxu0 %v8709_v42 }
 0x671   : > { %8022 = vmatpush3.bf16.msra.mxu0 %v8709_v42  ;;  %v12307_v42 = vld [vmem:[#allocation12_spill] sm:$0xff] }
 0x674   : > { %5440 = vmatmul.mubr.bf16.gmra.mxu0 %v8609_v9 }
 0x675   : > { %5447 = vmatprep.mubr.bf16.mxu0 %v8614_v63 }
 0x67c   : > { %5448 = vmatmul.mubr.bf16.gmra.mxu0 %v8612_v34  ;;  %v8688_v34 = vld [vmem:[%s12302_s8 + $0x1b0] ss:$8 sps:$4 sm:$0xff]  }
 0x67d   : > { %5455 = vmatprep.mubr.bf16.mxu0 %v8617_v12  ;;  %v8693_v12 = vld [vmem:[%s12302_s8 + $0x1c4] ss:$8 sps:$4 sm:$0xff]  }
 0x684   : > { %5456 = vmatmul.mubr.bf16.gmra.mxu0 %v8615_v7 }
 0x685   : > { %5463 = vmatprep.mubr.bf16.mxu0 %v8620_v57  ;;  %v8716_v57 = vld [vmem:[%s12113_s11 + $0x8] sm:$0xff]  }
 0x686   : > { %8023 = vmatprep.subr.bf16.mxu0 %v8716_v57 }
 0x687   : > { %8024 = vmatpush3.bf16.msra.mxu0 %v8716_v57 }
 0x68c   : > { %5464 = vmatmul.mubr.bf16.gmra.mxu0 %v8618_v23 }
 0x68d   : > { %5471 = vmatprep.mubr.bf16.mxu0 %v8623_v6 }
 0x694   : > { %5472 = vmatmul.mubr.bf16.gmra.mxu0 %v8621_v56 }
 0x695   : > { %5479 = vmatprep.mubr.bf16.mxu0 %v8626_v43  ;;  %v8691_v43 = vld [vmem:[%s12302_s8 + $0x1c0] ss:$8 sps:$4 sm:$0xff]  }
 0x69c   : > { %5480 = vmatmul.mubr.bf16.gmra.mxu0 %v8624_v0  ;;  %v8696_v0 = vld [vmem:[%s12302_s8 + $0x1d4] ss:$8 sps:$4 sm:$0xff]  }
 0x69d   : > { %5487 = vmatprep.mubr.bf16.mxu0 %v8629_v31 }
 0x6a4   : > { %5488 = vmatmul.mubr.bf16.gmra.mxu0 %v8627_v33 }
 0x6a5   : > { %5495 = vmatprep.mubr.bf16.mxu0 %v8632_v35 }
 0x6ac   : > { %5496 = vmatmul.mubr.bf16.gmra.mxu0 %v8630_v29 }
 0x6ad   : > { %5503 = vmatprep.mubr.bf16.mxu0 %v8635_v27  ;;  %v8694_v27 = vld [vmem:[%s12302_s8 + $0x1d0] ss:$8 sps:$4 sm:$0xff]  }
 0x6b4   : > { %5504 = vmatmul.mubr.bf16.gmra.mxu0 %v8633_v16  ;;  %v8699_v16 = vld [vmem:[%s12302_s8 + $0x1e4] ss:$8 sps:$4 sm:$0xff]  }
 0x6b5   : > { %5511 = vmatprep.mubr.bf16.mxu0 %v8638_v3 }
 0x6bc   : > { %5512 = vmatmul.mubr.bf16.gmra.mxu0 %v8636_v21 }
 0x6bd   : > { %5519 = vmatprep.mubr.bf16.mxu0 %v8641_v8 }
 0x6c4   : > { %5520 = vmatmul.mubr.bf16.gmra.mxu0 %v8639_v60  ;;  %v8697_v60 = vld [vmem:[%s12302_s8 + $0x1e0] ss:$8 sps:$4 sm:$0xff]  }
 0x6c5   : > { %5527 = vmatprep.mubr.bf16.mxu0 %v8644_v5  ;;  %v8702_v5 = vld [vmem:[%s12302_s8 + $0x1f4] ss:$8 sps:$4 sm:$0xff]  }
 0x6cc   : > { %5528 = vmatmul.mubr.bf16.gmra.mxu0 %v8642_v30 }
 0x6cd   : > { %5535 = vmatprep.mubr.bf16.mxu0 %v8647_v38 }
 0x6d4   : > { %5536 = vmatmul.mubr.bf16.gmra.mxu0 %v8645_v49 }
 0x6d5   : > { %5543 = vmatprep.mubr.bf16.mxu0 %v8650_v52 }
 0x6dc   : > { %5544 = vmatmul.mubr.bf16.gmra.mxu0 %v8648_v2  ;;  %v8700_v2 = vld [vmem:[%s12302_s8 + $0x1f0] ss:$8 sps:$4 sm:$0xff]  }
 0x6dd   : > { %5551 = vmatprep.mubr.bf16.mxu0 %v8653_v25  ;;  %v8705_v25 = vld [vmem:[%s12302_s8 + $0x204] ss:$8 sps:$4 sm:$0xff]  }
 0x6e4   : > { %5552 = vmatmul.mubr.bf16.gmra.mxu0 %v8651_v53 }
 0x6e5   : > { %5559 = vmatprep.mubr.bf16.mxu0 %v8656_v22 }
 0x6ec   : > { %5560 = vmatmul.mubr.bf16.gmra.mxu0 %v8654_v28  ;;  %v11461_v28 = vld [vmem:[%s12305_s9] sm:$0xff] }
 0x6ed   : > { %5567 = vmatprep.mubr.bf16.mxu0 %v8659_v10 }
 0x6f4   : > { %5568 = vmatmul.mubr.bf16.gmra.mxu0 %v8657_v58 }
 0x6f5   : > { %5575 = vmatprep.mubr.bf16.mxu0 %v8662_v32  ;;  %v8703_v32 = vld [vmem:[%s12302_s8 + $0x200] ss:$8 sps:$4 sm:$0xff]  }
 0x6fc   : > { %5576 = vmatmul.mubr.bf16.gmra.mxu0 %v8660_v11  ;;  %v12306_v11 = vld [vmem:[#allocation11_spill] sm:$0xff] }
 0x6fd   : > { %5583 = vmatprep.mubr.bf16.mxu0 %v8665_v17  ;;  %v5725_v17 = vrot.slane %v11461_v28, %v12306_v11 }
 0x704   : > { %5584 = vmatmul.mubr.bf16.gmra.mxu0 %v8663_v62  ;;  %v5749_v62 = vrot.slane %v11461_v28, %v12307_v42 }
 0x705   : > { %5591 = vmatprep.mubr.bf16.mxu0 %v8668_v20  ;;  %v8708_v20 = vld [vmem:[%s12302_s8 + $0x214] ss:$8 sps:$4 sm:$0xff]  }
 0x70c   : > { %5592 = vmatmul.mubr.bf16.gmra.mxu0 %v8666_v4 }
 0x70d   : > { %5599 = vmatprep.mubr.bf16.mxu0 %v8671_v54 }
 0x714   : > { %5600 = vmatmul.mubr.bf16.gmra.mxu0 %v8669_v55 }
 0x715   : > { %5607 = vmatprep.mubr.bf16.mxu0 %v8674_v61 }
 0x71c   : > { %5608 = vmatmul.mubr.bf16.gmra.mxu0 %v8672_v14 }
 0x71d   : > { %5615 = vmatprep.mubr.bf16.mxu0 %v8677_v18 }
 0x724   : > { %5616 = vmatmul.mubr.bf16.gmra.mxu0 %v8675_v19 }
 0x725   : > { %5623 = vmatprep.mubr.bf16.mxu0 %v8680_v26  ;;  %v8706_v26 = vld [vmem:[%s12302_s8 + $0x210] ss:$8 sps:$4 sm:$0xff]  }
 0x72c   : > { %v11383_v47 = vpop.f32.mrf.mxu0  ;;  %5624 = vmatmul.mubr.bf16.gmra.mxu0 %v8678_v37 }
 0x72d   : > { %5631 = vmatprep.mubr.bf16.mxu0 %v8684_v51  ;;  %v5726_v55 = vmul.f32 %v5725_v17, %v11383_v47 }
 0x72e   : > { %v5435_v13 = vpop.f32.mrf.mxu0 }
 0x72f   : > { %v8712_v13 = vld [vmem:[%s12302_s8 + $0x224] ss:$8 sps:$4 sm:$0xff]  }
 0x730   : > { %v11385_v36 = vpop.f32.mrf.mxu0 }
 0x731   : > { %v5727_v37 = vmul.f32 %v5725_v17, %v11385_v36  ;;  %v8710_v36 = vld [vmem:[%s12302_s8 + $0x220] ss:$8 sps:$4 sm:$0xff]  }
 0x732   : > { %v5438_v48 = vpop.f32.mrf.mxu0 }
 0x734   : > { %v11393_v24 = vpop.f32.mrf.mxu0  ;;  %5632 = vmatmul.mubr.bf16.gmra.mxu0 %v8682_v1 }
 0x735   : > { %5639 = vmatprep.mubr.bf16.mxu0 %v8687_v46  ;;  %v5728_v48 = vmul.f32 %v5725_v17, %v11393_v24 }
 0x736   : > { %v5443_v15 = vpop.f32.mrf.mxu0 }
 0x738   : > { %v11395_v50 = vpop.f32.mrf.mxu0 }
 0x73a   : > { %v5446_v44 = vpop.f32.mrf.mxu0 }
 0x73c   : > { %v11403_v39 = vpop.f32.mrf.mxu0  ;;  %5640 = vmatmul.mubr.bf16.gmra.mxu0 %v8685_v40 }
 0x73d   : > { %5647 = vmatprep.mubr.bf16.mxu0 %v8690_v59 }
 0x73e   : > { %v5451_v9 = vpop.f32.mrf.mxu0 }
 0x73f   : > { %v5729_v9 = vmul.f32 %v5725_v17, %v11395_v50  ;;  %v8713_v50 = vld [vmem:[%s12302_s8 + $0x230] ss:$8 sps:$4 sm:$0xff]  }
 0x740   : > { %v11405_v63 = vpop.f32.mrf.mxu0 }
 0x742   : > { %v5454_v7 = vpop.f32.mrf.mxu0 }
 0x744   : > { %v11416_v23 = vpop.f32.mrf.mxu0  ;;  %5648 = vmatmul.mubr.bf16.gmra.mxu0 %v8688_v34 }
 0x745   : > { %5655 = vmatprep.mubr.bf16.mxu0 %v8693_v12  ;;  %v8715_v12 = vld [vmem:[%s12302_s8 + $0x234] ss:$8 sps:$4 sm:$0xff]   ;;  %s8918_s8 = smov [#allocation2]  }
 0x746   : > { %v5459_v6 = vpop.f32.mrf.mxu0  ;;  %s8856_s5 = sshll.u32 %s8918_s8, 4  ;;  %s8857_s5 = int_to_ptr.vmem [resolvable:$false] %s8856_s5 }
 0x747   : > { %v5730_v6 = vmul.f32 %v5725_v17, %v11403_v39  ;;  %v5732_v39 = vmul.f32 %v5725_v17, %v11416_v23  ;;  %v8717_v23 = vld [vmem:[%s12113_s11] sm:$0xff]   ;;  %s8858_s3 = scalar_lea.vmem %s8857_s5, 128  ;;  %p8859_p0 = scmp.lt.s32.totalorder %s7284_s24, %s8857_s5 }
 0x748   : > { %v11418_v56 = vpop.f32.mrf.mxu0  ;;  %8025 = vmatprep.subr.bf16.mxu0 %v8717_v23  ;;  %p8860_p1 = scmp.lt.s32.totalorder %s8858_s3, %s8852_s29 }
 0x749   : > { %8026 = vmatpush3.bf16.msra.mxu0 %v8717_v23 }
 0x74a   : > { %v5462_v31 = vpop.f32.mrf.mxu0  ;;  %p8861_p2 = por %p8860_p1, %p8859_p0 }
 0x74c   : > { %v11426_v33 = vpop.f32.mrf.mxu0  ;;  %5656 = vmatmul.mubr.bf16.gmra.mxu0 %v8691_v43  ;;  %p8862_p3 = pnand %p8861_p2, %p8855_p13 }
 0x74d   : > { %5663 = vmatprep.mubr.bf16.mxu0 %v8696_v0 }
 0x74e   : > { %v5467_v35 = vpop.f32.mrf.mxu0 }
 0x750   : > { %v11428_v29 = vpop.f32.mrf.mxu0 }
 0x752   : > { %v5470_v3 = vpop.f32.mrf.mxu0 }
 0x754   : > { %v11436_v41 = vpop.f32.mrf.mxu0  ;;  %5664 = vmatmul.mubr.bf16.gmra.mxu0 %v8694_v27  ;;  %v5731_v27 = vmul.f32 %v5725_v17, %v11405_v63  ;;  %v12309_v63 = vld [vmem:[#allocation13_spill] sm:$0xff] }
 0x755   : > { %5671 = vmatprep.mubr.bf16.mxu0 %v8699_v16 }
 0x756   : > { %v5475_v21 = vpop.f32.mrf.mxu0 }
 0x758   : > { %v11438_v8 = vpop.f32.mrf.mxu0 }
 0x75a   : > { %v5478_v30 = vpop.f32.mrf.mxu0 }
 0x75c   : > { %v11446_v38 = vpop.f32.mrf.mxu0  ;;  %5672 = vmatmul.mubr.bf16.gmra.mxu0 %v8697_v60 }
 0x75d   : > { %5679 = vmatprep.mubr.bf16.mxu0 %v8702_v5 }
 0x75e   : > { %v5483_v49 = vpop.f32.mrf.mxu0 }
 0x760   : > { %v11448_v52 = vpop.f32.mrf.mxu0 }
 0x762   : > { %v5486_v53 = vpop.f32.mrf.mxu0 }
 0x763   : > { %v12308_v53 = vld [vmem:[#allocation14_spill] sm:$0xff] }
 0x764   : > { %v11456_v22 = vpop.f32.mrf.mxu0  ;;  %5680 = vmatmul.mubr.bf16.gmra.mxu0 %v8700_v2 }
 0x765   : > { %5687 = vmatprep.mubr.bf16.mxu0 %v8705_v25  ;;  %v5733_v25 = vmul.f32 %v5725_v17, %v11418_v56 }
 0x766   : > { %v5491_v10 = vpop.f32.mrf.mxu0 }
 0x767   : > { %v5737_v10 = vrot.slane %v11461_v28, %v12308_v53 }
 0x768   : > { %v11463_v58 = vpop.f32.mrf.mxu0 }
 0x76a   : > { %v5494_v4 = vpop.f32.mrf.mxu0 }
 0x76c   : > { %v5497_v54 = vpop.f32.mrf.mxu0  ;;  %5688 = vmatmul.mubr.bf16.gmra.mxu0 %v8703_v32 }
 0x76d   : > { %v5750_v61 = vmul.f32 %v5749_v62, %v5497_v54  ;;  %5695 = vmatprep.mubr.bf16.mxu0 %v8708_v20  ;;  %v5769_v20 = vrot.slane %v11461_v28, %v12309_v63 }
 0x76e   : > { %v5499_v14 = vpop.f32.mrf.mxu0 }
 0x76f   : > { %v11476_v18 = vadd.f32 %v5750_v61, %v5726_v55  ;;  %v5738_v61 = vmul.f32 %v5737_v10, %v11426_v33 }
 0x770   : > { %v5500_v19 = vpop.f32.mrf.mxu0 }
 0x771   : > { %v5751_v51 = vmul.f32 %v5749_v62, %v5500_v19  ;;  %v5739_v19 = vmul.f32 %v5737_v10, %v11428_v29  ;;  %v5742_v29 = vmul.f32 %v5737_v10, %v11446_v38  ;;  %v5745_v38 = vmul.f32 %v5737_v10, %v11463_v58 }
 0x772   : > { %v5502_v1 = vpop.f32.mrf.mxu0 }
 0x773   : > { %v11485_v46 = vadd.f32 %v5751_v51, %v5727_v37  ;;  %v5740_v1 = vmul.f32 %v5737_v10, %v11436_v41  ;;  %v5743_v41 = vmul.f32 %v5737_v10, %v11448_v52 }
 0x774   : > { %v5505_v47 = vpop.f32.mrf.mxu0  ;;  %5696 = vmatmul.mubr.bf16.gmra.mxu0 %v8706_v26 }
 0x775   : > { %v5752_v15 = vmul.f32 %v5749_v62, %v5505_v47  ;;  %5703 = vmatprep.mubr.bf16.mxu0 %v8712_v13 }
 0x776   : > { %v5507_v40 = vpop.f32.mrf.mxu0 }
 0x777   : > { %v11488_v59 = vadd.f32 %v5752_v15, %v5728_v48  ;;  %v5741_v40 = vmul.f32 %v5737_v10, %v11438_v8  ;;  %v5744_v8 = vmul.f32 %v5737_v10, %v11456_v22 }
 0x778   : > { %v5508_v44 = vpop.f32.mrf.mxu0 }
 0x779   : > { %v5753_v34 = vmul.f32 %v5749_v62, %v5508_v44 }
 0x77a   : > { %v5510_v7 = vpop.f32.mrf.mxu0 }
 0x77b   : > { %v11497_v57 = vadd.f32 %v5753_v34, %v5729_v9 }
 0x77c   : > { %v5513_v24 = vpop.f32.mrf.mxu0  ;;  %5704 = vmatmul.mubr.bf16.gmra.mxu0 %v8710_v36 }
 0x77d   : > { %v5754_v43 = vmul.f32 %v5749_v62, %v5513_v24  ;;  %5711 = vmatprep.mubr.bf16.mxu0 %v8715_v12 }
 0x77e   : > { %v5515_v0 = vpop.f32.mrf.mxu0 }
 0x77f   : > { %v11500_v31 = vadd.f32 %v5754_v43, %v5730_v6 }
 0x780   : > { %v5516_v35 = vpop.f32.mrf.mxu0 }
 0x781   : > { %v5755_v16 = vmul.f32 %v5749_v62, %v5516_v35 }
 0x782   : > { %v5518_v3 = vpop.f32.mrf.mxu0 }
 0x783   : > { %v11506_v21 = vadd.f32 %v5755_v16, %v5731_v27 }
 0x784   : > { %v5521_v60 = vpop.f32.mrf.mxu0  ;;  %5712 = vmatmul.mubr.bf16.gmra.mxu0 %v8713_v50 }
 0x785   : > { %v5756_v5 = vmul.f32 %v5749_v62, %v5521_v60 }
 0x786   : > { %v5523_v30 = vpop.f32.mrf.mxu0 }
 0x787   : > { %v11509_v49 = vadd.f32 %v5756_v5, %v5732_v39  ;;  %v12310_v5 = vld [vmem:[#allocation38_spill] sm:$0xff] }
 0x788   : > { %v5524_v2 = vpop.f32.mrf.mxu0  ;;  %v5789_v30 = vrot.slane %v11461_v28, %v12310_v5 }
 0x789   : > { %v5757_v32 = vmul.f32 %v5749_v62, %v5524_v2 }
 0x78a   : > { %v5526_v4 = vpop.f32.mrf.mxu0 }
 0x78b   : > { %v11516_v54 = vadd.f32 %v5757_v32, %v5733_v25 }
 0x78c   : > { %v5529_v55 = vpop.f32.mrf.mxu0 }
 0x78d   : > { %v5770_v14 = vmul.f32 %v5769_v20, %v5529_v55 }
 0x78e   : > { %v5531_v56 = vpop.f32.mrf.mxu0 }
 0x78f   : > { %v11522_v17 = vadd.f32 %v5770_v14, %v5738_v61 }
 0x790   : > { %v5532_v62 = vpop.f32.mrf.mxu0 }
 0x791   : > { %v5771_v26 = vmul.f32 %v5769_v20, %v5532_v62 }
 0x792   : > { %v5534_v37 = vpop.f32.mrf.mxu0 }
 0x793   : > { %v11525_v51 = vadd.f32 %v5771_v26, %v5739_v19 }
 0x794   : > { %v5537_v13 = vpop.f32.mrf.mxu0 }
 0x795   : > { %v5772_v47 = vmul.f32 %v5769_v20, %v5537_v13 }
 0x796   : > { %v5539_v48 = vpop.f32.mrf.mxu0 }
 0x797   : > { %v11528_v15 = vadd.f32 %v5772_v47, %v5740_v1 }
 0x798   : > { %v5540_v33 = vpop.f32.mrf.mxu0 }
 0x799   : > { %v5773_v44 = vmul.f32 %v5769_v20, %v5540_v33 }
 0x79a   : > { %v5542_v36 = vpop.f32.mrf.mxu0 }
 0x79b   : > { %v11531_v9 = vadd.f32 %v5773_v44, %v5741_v40 }
 0x79c   : > { %v5545_v34 = vpop.f32.mrf.mxu0 }
 0x79d   : > { %v5774_v12 = vmul.f32 %v5769_v20, %v5545_v34 }
 0x79e   : > { %v5547_v7 = vpop.f32.mrf.mxu0 }
 0x79f   : > { %v11534_v24 = vadd.f32 %v5774_v12, %v5742_v29 }
 0x7a0   : > { %v5548_v6 = vpop.f32.mrf.mxu0 }
 0x7a1   : > { %v5775_v43 = vmul.f32 %v5769_v20, %v5548_v6 }
 0x7a2   : > { %v5550_v0 = vpop.f32.mrf.mxu0 }
 0x7a3   : > { %v11537_v35 = vadd.f32 %v5775_v43, %v5743_v41 }
 0x7a4   : > { %v5553_v50 = vpop.f32.mrf.mxu0 }
 0x7a5   : > { %v5776_v27 = vmul.f32 %v5769_v20, %v5553_v50 }
 0x7a6   : > { %v5555_v16 = vpop.f32.mrf.mxu0 }
 0x7a7   : > { %v11540_v3 = vadd.f32 %v5776_v27, %v5744_v8 }
 0x7a8   : > { %v5556_v60 = vpop.f32.mrf.mxu0 }
 0x7a9   : > { %v5777_v39 = vmul.f32 %v5769_v20, %v5556_v60 }
 0x7aa   : > { %v5558_v2 = vpop.f32.mrf.mxu0 }
 0x7ab   : > { %v11545_v52 = vadd.f32 %v5777_v39, %v5745_v38 }
 0x7ac   : > { %v5561_v25 = vpop.f32.mrf.mxu0 }
 0x7ad   : > { %v5790_v32 = vmul.f32 %v5789_v30, %v5561_v25 }
 0x7ae   : > { %v5563_v4 = vpop.f32.mrf.mxu0 }
 0x7af   : > { %v11548_v23 = vadd.f32 %v5790_v32, %v11476_v18 }
 0x7b0   : > { %v5564_v22 = vpop.f32.mrf.mxu0 }
 0x7b1   : > { %v5791_v55 = vmul.f32 %v5789_v30, %v5564_v22 }
 0x7b2   : > { %v5566_v61 = vpop.f32.mrf.mxu0 }
 0x7b3   : > { %v11551_v14 = vadd.f32 %v5791_v55, %v11485_v46 }
 0x7b4   : > { %v5569_v58 = vpop.f32.mrf.mxu0 }
 0x7b5   : > { %v5792_v10 = vmul.f32 %v5789_v30, %v5569_v58 }
 0x7b6   : > { %v5571_v20 = vpop.f32.mrf.mxu0 }
 0x7b7   : > { %v11554_v56 = vadd.f32 %v5792_v10, %v11488_v59 }
 0x7b8   : > { %v5572_v62 = vpop.f32.mrf.mxu0 }
 0x7b9   : > { %v5793_v19 = vmul.f32 %v5789_v30, %v5572_v62 }
 0x7ba   : > { %v5574_v26 = vpop.f32.mrf.mxu0 }
 0x7bb   : > { %v11557_v37 = vadd.f32 %v5793_v19, %v11497_v57  ;;  %v12311_v57 = vld [vmem:[#allocation41_spill] sm:$0xff]  ;;  %v12312_v26 = vld [vmem:[#allocation28_spill] sm:$0xff] }
 0x7bc   : > { %v5577_v18 = vpop.f32.mrf.mxu0  ;;  %v5809_v7 = vrot.slane %v11461_v28, %v12311_v57 }
 0x7bd   : > { %v5794_v13 = vmul.f32 %v5789_v30, %v5577_v18  ;;  %v11592_v18 = vrot.slane %v11461_v28, %v12312_v26 }
 0x7be   : > { %v5579_v1 = vpop.f32.mrf.mxu0 }
 0x7bf   : > { %v5802_v47 = vadd.f32 %v5794_v13, %v11500_v31 }
 0x7c0   : > { %v5580_v48 = vpop.f32.mrf.mxu0 }
 0x7c1   : > { %v5795_v46 = vmul.f32 %v5789_v30, %v5580_v48 }
 0x7c2   : > { %v5582_v33 = vpop.f32.mrf.mxu0 }
 0x7c3   : > { %v11561_v40 = vadd.f32 %v5795_v46, %v11506_v21 }
 0x7c4   : > { %v5585_v44 = vpop.f32.mrf.mxu0 }
 0x7c5   : > { %v5796_v59 = vmul.f32 %v5789_v30, %v5585_v44 }
 0x7c6   : > { %v5587_v36 = vpop.f32.mrf.mxu0 }
 0x7c7   : > { %v5804_v34 = vadd.f32 %v5796_v59, %v11509_v49 }
 0x7c8   : > { %v5588_v29 = vpop.f32.mrf.mxu0 }
 0x7c9   : > { %v5797_v12 = vmul.f32 %v5789_v30, %v5588_v29 }
 0x7ca   : > { %v5590_v6 = vpop.f32.mrf.mxu0 }
 0x7cb   : > { %v11567_v41 = vadd.f32 %v5797_v12, %v11516_v54 }
 0x7cc   : > { %v5593_v31 = vpop.f32.mrf.mxu0 }
 0x7cd   : > { %v5810_v43 = vmul.f32 %v5809_v7, %v5593_v31 }
 0x7ce   : > { %v5595_v0 = vpop.f32.mrf.mxu0 }
 0x7cf   : > { %v11570_v21 = vadd.f32 %v5810_v43, %v11522_v17 }
 0x7d0   : > { %v5596_v50 = vpop.f32.mrf.mxu0 }
 0x7d1   : > { %v5811_v8 = vmul.f32 %v5809_v7, %v5596_v50 }
 0x7d2   : > { %v5598_v27 = vpop.f32.mrf.mxu0 }
 0x7d3   : > { %v11573_v49 = vadd.f32 %v5811_v8, %v11525_v51 }
 0x7d4   : > { %v5601_v16 = vpop.f32.mrf.mxu0 }
 0x7d5   : > { %v5812_v60 = vmul.f32 %v5809_v7, %v5601_v16 }
 0x7d6   : > { %v5603_v38 = vpop.f32.mrf.mxu0 }
 0x7d7   : > { %v11576_v39 = vadd.f32 %v5812_v60, %v11528_v15 }
 0x7d8   : > { %v5604_v54 = vpop.f32.mrf.mxu0 }
 0x7d9   : > { %v5813_v30 = vmul.f32 %v5809_v7, %v5604_v54 }
 0x7da   : > { %v5606_v2 = vpop.f32.mrf.mxu0 }
 0x7db   : > { %v11579_v25 = vadd.f32 %v5813_v30, %v11531_v9 }
 0x7dc   : > { %v5609_v17 = vpop.f32.mrf.mxu0 }
 0x7dd   : > { %v5814_v32 = vmul.f32 %v5809_v7, %v5609_v17 }
 0x7de   : > { %v5611_v4 = vpop.f32.mrf.mxu0 }
 0x7df   : > { %v11582_v22 = vadd.f32 %v5814_v32, %v11534_v24 }
 0x7e0   : > { %v5612_v51 = vpop.f32.mrf.mxu0 }
 0x7e1   : > { %v5815_v55 = vmul.f32 %v5809_v7, %v5612_v51 }
 0x7e2   : > { %v5614_v61 = vpop.f32.mrf.mxu0 }
 0x7e3   : > { %v11585_v58 = vadd.f32 %v5815_v55, %v11537_v35 }
 0x7e4   : > { %v5617_v15 = vpop.f32.mrf.mxu0 }
 0x7e5   : > { %v5816_v10 = vmul.f32 %v5809_v7, %v5617_v15 }
 0x7e6   : > { %v5619_v20 = vpop.f32.mrf.mxu0 }
 0x7e7   : > { %v11588_v62 = vadd.f32 %v5816_v10, %v11540_v3 }
 0x7e8   : > { %v5620_v9 = vpop.f32.mrf.mxu0 }
 0x7e9   : > { %v5817_v19 = vmul.f32 %v5809_v7, %v5620_v9 }
 0x7ea   : > { %v5622_v24 = vpop.f32.mrf.mxu0 }
 0x7eb   : > { %v11595_v13 = vadd.f32 %v5817_v19, %v11545_v52 }
 0x7ec   : > { %v5625_v1 = vpop.f32.mrf.mxu0 }
 0x7ed   : > { %v5830_v35 = vmul.f32 %v11592_v18, %v5625_v1  ;;  %v11622_v1 = vld [vmem:[%s12305_s9 + $0x8] ss:$0 sm:$0xff] }
 0x7ee   : > { %v5627_v48 = vpop.f32.mrf.mxu0 }
 0x7ef   : > { %v5838_v46 = vadd.f32 %v5830_v35, %v11548_v23 }
 0x7f0   : > { %v5628_v33 = vpop.f32.mrf.mxu0 }
 0x7f2   : > { %v5630_v44 = vpop.f32.mrf.mxu0 }
 0x7f3   : > { %v5831_v44 = vmul.f32 %v11592_v18, %v5628_v33 }
 0x7f4   : > { %v5633_v3 = vpop.f32.mrf.mxu0 }
 0x7f5   : > { %v5832_v59 = vmul.f32 %v11592_v18, %v5633_v3 }
 0x7f6   : > { %v5635_v36 = vpop.f32.mrf.mxu0 }
 0x7f7   : > { %v5840_v29 = vadd.f32 %v5832_v59, %v11554_v56 }
 0x7f8   : > { %v5636_v12 = vpop.f32.mrf.mxu0 }
 0x7fa   : > { %v5638_v7 = vpop.f32.mrf.mxu0 }
 0x7fc   : > { %v5641_v6 = vpop.f32.mrf.mxu0 }
 0x7fd   : > { %v5834_v52 = vmul.f32 %v11592_v18, %v5641_v6 }
 0x7fe   : > { %v5643_v31 = vpop.f32.mrf.mxu0 }
 0x7ff   : > { %v11602_v43 = vadd.f32 %v5834_v52, %v5802_v47  ;;  %v5839_v52 = vadd.f32 %v5831_v44, %v11551_v14 }
 0x800   : > { %v11604_v0 = vpop.f32.mrf.mxu0 }
 0x802   : > { %v5646_v50 = vpop.f32.mrf.mxu0 }
 0x804   : > { %v5649_v23 = vpop.f32.mrf.mxu0 }
 0x805   : > { %v5836_v8 = vmul.f32 %v11592_v18, %v5649_v23  ;;  %v11634_v23 = vld [vmem:[%s12112_s10] ss:$0 sm:$0xff] }
 0x806   : > { %v5651_v27 = vpop.f32.mrf.mxu0 }
 0x807   : > { %v11607_v16 = vadd.f32 %v5836_v8, %v5804_v34  ;;  %v12313_v34 = vld [vmem:[#allocation40_spill] sm:$0xff] }
 0x808   : > { %v11609_v60 = vpop.f32.mrf.mxu0  ;;  %v11615_v9 = vrot.slane %v11461_v28, %v12313_v34 }
 0x80a   : > { %v5654_v56 = vpop.f32.mrf.mxu0 }
 0x80b   : > { %v5833_v56 = vmul.f32 %v11592_v18, %v5636_v12 }
 0x80c   : > { %v5657_v38 = vpop.f32.mrf.mxu0 }
 0x80d   : > { %v5850_v35 = vmul.f32 %v11615_v9, %v5657_v38 }
 0x80e   : > { %v5659_v54 = vpop.f32.mrf.mxu0 }
 0x80f   : > { %v5858_v36 = vadd.f32 %v5850_v35, %v11570_v21 }
 0x810   : > { %v5660_v30 = vpop.f32.mrf.mxu0 }
 0x811   : > { %v5851_v28 = vmul.f32 %v11615_v9, %v5660_v30 }
 0x812   : > { %v5662_v2 = vpop.f32.mrf.mxu0 }
 0x813   : > { %v5859_v8 = vadd.f32 %v5851_v28, %v11573_v49  ;;  %v5841_v49 = vadd.f32 %v5833_v56, %v11557_v37 }
 0x814   : > { %v5665_v17 = vpop.f32.mrf.mxu0 }
 0x815   : > { %v5852_v27 = vmul.f32 %v11615_v9, %v5665_v17 }
 0x816   : > { %v5667_v32 = vpop.f32.mrf.mxu0 }
 0x817   : > { %v5860_v2 = vadd.f32 %v5852_v27, %v11576_v39 }
 0x818   : > { %v5668_v47 = vpop.f32.mrf.mxu0 }
 0x819   : > { %v5853_v32 = vmul.f32 %v11615_v9, %v5668_v47  ;;  %v5835_v47 = vmul.f32 %v11592_v18, %v11604_v0 }
 0x81a   : > { %v5670_v4 = vpop.f32.mrf.mxu0 }
 0x81c   : > { %v5673_v51 = vpop.f32.mrf.mxu0 }
 0x81d   : > { %v5854_v44 = vmul.f32 %v11615_v9, %v5673_v51 }
 0x81e   : > { %v5675_v55 = vpop.f32.mrf.mxu0 }
 0x820   : > { %v5676_v61 = vpop.f32.mrf.mxu0 }
 0x822   : > { %v5678_v15 = vpop.f32.mrf.mxu0 }
 0x824   : > { %v11611_v10 = vpop.f32.mrf.mxu0 }
 0x826   : > { %v5683_v20 = vpop.f32.mrf.mxu0 }
 0x828   : > { %v11617_v19 = vpop.f32.mrf.mxu0 }
 0x82a   : > { %v5686_v24 = vpop.f32.mrf.mxu0 }
 0x82c   : > { %v5689_v48 = vpop.f32.mrf.mxu0 }
 0x82d   : > { %v5870_v3 = vmul.f32 %v11622_v1, %v5689_v48  ;;  %v5861_v48 = vadd.f32 %v5853_v32, %v11579_v25  ;;  %v5855_v25 = vmul.f32 %v11615_v9, %v5676_v61 }
 0x82e   : > { %v5691_v59 = vpop.f32.mrf.mxu0 }
 0x82f   : > { %v5878_v7 = vadd.f32 %v5870_v3, %v5838_v46 }
 0x830   : > { %v5692_v6 = vpop.f32.mrf.mxu0 }
 0x831   : > { %v5886_v31 = vadd.f32 %v5878_v7, %v5858_v36  ;;  %v5871_v50 = vmul.f32 %v11622_v1, %v5692_v6  ;;  %v5862_v7 = vadd.f32 %v5854_v44, %v11582_v22  ;;  %v5856_v22 = vmul.f32 %v11615_v9, %v11611_v10 }
 0x832   : > { %v5694_v33 = vpop.f32.mrf.mxu0 }
 0x833   : > { %v5879_v21 = vadd.f32 %v5871_v50, %v5839_v52  ;;  %v5901_v38 = vadd.f32 %v11634_v23, %v5886_v31  ;;  %v5843_v52 = vadd.f32 %v5835_v47, %v11561_v40 }
 0x834   : > { %v5697_v46 = vpop.f32.mrf.mxu0 }
 0x835   : > { %v5887_v14 = vadd.f32 %v5879_v21, %v5859_v8  ;;  %v5872_v54 = vmul.f32 %v11622_v1, %v5697_v46  ;;  %v5909_v15 = vmax.f32 %v5901_v38, 0.0  ;;  %v5863_v21 = vadd.f32 %v5855_v25, %v11585_v58 }
 0x836   : > { %v5699_v30 = vpop.f32.mrf.mxu0  ;;  %v5837_v46 = vmul.f32 %v11592_v18, %v11609_v60  ;;  %v5857_v58 = vmul.f32 %v11615_v9, %v11617_v19 }
 0x837   : > { %v5902_v4 = vadd.f32 %v11634_v23, %v5887_v14  ;;  %v5880_v55 = vadd.f32 %v5872_v54, %v5840_v29  ;;  %v5864_v30 = vadd.f32 %v5856_v22, %v11588_v62 }
 0x838   : > { %v5700_v17 = vpop.f32.mrf.mxu0  ;;  %v5845_v18 = vadd.f32 %v5837_v46, %v11567_v41 }
 0x839   : > { %v5910_v20 = vmax.f32 %v5902_v4, 0.0  ;;  %v5888_v12 = vadd.f32 %v5880_v55, %v5860_v2  ;;  %v5873_v24 = vmul.f32 %v11622_v1, %v5700_v17 }
 0x83a   : > { %v5702_v35 = vpop.f32.mrf.mxu0 }
 0x83b   : > { %v5881_v39 = vadd.f32 %v5873_v24, %v5841_v49  ;;  %v5917_v3 = vpack.c.bf16 %v5910_v20, %v5909_v15  ;;  %v5903_v37 = vadd.f32 %v11634_v23, %v5888_v12  ;;  %v5865_v15 = vadd.f32 %v5857_v58, %v11595_v13  ;;  %v8724_v58 = vld [vmem:[%s12115_s13 + $0x30] sm:$0xff]  }
 0x83c   : > { %v5705_v29 = vpop.f32.mrf.mxu0  ;;  %v8915_v35 = vmov 0.0  }
 0x83d   : > { %v5889_v59 = vadd.f32 %v5881_v39, %v5861_v48  ;;  %v5874_v36 = vmul.f32 %v11622_v1, %v5705_v29  ;;  %8027 = vmatprep.mubr.msk.bf16.mxu0 %vm5960_vm1, %v5917_v3  ;;  %v5911_v31 = vmax.f32 %v5903_v37, 0.0  ;;  %8035 = vmatprep.subr.bf16.mxu0 %v8915_v35 }
 0x83e   : > { %v5707_v28 = vpop.f32.mrf.mxu0 }
 0x83f   : > { %v5904_v51 = vadd.f32 %v11634_v23, %v5889_v59  ;;  %v5882_v6 = vadd.f32 %v5874_v36, %v11602_v43 }
 0x840   : > { %v5708_v0 = vpop.f32.mrf.mxu0 }
 0x841   : > { %v5912_v50 = vmax.f32 %v5904_v51, 0.0  ;;  %v5890_v33 = vadd.f32 %v5882_v6, %v5862_v7  ;;  %v5875_v8 = vmul.f32 %v11622_v1, %v5708_v0 }
 0x842   : > { %v5710_v27 = vpop.f32.mrf.mxu0 }
 0x843   : > { %v5918_v56 = vpack.c.bf16 %v5912_v50, %v5911_v31  ;;  %v5883_v61 = vadd.f32 %v5875_v8, %v5843_v52  ;;  %v5905_v40 = vadd.f32 %v11634_v23, %v5890_v33 }
 0x844   : > { %v5713_v43 = vpop.f32.mrf.mxu0 }
 0x845   : > { %v5891_v38 = vadd.f32 %v5883_v61, %v5863_v21  ;;  %v5876_v14 = vmul.f32 %v11622_v1, %v5713_v43  ;;  %8028 = vmatmul.mubr.msk.bf16.vlgmr.msra.gmra.mxu0 %vm5960_vm1, %v5918_v56  ;;  %v5913_v32 = vmax.f32 %v5905_v40, 0.0  ;;  %v8718_v43 = vld [vmem:[%s12115_s13] sm:$0xff]   ;;  %v8719_v40 = vld [vmem:[%s12115_s13 + $0x8] sm:$0xff]  }
 0x846   : > { %v5715_v54 = vpop.f32.mrf.mxu0 }
 0x847   : > { %v5906_v10 = vadd.f32 %v11634_v23, %v5891_v38  ;;  %v5884_v2 = vadd.f32 %v5876_v14, %v11607_v16  ;;  %v8720_v38 = vld [vmem:[%s12115_s13 + $0x10] sm:$0xff]   ;;  %v8721_v14 = vld [vmem:[%s12115_s13 + $0x18] sm:$0xff]   ;;  %v8722_v54 = vld [vmem:[%s12115_s13 + $0x20] sm:$0xff]  }
 0x848   : > { %v5716_v60 = vpop.f32.mrf.mxu0 }
 0x849   : > { %v5914_v4 = vmax.f32 %v5906_v10, 0.0  ;;  %v5892_v55 = vadd.f32 %v5884_v2, %v5864_v30  ;;  %v5877_v49 = vmul.f32 %v11622_v1, %v5716_v60  ;;  %v8723_v30 = vld [vmem:[%s12115_s13 + $0x28] sm:$0xff]   ;;  %v8725_v10 = vld [vmem:[%s12115_s13 + $0x38] sm:$0xff]   ;;  %v8726_v2 = vld [vmem:[%s12115_s13 + $0x40] sm:$0xff]  }
 0x84a   : > { %v5718_v17 = vpop.f32.mrf.mxu0  ;;  %v8729_v60 = vld [vmem:[%s12118_s16 + $0x74] ss:$8 sps:$4 sm:$0xff]  }
 0x84b   : > { %v5885_v20 = vadd.f32 %v5877_v49, %v5845_v18  ;;  %v5919_v62 = vpack.c.bf16 %v5914_v4, %v5913_v32  ;;  %v5907_v12 = vadd.f32 %v11634_v23, %v5892_v55  ;;  %v8727_v18 = vld [vmem:[%s12118_s16 + $0x70] ss:$8 sps:$4 sm:$0xff]   ;;  %v8730_v32 = vld [vmem:[%s12118_s16 + $0x60] ss:$8 sps:$4 sm:$0xff]   ;;  %v8732_v4 = vld [vmem:[%s12118_s16 + $0x64] ss:$8 sps:$4 sm:$0xff]  }
 0x84c   : > { %v8733_v55 = vld [vmem:[%s12118_s16 + $0x50] ss:$8 sps:$4 sm:$0xff]   ;;  %v8735_v49 = vld [vmem:[%s12118_s16 + $0x54] ss:$8 sps:$4 sm:$0xff]   ;;  %v8736_v17 = vld [vmem:[%s12118_s16 + $0x40] ss:$8 sps:$4 sm:$0xff]  }
 0x84d   : > { %v5893_v9 = vadd.f32 %v5885_v20, %v5865_v15  ;;  %8031 = vmatprep.mubr.msk.bf16.mxu0 %vm5960_vm1, %v5919_v62  ;;  %v5915_v19 = vmax.f32 %v5907_v12, 0.0  ;;  %v8738_v15 = vld [vmem:[%s12118_s16 + $0x44] ss:$8 sps:$4 sm:$0xff]   ;;  %v8739_v20 = vld [vmem:[%s12118_s16 + $0x30] ss:$8 sps:$4 sm:$0xff]  }
 0x84e   : > { %v8741_v62 = vld [vmem:[%s12118_s16 + $0x34] ss:$8 sps:$4 sm:$0xff]   ;;  %v8742_v12 = vld [vmem:[%s12118_s16 + $0x20] ss:$8 sps:$4 sm:$0xff]  }
 0x84f   : > { %v5908_v16 = vadd.f32 %v11634_v23, %v5893_v9  ;;  %v7767_v23 = vld [vmem:[%s12114_s12] ss:$0 sm:$0xff]  ;;  %v8744_v9 = vld [vmem:[%s12118_s16 + $0x24] ss:$8 sps:$4 sm:$0xff]  }
 0x851   : > { %v5916_v41 = vmax.f32 %v5908_v16, 0.0  ;;  %v8747_v16 = vld [vmem:[%s12118_s16 + $0x14] ss:$8 sps:$4 sm:$0xff]  }
 0x853   : > { %v5920_v24 = vpack.c.bf16 %v5916_v41, %v5915_v19  ;;  %v8745_v19 = vld [vmem:[%s12118_s16 + $0x10] ss:$8 sps:$4 sm:$0xff]   ;;  %v8750_v41 = vld [vmem:[%s12118_s16 + $0x4] ss:$8 sps:$4 sm:$0xff]  }
 0x855   : > { %8032 = vmatmul.mubr.msk.bf16.gmra.mxu0 %vm5960_vm1, %v5920_v24  ;;  %v8748_v24 = vld [vmem:[%s12118_s16] ss:$8 sps:$4 sm:$0xff]  }
 0x856   : > { %8043 = vmatprep.mubr.msk.bf16.mxu0 %vm8916_vm2, %v8915_v35 }
 0x905   : > { %v8029_v13 = vpop.f32.mrf.mxu0 }
 0x906   : > { %v6016_v0 = vadd.f32 %v8029_v13, %v7767_v23 }
 0x907   : > { %v6007_v1 = vpop.f32.mrf.mxu0 }
 0x908   : > { %v6040_v27 = vmax.f32 %v6016_v0, 0.0  ;;  %v6008_v21 = vadd.f32 %v7767_v23, %v6007_v1 }
 0x909   : > { %v8030_v48 = vpop.f32.mrf.mxu0 }
 0x90a   : > { %v6019_v51 = vadd.f32 %v8030_v48, %v7767_v23  ;;  %v6038_v61 = vmax.f32 %v6008_v21, 0.0 }
 0x90b   : > { %v6010_v44 = vpop.f32.mrf.mxu0 }
 0x90c   : > { %v6041_v50 = vmax.f32 %v6019_v51, 0.0  ;;  %v6011_v33 = vadd.f32 %v7767_v23, %v6010_v44 }
 0x90e   : > { %v6065_v22 = vpack.c.bf16 %v6041_v50, %v6040_v27  ;;  %v6039_v56 = vmax.f32 %v6011_v33, 0.0 }
 0x910   : > { %v6064_v46 = vpack.c.bf16 %v6039_v56, %v6038_v61 }
 0x915   : > { %v8033_v39 = vpop.f32.mrf.mxu0 }
 0x916   : > { %v6032_v47 = vadd.f32 %v8033_v39, %v7767_v23 }
 0x917   : > { %v6023_v3 = vpop.f32.mrf.mxu0 }
 0x918   : > { %v6044_v36 = vmax.f32 %v6032_v47, 0.0  ;;  %v6024_v28 = vadd.f32 %v7767_v23, %v6023_v3 }
 0x919   : > { %v8034_v29 = vpop.f32.mrf.mxu0 }
 0x91a   : > { %v6035_v37 = vadd.f32 %v8034_v29, %v7767_v23  ;;  %v6042_v31 = vmax.f32 %v6024_v28, 0.0 }
 0x91b   : > { %v6026_v59 = vpop.f32.mrf.mxu0 }
 0x91c   : > { %v6045_v7 = vmax.f32 %v6035_v37, 0.0  ;;  %v6027_v25 = vadd.f32 %v7767_v23, %v6026_v59 }
 0x91e   : > { %v6067_v6 = vpack.c.bf16 %v6045_v7, %v6044_v36  ;;  %v6043_v52 = vmax.f32 %v6027_v25, 0.0 }
 0x920   : > { %8036 = vmatpush3.bf16.msra.mxu0 %v6067_v6  ;;  %v6066_v8 = vpack.c.bf16 %v6043_v52, %v6042_v31 }
 0x921   : > { %8037 = vmatprep.subr.bf16.mxu0 %v8915_v35 }
 0x924   : > { %8038 = vmatpush3.bf16.msra.mxu0 %v6066_v8 }
 0x925   : > { %8039 = vmatprep.subr.bf16.mxu0 %v8915_v35 }
 0x928   : > { %8040 = vmatpush3.bf16.msra.mxu0 %v6065_v22  ;;  %v6245_v22 = vld [vmem:[%s12116_s14] sm:$0xff] }
 0x929   : > { %8041 = vmatprep.subr.bf16.mxu0 %v8915_v35  ;;  %v6262_v61 = vrot.slane %v6245_v22, %v12307_v42 }
 0x92c   : > { %8042 = vmatpush3.bf16.msra.mxu0 %v6064_v46  ;;  %v6270_v46 = vrot.slane %v6245_v22, %v12309_v63 }
 0x92d   : > { %6437 = vmatprep.subr.bf16.mxu0 %v8729_v60 }
 0x92f   : > { %8044 = vmatmul.mubr.msk.bf16.vlgmr.msra.gmra.mxu0 %vm5960_vm1, %v8718_v43 }
 0x930   : > { %8047 = vmatprep.mubr.msk.bf16.mxu0 %vm8916_vm2, %v8915_v35  ;;  %6438 = vmatpush1.bf16.msra.mxu0 %v8727_v18 }
 0x931   : > { %6439 = vmatprep.subr.bf16.mxu0 %v8732_v4  ;;  %v6302_v4 = vrot.slane %v6245_v22, %v12313_v34 }
 0x934   : > { %6440 = vmatpush1.bf16.msra.mxu0 %v8730_v32 }
 0x935   : > { %6441 = vmatprep.subr.bf16.mxu0 %v8735_v49 }
 0x937   : > { %8048 = vmatmul.mubr.msk.bf16.gmra.mxu0 %vm5960_vm1, %v8719_v40  ;;  %v6250_v40 = vrot.slane %v6245_v22, %v12306_v11 }
 0x938   : > { %8051 = vmatprep.mubr.msk.bf16.mxu0 %vm8916_vm2, %v8915_v35  ;;  %6442 = vmatpush1.bf16.msra.mxu0 %v8733_v55 }
 0x939   : > { %6443 = vmatprep.subr.bf16.mxu0 %v8738_v15 }
 0x93c   : > { %6444 = vmatpush1.bf16.msra.mxu0 %v8736_v17 }
 0x93d   : > { %6445 = vmatprep.subr.bf16.mxu0 %v8741_v62 }
 0x93f   : > { %8052 = vmatmul.mubr.msk.bf16.gmra.mxu0 %vm5960_vm1, %v8720_v38  ;;  %v6278_v38 = vrot.slane %v6245_v22, %v12310_v5 }
 0x940   : > { %8055 = vmatprep.mubr.msk.bf16.mxu0 %vm8916_vm2, %v8915_v35  ;;  %6446 = vmatpush1.bf16.msra.mxu0 %v8739_v20 }
 0x941   : > { %6447 = vmatprep.subr.bf16.mxu0 %v8744_v9 }
 0x944   : > { %6448 = vmatpush1.bf16.msra.mxu0 %v8742_v12 }
 0x945   : > { %6449 = vmatprep.subr.bf16.mxu0 %v8747_v16 }
 0x947   : > { %8056 = vmatmul.mubr.msk.bf16.gmra.mxu0 %vm5960_vm1, %v8721_v14  ;;  %v6256_v14 = vrot.slane %v6245_v22, %v12308_v53 }
 0x948   : > { %8059 = vmatprep.mubr.msk.bf16.mxu0 %vm8916_vm2, %v8915_v35  ;;  %6450 = vmatpush1.bf16.msra.mxu0 %v8745_v19 }
 0x949   : > { %6451 = vmatprep.subr.bf16.mxu0 %v8750_v41  ;;  %v7794_v41 = vld [vmem:[%s12116_s14 + $0x8] ss:$0 sm:$0xff] }
 0x94c   : > { %6452 = vmatpush1.bf16.msra.mxu0 %v8748_v24 }
 0x94f   : > { %8060 = vmatmul.mubr.msk.bf16.gmra.mxu0 %vm5960_vm1, %v8722_v54  ;;  %v6286_v54 = vrot.slane %v6245_v22, %v12311_v57 }
 0x950   : > { %8063 = vmatprep.mubr.msk.bf16.mxu0 %vm8916_vm2, %v8915_v35 }
 0x957   : > { %8064 = vmatmul.mubr.msk.bf16.gmra.mxu0 %vm5960_vm1, %v8723_v30 }
 0x958   : > { %8067 = vmatprep.mubr.msk.bf16.mxu0 %vm8916_vm2, %v8915_v35 }
 0x95f   : > { %8068 = vmatmul.mubr.msk.bf16.gmra.mxu0 %vm5960_vm1, %v8724_v58 }
 0x960   : > { %8071 = vmatprep.mubr.msk.bf16.mxu0 %vm8916_vm2, %v8915_v35 }
 0x967   : > { %8072 = vmatmul.mubr.msk.bf16.gmra.mxu0 %vm5960_vm1, %v8725_v10  ;;  %v6294_v10 = vrot.slane %v6245_v22, %v12312_v26 }
 0x968   : > { %8075 = vmatprep.mubr.msk.bf16.mxu0 %vm8916_vm2, %v8915_v35 }
 0x96f   : > { %8076 = vmatmul.mubr.msk.bf16.gmra.mxu0 %vm5960_vm1, %v8726_v2 }
 0x970   : > { %6469 = vmatprep.mubr.bf16.mxu0 %v12304_v45 }
 0x9ef   : > { %v6174_v35 = vpop.f32.mrf.mxu0 }
 0x9f0   : > { %v6251_v60 = vmul.f32 %v6250_v40, %v6174_v35 }
 0x9f1   : > { %v8045_v13 = vpop.f32.mrf.mxu0 }
 0x9f3   : > { %v6177_v1 = vpop.f32.mrf.mxu0 }
 0x9f4   : > { %v6252_v12 = vmul.f32 %v6250_v40, %v6177_v1  ;;  %v6345_v40 = vld [vmem:[%s12119_s17] sm:$0x3] }
 0x9f5   : > { %v8046_v48 = vpop.f32.mrf.mxu0 }
 0x9f7   : > { %v6182_v44 = vpop.f32.mrf.mxu0 }
 0x9f8   : > { %v6257_v55 = vmul.f32 %v6256_v14, %v6182_v44 }
 0x9f9   : > { %v8049_v39 = vpop.f32.mrf.mxu0 }
 0x9fb   : > { %v6185_v23 = vpop.f32.mrf.mxu0 }
 0x9fc   : > { %v6258_v48 = vmul.f32 %v6256_v14, %v6185_v23  ;;  %v7795_v23 = vld [vmem:[%s12117_s15] ss:$0 sm:$0xff]  ;;  %v6354_v14 = vrot.slane %v6345_v40, %v12308_v53 }
 0x9fd   : > { %v8050_v3 = vpop.f32.mrf.mxu0 }
 0x9ff   : > { %v6190_v47 = vpop.f32.mrf.mxu0 }
 0xa00   : > { %v6263_v58 = vmul.f32 %v6262_v61, %v6190_v47 }
 0xa01   : > { %v8053_v29 = vpop.f32.mrf.mxu0 }
 0xa02   : > { %v6265_v20 = vadd.f32 %v6263_v58, %v6251_v60 }
 0xa03   : > { %v6193_v37 = vpop.f32.mrf.mxu0 }
 0xa04   : > { %v6264_v49 = vmul.f32 %v6262_v61, %v6193_v37 }
 0xa05   : > { %v8054_v59 = vpop.f32.mrf.mxu0 }
 0xa06   : > { %v6266_v39 = vadd.f32 %v6264_v49, %v6252_v12  ;;  %v8751_v12 = vld [vmem:[%s12120_s18] sm:$0xff]  }
 0xa07   : > { %v6198_v36 = vpop.f32.mrf.mxu0 }
 0xa08   : > { %v6271_v2 = vmul.f32 %v6270_v46, %v6198_v36 }
 0xa09   : > { %v8057_v28 = vpop.f32.mrf.mxu0 }
 0xa0a   : > { %v6273_v9 = vadd.f32 %v6271_v2, %v6257_v55 }
 0xa0b   : > { %v6201_v7 = vpop.f32.mrf.mxu0 }
 0xa0c   : > { %v6272_v16 = vmul.f32 %v6270_v46, %v6201_v7 }
 0xa0d   : > { %v8058_v25 = vpop.f32.mrf.mxu0 }
 0xa0e   : > { %v6274_v36 = vadd.f32 %v6272_v16, %v6258_v48  ;;  %v8759_v16 = vld [vmem:[%s12123_s21 + $0xc4] ss:$16 sps:$4 sm:$0xff]   ;;  %v8763_v48 = vld [vmem:[%s12123_s21 + $0x80] ss:$16 sps:$4 sm:$0xff]  }
 0xa0f   : > { %v6206_v51 = vpop.f32.mrf.mxu0 }
 0xa10   : > { %v6279_v32 = vmul.f32 %v6278_v38, %v6206_v51 }
 0xa11   : > { %v8061_v6 = vpop.f32.mrf.mxu0 }
 0xa12   : > { %v6281_v24 = vadd.f32 %v6279_v32, %v6265_v20  ;;  %v8756_v20 = vld [vmem:[%s12123_s21 + $0xe4] ss:$16 sps:$4 sm:$0xff]  }
 0xa13   : > { %v6209_v52 = vpop.f32.mrf.mxu0 }
 0xa14   : > { %v6280_v13 = vmul.f32 %v6278_v38, %v6209_v52 }
 0xa15   : > { %v8062_v0 = vpop.f32.mrf.mxu0 }
 0xa16   : > { %v6282_v28 = vadd.f32 %v6280_v13, %v6266_v39  ;;  %v8760_v13 = vld [vmem:[%s12123_s21 + $0xa0] ss:$16 sps:$4 sm:$0xff]   ;;  %v8768_v39 = vld [vmem:[%s12123_s21 + $0x64] ss:$16 sps:$4 sm:$0xff]  }
 0xa17   : > { %v6214_v31 = vpop.f32.mrf.mxu0 }
 0xa18   : > { %v6287_v17 = vmul.f32 %v6286_v54, %v6214_v31 }
 0xa19   : > { %v8065_v50 = vpop.f32.mrf.mxu0 }
 0xa1a   : > { %v6289_v3 = vadd.f32 %v6287_v17, %v6273_v9  ;;  %v8754_v9 = vld [vmem:[%s12123_s21 + $0xe0] ss:$16 sps:$4 sm:$0xff]  }
 0xa1b   : > { %v6217_v33 = vpop.f32.mrf.mxu0 }
 0xa1c   : > { %v6288_v47 = vmul.f32 %v6286_v54, %v6217_v33  ;;  %v6350_v54 = vrot.slane %v6345_v40, %v12306_v11  ;;  %v6576_v40 = vld [vmem:[%s12121_s19 + $0x8] sm:$0xff] }
 0xa1d   : > { %v8066_v8 = vpop.f32.mrf.mxu0 }
 0xa1e   : > { %v6290_v0 = vadd.f32 %v6288_v47, %v6274_v36  ;;  %v8769_v47 = vld [vmem:[%s12123_s21 + $0x40] ss:$16 sps:$4 sm:$0xff]  }
 0xa1f   : > { %v6222_v27 = vpop.f32.mrf.mxu0  ;;  %v8775_v36 = vld [vmem:[%s12123_s21] ss:$16 sps:$4 sm:$0xff]  }
 0xa20   : > { %v6295_v62 = vmul.f32 %v6294_v10, %v6222_v27 }
 0xa21   : > { %v8069_v21 = vpop.f32.mrf.mxu0 }
 0xa22   : > { %v6297_v29 = vadd.f32 %v6295_v62, %v6281_v24  ;;  %v8752_v24 = vld [vmem:[%s12120_s18 + $0x8] sm:$0xff]  }
 0xa23   : > { %v6225_v56 = vpop.f32.mrf.mxu0 }
 0xa24   : > { %v6296_v37 = vmul.f32 %v6294_v10, %v6225_v56 }
 0xa25   : > { %v8070_v43 = vpop.f32.mrf.mxu0 }
 0xa26   : > { %v6298_v31 = vadd.f32 %v6296_v37, %v6282_v28  ;;  %v8772_v37 = vld [vmem:[%s12123_s21 + $0x20] ss:$16 sps:$4 sm:$0xff]  }
 0xa27   : > { %v6230_v30 = vpop.f32.mrf.mxu0  ;;  %v8778_v28 = vld [vmem:[%s12123_s21 + $0x1e0] ss:$16 sps:$4 sm:$0xff]  }
 0xa28   : > { %v6303_v35 = vmul.f32 %v6302_v4, %v6230_v30 }
 0xa29   : > { %v8073_v18 = vpop.f32.mrf.mxu0 }
 0xa2a   : > { %v6305_v7 = vadd.f32 %v6303_v35, %v6289_v3  ;;  %v8765_v35 = vld [vmem:[%s12123_s21 + $0x84] ss:$16 sps:$4 sm:$0xff]   ;;  %v8753_v3 = vld [vmem:[%s12120_s18 + $0x10] ss:$0 sps:$4 sm:$0x33]  }
 0xa2b   : > { %v6233_v15 = vpop.f32.mrf.mxu0 }
 0xa2c   : > { %v6304_v25 = vmul.f32 %v6302_v4, %v6233_v15 }
 0xa2d   : > { %v8074_v19 = vpop.f32.mrf.mxu0 }
 0xa2e   : > { %v6306_v33 = vadd.f32 %v6304_v25, %v6290_v0  ;;  %v8757_v19 = vld [vmem:[%s12123_s21 + $0xc0] ss:$16 sps:$4 sm:$0xff]   ;;  %v8789_v0 = vld [vmem:[%s12123_s21 + $0x184] ss:$16 sps:$4 sm:$0xff]  }
 0xa2f   : > { %v6238_v44 = vpop.f32.mrf.mxu0  ;;  %v8781_v25 = vld [vmem:[%s12123_s21 + $0x1c0] ss:$16 sps:$4 sm:$0xff]  }
 0xa30   : > { %v6311_v59 = vmul.f32 %v7794_v41, %v6238_v44  ;;  %v8766_v44 = vld [vmem:[%s12123_s21 + $0x60] ss:$16 sps:$4 sm:$0xff]  }
 0xa31   : > { %v8077_v1 = vpop.f32.mrf.mxu0 }
 0xa32   : > { %v6313_v51 = vadd.f32 %v6311_v59, %v6297_v29  ;;  %v8774_v29 = vld [vmem:[%s12123_s21 + $0x24] ss:$16 sps:$4 sm:$0xff]  }
 0xa33   : > { %v6241_v6 = vpop.f32.mrf.mxu0  ;;  %v8777_v59 = vld [vmem:[%s12123_s21 + $0x4] ss:$16 sps:$4 sm:$0xff]  }
 0xa34   : > { %v6315_v50 = vadd.f32 %v6313_v51, %v6305_v7  ;;  %v6312_v52 = vmul.f32 %v7794_v41, %v6241_v6  ;;  %v8762_v41 = vld [vmem:[%s12123_s21 + $0xa4] ss:$16 sps:$4 sm:$0xff]   ;;  %v8784_v6 = vld [vmem:[%s12123_s21 + $0x1a0] ss:$16 sps:$4 sm:$0xff]  }
 0xa35   : > { %v8078_v8 = vpop.f32.mrf.mxu0  ;;  %v8780_v1 = vld [vmem:[%s12123_s21 + $0x1e4] ss:$16 sps:$4 sm:$0xff]  }
 0xa36   : > { %v6314_v27 = vadd.f32 %v6312_v52, %v6298_v31  ;;  %v6324_v21 = vadd.f32 %v7795_v23, %v6315_v50  ;;  %v8783_v7 = vld [vmem:[%s12123_s21 + $0x1c4] ss:$16 sps:$4 sm:$0xff]   ;;  %v8787_v31 = vld [vmem:[%s12123_s21 + $0x180] ss:$16 sps:$4 sm:$0xff]  }
 0xa37   : > { %v8786_v51 = vld [vmem:[%s12123_s21 + $0x1a4] ss:$16 sps:$4 sm:$0xff]   ;;  %v8790_v52 = vld [vmem:[%s12123_s21 + $0x160] ss:$16 sps:$4 sm:$0xff]  }
 0xa38   : > { %v6316_v22 = vadd.f32 %v6314_v27, %v6306_v33  ;;  %v6326_v61 = vmax.f32 %v6324_v21, 0.0  ;;  %v8792_v50 = vld [vmem:[%s12123_s21 + $0x164] ss:$16 sps:$4 sm:$0xff]   ;;  %v8793_v8 = vld [vmem:[%s12123_s21 + $0x140] ss:$16 sps:$4 sm:$0xff]  }
 0xa39   : > { %v8798_v33 = vld [vmem:[%s12123_s21 + $0x124] ss:$16 sps:$4 sm:$0xff]   ;;  %v8796_v27 = vld [vmem:[%s12123_s21 + $0x120] ss:$16 sps:$4 sm:$0xff]  }
 0xa3a   : > { %v6325_v56 = vadd.f32 %v7795_v23, %v6316_v22  ;;  %v8795_v23 = vld [vmem:[%s12123_s21 + $0x144] ss:$16 sps:$4 sm:$0xff]   ;;  %v8799_v22 = vld [vmem:[%s12123_s21 + $0x100] ss:$16 sps:$4 sm:$0xff]  }
 0xa3b   : > { %v8801_v21 = vld [vmem:[%s12123_s21 + $0x104] ss:$16 sps:$4 sm:$0xff]  }
 0xa3c   : > { %v6327_v46 = vmax.f32 %v6325_v56, 0.0  ;;  %v8804_v56 = vld [vmem:[%s12123_s21 + $0xec] ss:$16 sps:$4 sm:$0xff]  }
 0xa3e   : > { %v6328_v43 = vpack.c.bf16 %v6327_v46, %v6326_v61  ;;  %v6575_v46 = vld [vmem:[%s12121_s19] sm:$0xff] }
 0xa40   : > { %6470 = vmatmul.mubr.bf16.vlgmr.msra.gmra.mxu0 %v6328_v43 }
 0xa41   : > { %6546 = vmatprep.mubr.bf16.mxu0 %v12304_v45 }
 0xb00   : > { %v6471_v38 = vpop.f32.mrf.mxu0 }
 0xb01   : > { %v6472_v18 = vadd.f32 %v6471_v38, %v6350_v54  ;;  %v6614_v38 = vrot.slane %v6575_v46, %v12309_v63 }
 0xb02   : > { %v6473_v30 = vpop.f32.mrf.mxu0 }
 0xb03   : > { %v6474_v10 = vadd.f32 %v6473_v30, %v6354_v14  ;;  %v6480_v17 = vmax.f32 %v6472_v18, 0.0  ;;  %v6618_v30 = vrot.slane %v6576_v40, %v12309_v63  ;;  %v6596_v18 = vrot.slane %v6576_v40, %v12308_v53 }
 0xb04   : > { %v6475_v58 = vpop.f32.mrf.mxu0 }
 0xb05   : > { %v6476_v2 = vadd.f32 %v6475_v58, %v6350_v54  ;;  %v6481_v55 = vmax.f32 %v6474_v10, 0.0  ;;  %v6602_v54 = vrot.slane %v6575_v46, %v12307_v42  ;;  %v6592_v58 = vrot.slane %v6575_v46, %v12308_v53 }
 0xb06   : > { %v6477_v60 = vpop.f32.mrf.mxu0  ;;  %v6638_v10 = vrot.slane %v6575_v46, %v12311_v57 }
 0xb07   : > { %v6478_v32 = vadd.f32 %v6477_v60, %v6354_v14  ;;  %v6482_v4 = vmax.f32 %v6476_v2, 0.0  ;;  %v6582_v2 = vrot.slane %v6575_v46, %v12306_v11 }
 0xb09   : > { %v6483_v49 = vmax.f32 %v6478_v32, 0.0  ;;  %v6489_v62 = vpack.c.bf16 %v6482_v4, %v6480_v17  ;;  %v6606_v32 = vrot.slane %v6576_v40, %v12307_v42  ;;  %v6626_v4 = vrot.slane %v6575_v46, %v12310_v5 }
 0xb0a   : > { %v6586_v17 = vrot.slane %v6576_v40, %v12306_v11 }
 0xb0b   : > { %v6490_v15 = vpack.c.bf16 %v6483_v49, %v6481_v55  ;;  %v6642_v49 = vrot.slane %v6576_v40, %v12311_v57 }
 0xb0d   : > { %6528 = vmatprep.subr.bf16.mxu0 %v6490_v15 }
 0xb0e   : > { %6529 = vmatpush1.bf16.msra.mxu0 %v6489_v62 }
 0xb0f   : > { %7115 = vmatprep.subr.bf16.mxu0 %v8756_v20 }
 0xb11   : > { %7815 = vmatmul.mubr.msk.bf16.vlgmr.msra.gmra.mxu0 %vm6504_vm3, %v8751_v12  ;;  %v6630_v12 = vrot.slane %v6576_v40, %v12310_v5 }
 0xb12   : > { %6556 = vmatprep.mubr.bf16.mxu0 %v12304_v45  ;;  %7116 = vmatpush1.bf16.msra.mxu0 %v8754_v9 }
 0xb13   : > { %7117 = vmatprep.subr.bf16.mxu0 %v8759_v16 }
 0xb16   : > { %7118 = vmatpush1.bf16.msra.mxu0 %v8757_v19  ;;  %v6650_v19 = vrot.slane %v6575_v46, %v12312_v26 }
 0xb17   : > { %7119 = vmatprep.subr.bf16.mxu0 %v8762_v41  ;;  %v6662_v41 = vrot.slane %v6575_v46, %v12313_v34 }
 0xb19   : > { %7816 = vmatmul.mubr.msk.bf16.gmra.mxu0 %vm6504_vm3, %v8752_v24 }
 0xb1a   : > { %6566 = vmatprep.mubr.bf16.mxu0 %v12304_v45  ;;  %7120 = vmatpush1.bf16.msra.mxu0 %v8760_v13  ;;  %v8771_v45 = vld [vmem:[%s12123_s21 + $0x44] ss:$16 sps:$4 sm:$0xff]  }
 0xb1b   : > { %7121 = vmatprep.subr.bf16.mxu0 %v8765_v35 }
 0xb1e   : > { %7122 = vmatpush1.bf16.msra.mxu0 %v8763_v48 }
 0xb1f   : > { %7123 = vmatprep.subr.bf16.mxu0 %v8768_v39 }
 0xb21   : > { %7817 = vmatmul.mubr.msk.bf16.gmra.mxu0 %vm6504_vm3, %v8753_v3 }
 0xb22   : > { %7124 = vmatpush1.bf16.msra.mxu0 %v8766_v44  ;;  %v6654_v44 = vrot.slane %v6576_v40, %v12312_v26 }
 0xb23   : > { %7125 = vmatprep.subr.bf16.mxu0 %v8771_v45  ;;  %v6666_v45 = vrot.slane %v6576_v40, %v12313_v34  ;;  %v6691_v34 = vld [vmem:[%s12122_s20] sm:$0x3] }
 0xb26   : > { %7126 = vmatpush1.bf16.msra.mxu0 %v8769_v47 }
 0xb27   : > { %7127 = vmatprep.subr.bf16.mxu0 %v8774_v29 }
 0xb2a   : > { %7128 = vmatpush1.bf16.msra.mxu0 %v8772_v37 }
 0xb2b   : > { %7129 = vmatprep.subr.bf16.mxu0 %v8777_v59 }
 0xb2e   : > { %7130 = vmatpush1.bf16.msra.mxu0 %v8775_v36 }
 0xb2f   : > { %7131 = vmatprep.subr.bf16.mxu0 %v8780_v1 }
 0xb32   : > { %7132 = vmatpush2.bf16.msra.mxu0 %v8778_v28 }
 0xb33   : > { %7133 = vmatprep.subr.bf16.mxu0 %v8783_v7 }
 0xb36   : > { %7134 = vmatpush2.bf16.msra.mxu0 %v8781_v25 }
 0xb37   : > { %7135 = vmatprep.subr.bf16.mxu0 %v8786_v51 }
 0xb3a   : > { %7136 = vmatpush2.bf16.msra.mxu0 %v8784_v6  ;;  %v7818_v6 = vld [vmem:[%s12121_s19 + $0x10] ss:$0 sm:$0xff] }
 0xb3b   : > { %7137 = vmatprep.subr.bf16.mxu0 %v8789_v0 }
 0xb3e   : > { %7138 = vmatpush2.bf16.msra.mxu0 %v8787_v31 }
 0xb3f   : > { %7139 = vmatprep.subr.bf16.mxu0 %v8792_v50 }
 0xb42   : > { %7140 = vmatpush2.bf16.msra.mxu0 %v8790_v52 }
 0xb43   : > { %7141 = vmatprep.subr.bf16.mxu0 %v8795_v23  ;;  %v7819_v23 = vld [vmem:[%s12121_s19 + $0x18] ss:$0 sm:$0xff] }
 0xb46   : > { %7142 = vmatpush2.bf16.msra.mxu0 %v8793_v8 }
 0xb47   : > { %7143 = vmatprep.subr.bf16.mxu0 %v8798_v33 }
 0xb4a   : > { %7144 = vmatpush2.bf16.msra.mxu0 %v8796_v27 }
 0xb4b   : > { %7145 = vmatprep.subr.bf16.mxu0 %v8801_v21 }
 0xb4e   : > { %7146 = vmatpush2.bf16.msra.mxu0 %v8799_v22  ;;  %v6696_v22 = vrot.slane %v6691_v34, %v12306_v11 }
 0xb4f   : > { %7156 = vmatprep.subr.bf16.mxu0 %v8804_v56 }
 0xbd1   : > { %v6548_v61 = vpop.f32.mrf.mxu0 }
 0xbd2   : > { %v6597_v9 = vmul.f32 %v6592_v58, %v6548_v61  ;;  %v6587_v24 = vmul.f32 %v6582_v2, %v6548_v61  ;;  %v6700_v58 = vrot.slane %v6691_v34, %v12308_v53 }
 0xbd3   : > { %v6550_v43 = vpop.f32.mrf.mxu0 }
 0xbd4   : > { %v6598_v13 = vmul.f32 %v6596_v18, %v6550_v43  ;;  %v6588_v47 = vmul.f32 %v6586_v17, %v6550_v43 }
 0xbd5   : > { %v6552_v14 = vpop.f32.mrf.mxu0 }
 0xbd6   : > { %v6619_v55 = vmul.f32 %v6614_v38, %v6552_v14  ;;  %v6607_v15 = vmul.f32 %v6602_v54, %v6552_v14 }
 0xbd7   : > { %v6554_v60 = vpop.f32.mrf.mxu0 }
 0xbd8   : > { %v6620_v20 = vmul.f32 %v6618_v30, %v6554_v60  ;;  %v6608_v35 = vmul.f32 %v6606_v32, %v6554_v60  ;;  %v6621_v3 = vadd.f32 %v6619_v55, %v6597_v9  ;;  %v6609_v29 = vadd.f32 %v6607_v15, %v6587_v24  ;;  %v8807_v15 = vld [vmem:[%s12123_s21 + $0xcc] ss:$16 sps:$4 sm:$0xff]  }
 0xbd9   : > { %v6558_v62 = vpop.f32.mrf.mxu0  ;;  %v8813_v9 = vld [vmem:[%s12123_s21 + $0x8c] ss:$16 sps:$4 sm:$0xff]  }
 0xbda   : > { %v6643_v16 = vmul.f32 %v6638_v10, %v6558_v62  ;;  %v6631_v48 = vmul.f32 %v6626_v4, %v6558_v62  ;;  %v6622_v5 = vadd.f32 %v6620_v20, %v6598_v13  ;;  %v6610_v7 = vadd.f32 %v6608_v35, %v6588_v47  ;;  %v8805_v20 = vld [vmem:[%s12123_s21 + $0xc8] ss:$16 sps:$4 sm:$0xff]   ;;  %v8810_v62 = vld [vmem:[%s12123_s21 + $0xac] ss:$16 sps:$4 sm:$0xff]  }
 0xbdb   : > { %v6560_v39 = vpop.f32.mrf.mxu0  ;;  %v8819_v24 = vld [vmem:[%s12123_s21 + $0x4c] ss:$16 sps:$4 sm:$0xff]   ;;  %v8817_v13 = vld [vmem:[%s12123_s21 + $0x48] ss:$16 sps:$4 sm:$0xff]  }
 0xbdc   : > { %v6644_v57 = vmul.f32 %v6642_v49, %v6560_v39  ;;  %v6645_v59 = vadd.f32 %v6643_v16, %v6621_v3  ;;  %v6632_v36 = vmul.f32 %v6630_v12, %v6560_v39  ;;  %v6633_v25 = vadd.f32 %v6631_v48, %v6609_v29  ;;  %v8802_v49 = vld [vmem:[%s12123_s21 + $0xe8] ss:$16 sps:$4 sm:$0xff]   ;;  %v8822_v35 = vld [vmem:[%s12123_s21 + $0x2c] ss:$16 sps:$4 sm:$0xff]  }
 0xbdd   : > { %v6562_v37 = vpop.f32.mrf.mxu0  ;;  %v8808_v12 = vld [vmem:[%s12123_s21 + $0xa8] ss:$16 sps:$4 sm:$0xff]   ;;  %v8825_v39 = vld [vmem:[%s12123_s21 + $0xc] ss:$16 sps:$4 sm:$0xff]  }
 0xbde   : > { %v6655_v1 = vmul.f32 %v6650_v19, %v6562_v37  ;;  %v6667_v28 = vmul.f32 %v6662_v41, %v6562_v37  ;;  %v6646_v0 = vadd.f32 %v6644_v57, %v6622_v5  ;;  %v6634_v8 = vadd.f32 %v6632_v36, %v6610_v7  ;;  %v8811_v16 = vld [vmem:[%s12123_s21 + $0x88] ss:$16 sps:$4 sm:$0xff]   ;;  %v8816_v19 = vld [vmem:[%s12123_s21 + $0x6c] ss:$16 sps:$4 sm:$0xff]  }
 0xbdf   : > { %v6564_v51 = vpop.f32.mrf.mxu0  ;;  %v8814_v41 = vld [vmem:[%s12123_s21 + $0x68] ss:$16 sps:$4 sm:$0xff]   ;;  %v8828_v57 = vld [vmem:[%s12123_s21 + $0x1ec] ss:$16 sps:$4 sm:$0xff]  }
 0xbe0   : > { %v6669_v31 = vadd.f32 %v6667_v28, %v6645_v59  ;;  %v6656_v26 = vmul.f32 %v6654_v44, %v6564_v51  ;;  %v6668_v50 = vmul.f32 %v6666_v45, %v6564_v51  ;;  %v6657_v33 = vadd.f32 %v6655_v1, %v6633_v25  ;;  %v8820_v48 = vld [vmem:[%s12123_s21 + $0x28] ss:$16 sps:$4 sm:$0xff]   ;;  %v8831_v45 = vld [vmem:[%s12123_s21 + $0x1cc] ss:$16 sps:$4 sm:$0xff]  }
 0xbe1   : > { %v6568_v52 = vpop.f32.mrf.mxu0  ;;  %v8823_v3 = vld [vmem:[%s12123_s21 + $0x8] ss:$16 sps:$4 sm:$0xff]   ;;  %v8834_v29 = vld [vmem:[%s12123_s21 + $0x1ac] ss:$16 sps:$4 sm:$0xff]  }
 0xbe2   : > { %v6670_v27 = vadd.f32 %v6668_v50, %v6646_v0  ;;  %v6679_v21 = vmul.f32 %v7818_v6, %v6568_v52  ;;  %v6685_v61 = vrot.slane %v6669_v31, 4  ;;  %v6658_v46 = vadd.f32 %v6656_v26, %v6634_v8  ;;  %v8826_v44 = vld [vmem:[%s12123_s21 + $0x1e8] ss:$16 sps:$4 sm:$0xff]   ;;  %v8837_v37 = vld [vmem:[%s12123_s21 + $0x18c] ss:$16 sps:$4 sm:$0xff]  }
 0xbe3   : > { %v6570_v56 = vpop.f32.mrf.mxu0  ;;  %v8829_v47 = vld [vmem:[%s12123_s21 + $0x1c8] ss:$16 sps:$4 sm:$0xff]   ;;  %v8840_v36 = vld [vmem:[%s12123_s21 + $0x16c] ss:$16 sps:$4 sm:$0xff]   ;;  %v6773_v31 = vld [vmem:[%s12124_s22] sm:$0xf] }
 0xbe4   : > { %v6681_v43 = vadd.f32 %v6679_v21, %v6657_v33  ;;  %v6680_v40 = vmul.f32 %v7819_v23, %v6570_v56  ;;  %v6686_v14 = vrot.slane %v6670_v27, 4  ;;  %v8832_v5 = vld [vmem:[%s12123_s21 + $0x1a8] ss:$16 sps:$4 sm:$0xff]   ;;  %v8843_v28 = vld [vmem:[%s12123_s21 + $0x14c] ss:$16 sps:$4 sm:$0xff]   ;;  %v6778_v26 = vrot.slane %v6773_v31, %v12306_v11 }
 0xbe5   : > { %v6572_v38 = vpop.f32.mrf.mxu0  ;;  %v8835_v59 = vld [vmem:[%s12123_s21 + $0x188] ss:$16 sps:$4 sm:$0xff]   ;;  %v8846_v25 = vld [vmem:[%s12123_s21 + $0x12c] ss:$16 sps:$4 sm:$0xff]   ;;  %v6782_v50 = vrot.slane %v6773_v31, %v12308_v53 }
 0xbe6   : > { %v6689_v54 = vadd.f32 %v6685_v61, %v6681_v43  ;;  %v6682_v30 = vadd.f32 %v6680_v40, %v6658_v46  ;;  %v8838_v1 = vld [vmem:[%s12123_s21 + $0x168] ss:$16 sps:$4 sm:$0xff]   ;;  %v8849_v6 = vld [vmem:[%s12123_s21 + $0x10c] ss:$16 sps:$4 sm:$0xff]  }
 0xbe7   : > { %v6573_v10 = vpop.f32.mrf.mxu0  ;;  %v8841_v7 = vld [vmem:[%s12123_s21 + $0x148] ss:$16 sps:$4 sm:$0xff]  }
 0xbe8   : > { %v6703_v2 = vadd.f32 %v6696_v22, %v6689_v54  ;;  %v6690_v18 = vadd.f32 %v6686_v14, %v6682_v30  ;;  %v8844_v51 = vld [vmem:[%s12123_s21 + $0x128] ss:$16 sps:$4 sm:$0xff]  }
 0xbe9   : > { %v8847_v0 = vld [vmem:[%s12123_s21 + $0x108] ss:$16 sps:$4 sm:$0xff]  }
 0xbea   : > { %v6704_v60 = vadd.f32 %v6700_v58, %v6690_v18  ;;  %v6705_v32 = vmax.f32 %v6703_v2, 0.0 }
 0xbec   : > { %v6706_v4 = vmax.f32 %v6704_v60, 0.0  ;;  %v11961_v17 = vpack.c.bf16 %v6705_v32, %v6705_v32 }
 0xbee   : > { %v6708_v55 = vpack.c.bf16 %v6706_v4, %v6706_v4  ;;  %v6786_v4 = vrot.slane %v6773_v31, %v12307_v42 }
 0xbf0   : > { %7147 = vmatprep.mubr.bf16.mxu0 %v6708_v55 }
 0xbf1   : > { %7148 = vmatmul.mubr.bf16.vlgmr.msra.gmra.mxu0 %v11961_v17 }
 0xbf2   : > { %7157 = vmatpush1.bf16.msra.mxu0 %v8802_v49  ;;  %7188 = vmatprep.mubr.bf16.mxu0 %v6708_v55  ;;  %v6790_v55 = vrot.slane %v6773_v31, %v12309_v63 }
 0xbf3   : > { %7158 = vmatprep.subr.bf16.mxu0 %v8807_v15 }
 0xbf6   : > { %7159 = vmatpush1.bf16.msra.mxu0 %v8805_v20 }
 0xbf7   : > { %7160 = vmatprep.subr.bf16.mxu0 %v8810_v62 }
 0xbfa   : > { %7161 = vmatpush1.bf16.msra.mxu0 %v8808_v12 }
 0xbfb   : > { %7162 = vmatprep.subr.bf16.mxu0 %v8813_v9 }
 0xbfe   : > { %7163 = vmatpush1.bf16.msra.mxu0 %v8811_v16 }
 0xbff   : > { %7164 = vmatprep.subr.bf16.mxu0 %v8816_v19 }
 0xc02   : > { %7165 = vmatpush1.bf16.msra.mxu0 %v8814_v41 }
 0xc03   : > { %7166 = vmatprep.subr.bf16.mxu0 %v8819_v24 }
 0xc06   : > { %7167 = vmatpush1.bf16.msra.mxu0 %v8817_v13 }
 0xc07   : > { %7168 = vmatprep.subr.bf16.mxu0 %v8822_v35 }
 0xc0a   : > { %7169 = vmatpush1.bf16.msra.mxu0 %v8820_v48 }
 0xc0b   : > { %7170 = vmatprep.subr.bf16.mxu0 %v8825_v39 }
 0xc0e   : > { %7171 = vmatpush1.bf16.msra.mxu0 %v8823_v3  ;;  %v8917_v3 = vmov 1966171168  }
 0xc0f   : > { %7172 = vmatprep.subr.bf16.mxu0 %v8828_v57  ;;  %v7241_v57 = vunpack.c.l.s4 %v8917_v3 }
 0xc12   : > { %7173 = vmatpush2.bf16.msra.mxu0 %v8826_v44 }
 0xc13   : > { %7174 = vmatprep.subr.bf16.mxu0 %v8831_v45 }
 0xc16   : > { %7175 = vmatpush2.bf16.msra.mxu0 %v8829_v47 }
 0xc17   : > { %7176 = vmatprep.subr.bf16.mxu0 %v8834_v29 }
 0xc1a   : > { %7177 = vmatpush2.bf16.msra.mxu0 %v8832_v5  ;;  %v7242_v5 = vunpack.c.0.s8 %v7241_v57 }
 0xc1b   : > { %7178 = vmatprep.subr.bf16.mxu0 %v8837_v37 }
 0xc1e   : > { %7179 = vmatpush2.bf16.msra.mxu0 %v8835_v59 }
 0xc1f   : > { %7180 = vmatprep.subr.bf16.mxu0 %v8840_v36 }
 0xc22   : > { %7181 = vmatpush2.bf16.msra.mxu0 %v8838_v1  ;;  %v12314_v1 = vld [vmem:[#allocation10_spill] sm:$0xff] }
 0xc23   : > { %7182 = vmatprep.subr.bf16.mxu0 %v8843_v28  ;;  %v7245_v28 = vsub.s32 %v7242_v5, %v12314_v1 }
 0xc26   : > { %7183 = vmatpush2.bf16.msra.mxu0 %v8841_v7 }
 0xc27   : > { %7184 = vmatprep.subr.bf16.mxu0 %v8846_v25 }
 0xc2a   : > { %7185 = vmatpush2.bf16.msra.mxu0 %v8844_v51 }
 0xc2b   : > { %7186 = vmatprep.subr.bf16.mxu0 %v8849_v6 }
 0xc2e   : > { %7187 = vmatpush2.bf16.msra.mxu0 %v8847_v0  ;;  %v12315_v0 = vlaneseq }
 0xc30   : > { %vm7265_vm5 = vcmp.lt.s32.totalorder %v12315_v0, 512 }
 0xc31   : > { %7189 = vmatmul.mubr.bf16.vlgmr.msra.gmra.mxu0 %v11961_v17 }
 0xcb1   : > { %v7149_v34 = vpop.f32.mrf.mxu0 }
 0xcb2   : > { %v7150_v52 = vadd.f32 %v7149_v34, %v6778_v26 }
 0xcb3   : > { %v7151_v23 = vpop.f32.mrf.mxu0 }
 0xcb4   : > { %v7197_v8 = vmax.f32 %v7150_v52, 0.0  ;;  %v7152_v33 = vadd.f32 %v7151_v23, %v6782_v50 }
 0xcb5   : > { %v7153_v27 = vpop.f32.mrf.mxu0 }
 0xcb6   : > { %v7202_v21 = vsel %vm7201_vm4, %v7197_v8, 0.0  ;;  %v7198_v22 = vmax.f32 %v7152_v33, 0.0 }
 0xcb7   : > { %v7203_v56 = vrot.slane %v7202_v21, 4  ;;  %v7154_v61 = vpop.f32.mrf.mxu0 }
 0xcb8   : > { %v7209_v46 = vsel %vm7201_vm4, %v7198_v22, 0.0 }
 0xcb9   : > { %v7204_v43 = vadd.f32 %v7203_v56, %v7202_v21  ;;  %v7210_v40 = vrot.slane %v7209_v46, 4 }
 0xcbb   : > { %v7205_v38 = vrot.slane %v7204_v43, 2  ;;  %v7211_v11 = vadd.f32 %v7210_v40, %v7209_v46 }
 0xcbd   : > { %v7206_v14 = vadd.f32 %v7205_v38, %v7204_v43  ;;  %v7212_v53 = vrot.slane %v7211_v11, 2 }
 0xcbf   : > { %v7207_v54 = vrot.slane %v7206_v14, 1  ;;  %v7213_v30 = vadd.f32 %v7212_v53, %v7211_v11 }
 0xcc1   : > { %v7208_v58 = vadd.f32 %v7207_v54, %v7206_v14  ;;  %v7214_v10 = vrot.slane %v7213_v30, 1 }
 0xcc3   : > { %v7215_v2 = vadd.f32 %v7214_v10, %v7213_v30  ;;  %v7230_v18 = vmul.f32 0.25, %v7208_v58 }
 0xcc5   : > { %v7231_v60 = vmul.f32 0.25, %v7215_v2 }
 0xcc7   : > { %v7238_v32 = vcombine.low %v7230_v18, %v7231_v60 }
 0xcc9   : > { %v7246_v25 = vrot.slane %v7238_v32, %v7245_v28 }
 0xcf1   : > { %v7190_v49 = vpop.f32.mrf.mxu0 }
 0xcf2   : > { %v7191_v17 = vadd.f32 %v7190_v49, %v6786_v4 }
 0xcf3   : > { %v7192_v15 = vpop.f32.mrf.mxu0 }
 0xcf4   : > { %v7199_v20 = vmax.f32 %v7191_v17, 0.0  ;;  %v7193_v62 = vadd.f32 %v7192_v15, %v6790_v55 }
 0xcf5   : > { %v7194_v12 = vpop.f32.mrf.mxu0 }
 0xcf6   : > { %v7216_v9 = vsel %vm7201_vm4, %v7199_v20, 0.0  ;;  %v7200_v16 = vmax.f32 %v7193_v62, 0.0 }
 0xcf7   : > { %v7217_v19 = vrot.slane %v7216_v9, 4  ;;  %v7195_v41 = vpop.f32.mrf.mxu0 }
 0xcf8   : > { %v7223_v24 = vsel %vm7201_vm4, %v7200_v16, 0.0 }
 0xcf9   : > { %v7218_v13 = vadd.f32 %v7217_v19, %v7216_v9  ;;  %v7224_v35 = vrot.slane %v7223_v24, 4 }
 0xcfb   : > { %v7219_v48 = vrot.slane %v7218_v13, 2  ;;  %v7225_v42 = vadd.f32 %v7224_v35, %v7223_v24 }
 0xcfd   : > { %v7220_v39 = vadd.f32 %v7219_v48, %v7218_v13  ;;  %v7226_v63 = vrot.slane %v7225_v42, 2 }
 0xcff   : > { %v7221_v44 = vrot.slane %v7220_v39, 1  ;;  %v7227_v45 = vadd.f32 %v7226_v63, %v7225_v42 }
 0xd01   : > { %v7222_v47 = vadd.f32 %v7221_v44, %v7220_v39  ;;  %v7228_v29 = vrot.slane %v7227_v45, 1 }
 0xd03   : > { %v7229_v37 = vadd.f32 %v7228_v29, %v7227_v45  ;;  %v7232_v59 = vmul.f32 0.25, %v7222_v47 }
 0xd05   : > { %v7233_v36 = vmul.f32 0.25, %v7229_v37 }
 0xd07   : > { %v7239_v7 = vcombine.low %v7232_v59, %v7233_v36 }
 0xd09   : > { %v7253_v51 = vrot.slane %v7239_v7, %v7245_v28 }
 0xd0b   : > { %v7254_v6 = vcombine.low %v7246_v25, %v7253_v51 }
 0xd0d   : > { %v7261_v31 = vrot.slane %v7254_v6, %v7245_v28 }
 0xd0f   : > { %7267 = vst.msk [vmem:[%s704_s6] sm:$0xf] %vm7265_vm5, %v7261_v31 }
 0xd10   : > { %8865 = shalt.err (!%p8862_p3)
}
 0xd11   : > { %s8866_s9 = scalar_lea.hbm %s7281_s28, 64  ;;  %s8870_s6 = scalar_lea.hbm %s12125_s23, 128 }
 0xd12   : > { %p8867_p4 = scmp.ne.s32.totalorder %s7281_s28, %s8866_s9  ;;  %p8871_p9 = scmp.lt.s32.totalorder %s7281_s28, %s12125_s23 }
 0xd13   : > { %p8872_p10 = scmp.lt.s32.totalorder %s8870_s6, %s8866_s9 }
 0xd14   : > { %p8868_p7 = pnand %p8867_p4, %p9077_p5 }
 0xd15   : > { %p8873_p11 = por %p8872_p10, %p8871_p9 }
 0xd16   : > { %p8869_p8 = pneg %p8868_p7 }
 0xd18   : > { %p8874_p12 = pnand %p8873_p11, %p8869_p8 }
 0xd1a   : > { %8877 = shalt.err (!%p8874_p12)
}
 0xd1b   : > { %8111 = dma.vmem_to_hbm [thread:$0]  (%p9077_p5), %s7284_s24, 64, %s7281_s28, %s7269_s26  }
 0xd1c PF: > { %s12316_s8 = sld [smem:[#allocation5_spill]]  ;;  %p8117_p13 = scmp.ge.s32.totalorder %s8912_s25, 2 }
 0xd1e   : > { %p8114_p0 = pnand %p8117_p13, %p9081_p6 }
 0xd20   : > { %p8115_p1 = pneg %p8114_p0 }
 0xd22   : > { %s7295_s5 = sand.u32 1, %s12316_s8  }
 0xd23   : > { %s7296_s3 = scalar_lea.sflag [#allocation3], %s7295_s5 }
 0xd24   : > { %8895 = dma.done.wait (%p8115_p1), %s7296_s3, 64  }
 0xd25   : > { %8897 = vsyncadd (%p8115_p1), %s7296_s3, 4294967232  ;;  %s12318_s25 = sld [smem:[#allocation7_spill]]  ;;  %s12321_s4 = smov %s8904_s30 }
 0xd26   : > { %s12319_s9 = sld [smem:[#allocation6_spill]] }
 0xd27   : > { %s12320_s24 = sld [smem:[#allocation8_spill]] }
 0xd2b   : > { %p33_p2 = scmp.ge.s32.totalorder %s12318_s25, 4  }
 0xd2c   : > { %s12322_s30 = smov %s12319_s9 }
 0xd2d   :  { %35 = sbr.rel (!%p33_p2) target bundleno = 14 (0xe), region = 147 }
 0xd32   :  { %7301 = vsyncpa [#allocation3], 1 }
 0xd33   :  { %7303 = vsyncpa [#allocation3 + $0x1], 1 }

</bundles_post_ra>
